<compile_context>
chip_gen: v7x
topology: tpu7x:2x2x1
jax: 0.10.0
libtpu: 0.0.40
codegen_flags: <defaults>
</compile_context>

<pallas_src>
import numpy as np

import jax
import jax.numpy as jnp
from jax.experimental import pallas as pl
from jax.experimental.pallas import tpu as pltpu


# ------------------------------ Pallas kernel -------------------------------

def _encoder_b_kernel(x_ref,
                      m1_ref, b1_ref, m2_ref, b2_ref, m3_ref, b3_ref,
                      w4_ref, b4_ref, w5_ref, b5_ref, w6_ref, b6_ref,
                      out_ref):
    """One batch tile of TB images per grid step; everything VMEM-resident.

    Activation layout: (H, TB, W*C) -- H on the leading dim, batch on the
    sublane dim, (w, c) lane-dense.  Conv row padding is one zero row at the
    top and bottom of the leading dim.
    """

    def gather_taps(a):
        # a: (2*Ho + 2, TB, WC) with zero rows at index 0 and -1.
        # Output row i of a 4x4/stride-2/pad-1 conv reads padded rows
        # 2i, 2i+1, 2i+2, 2i+3 (taps kh = 0..3).  Gather them with
        # leading-dim slices / reshapes (free) and concatenate along lanes.
        hp, tb, wc = a.shape
        ho = (hp - 2) // 2
        lo = a[0:2 * ho].reshape(ho, 2, tb, wc)        # rows (2i,   2i+1)
        hi = a[2:2 * ho + 2].reshape(ho, 2, tb, wc)    # rows (2i+2, 2i+3)
        return jnp.concatenate(
            [lo[:, 0], lo[:, 1], hi[:, 0], hi[:, 1]], axis=-1)   # (Ho,TB,4*WC)

    def conv(a_padded, m_ref, b_ref):
        # conv + bias + ReLU as ONE fused-K matmul (K = 4*WC, M = Ho*TB).
        t = gather_taps(a_padded)                      # (Ho, TB, 4*WC) bf16
        ho, tb, k = t.shape
        y = jnp.dot(t.reshape(ho * tb, k), m_ref[...],
                    preferred_element_type=jnp.float32)
        y = jnp.maximum(y + b_ref[...], 0.0)           # f32 epilogue
        return y.astype(jnp.bfloat16).reshape(ho, tb, -1)

    def pad_rows(a):
        z = jnp.zeros((1,) + a.shape[1:], a.dtype)
        return jnp.concatenate([z, a, z], axis=0)      # zero row top/bottom

    x = x_ref[...]                                     # (34, TB, 128), padded
    a1 = conv(x, m1_ref, b1_ref)                       # (16, TB, 512)
    a2 = conv(pad_rows(a1), m2_ref, b2_ref)            # (8,  TB, 256)
    a3 = conv(pad_rows(a2), m3_ref, b3_ref)            # (4,  TB, 128)

    # fc4: torch NCHW flatten folded into a pre-permuted weight; the
    # (4, TB, 128) conv3 output is lane-concatenated (free) into (TB, 512).
    x4 = jnp.concatenate([a3[i] for i in range(a3.shape[0])], axis=-1)
    h = jnp.dot(x4, w4_ref[...], preferred_element_type=jnp.float32)
    h = jnp.maximum(h + b4_ref[...], 0.0).astype(jnp.bfloat16)       # (TB,256)

    h = jnp.dot(h, w5_ref[...], preferred_element_type=jnp.float32)
    h = jnp.maximum(h + b5_ref[...], 0.0).astype(jnp.bfloat16)       # (TB,256)

    # fc6, zero-padded to 128 output lanes -> lane-dense store.
    out_ref[...] = (jnp.dot(h, w6_ref[...],
                            preferred_element_type=jnp.float32)
                    + b6_ref[...])                                    # (TB,128)


# -------------------------- offline parameter prep --------------------------

def _conv_taps_to_matrix(w_oihw, hi, wi, lane_pad=None):
    """Lower torch Conv2d(O, C, 4, 4, stride=2, pad=1) on an (hi, wi) map to a
    single matrix M of shape (4*WCp, wo*O) such that
        out[i] = concat_kh(padded_row[2i + kh]) @ M
    where activation rows are laid out as act[h, w*C + c] (lane-padded WCp)."""
    w = np.asarray(w_oihw, np.float32)
    o, c, n_kh, n_kw = w.shape
    wo = wi // 2
    wc = wi * c
    wcp = wc if lane_pad is None else lane_pad
    assert wcp >= wc
    m = np.zeros((n_kh * wcp, wo * o), np.float32)
    for kh in range(n_kh):
        for kw in range(n_kw):
            blk = w[:, :, kh, kw].T                    # (C, O)
            for j in range(wo):
                wsrc = 2 * j + kw - 1                  # -1 == zero padding
                if 0 <= wsrc < wi:
                    m[kh * wcp + wsrc * c: kh * wcp + (wsrc + 1) * c,
                      j * o:(j + 1) * o] = blk
    return m


def prepare_params(params, img_hw=32, conv_ch=32, lane=128):
    (w1, b1, w2, b2, w3, b3, w4, b4, w5, b5, w6, b6) = params
    s0, s1, s2, s3 = img_hw, img_hw // 2, img_hw // 4, img_hw // 8  # 32,16,8,4

    m1 = _conv_taps_to_matrix(w1, s0, s0, lane_pad=lane)   # (512,  512)
    m2 = _conv_taps_to_matrix(w2, s1, s1)                  # (2048, 256)
    m3 = _conv_taps_to_matrix(w3, s2, s2)                  # (1024, 128)
    b1t = np.tile(np.asarray(b1, np.float32), s1)[None]    # (1, 512)
    b2t = np.tile(np.asarray(b2, np.float32), s2)[None]    # (1, 256)
    b3t = np.tile(np.asarray(b3, np.float32), s3)[None]    # (1, 128)

    # fc4: fold the torch NCHW flatten (c*16 + h*4 + w) into a weight whose
    # rows are ordered h*128 + w*32 + c, matching the kernel's lane-concat of
    # the (4, TB, 128) conv3 output.
    w4_np = np.asarray(w4, np.float32).reshape(-1, conv_ch, s3, s3)  # (n,c,h,w)
    w4_eff = np.transpose(w4_np, (2, 3, 1, 0)).reshape(s3 * s3 * conv_ch, -1)
    w5_eff = np.asarray(w5, np.float32).T

    n_out = np.asarray(w6).shape[0]
    w6_eff = np.zeros((np.asarray(w6).shape[1], lane), np.float32)
    w6_eff[:, :n_out] = np.asarray(w6, np.float32).T       # zero-pad to N=128
    b6_eff = np.zeros((1, lane), np.float32)
    b6_eff[0, :n_out] = np.asarray(b6, np.float32)

    bf = lambda a: jnp.asarray(a, jnp.bfloat16)
    f32 = lambda a: jnp.asarray(a, jnp.float32)
    return dict(
        m1=bf(m1), b1=f32(b1t),
        m2=bf(m2), b2=f32(b2t),
        m3=bf(m3), b3=f32(b3t),
        w4=bf(w4_eff), b4=f32(np.asarray(b4, np.float32)[None]),
        w5=bf(w5_eff), b5=f32(np.asarray(b5, np.float32)[None]),
        w6=bf(w6_eff), b6=f32(b6_eff),
    )


# --------------------------------- wrapper ----------------------------------

def _round_up(n, m):
    return (n + m - 1) // m * m


def encoder_b_forward(x_nchw, prep, zP=3, zS=5, tile_b=128):
    B, C, H, W = x_nchw.shape
    lane = prep['m1'].shape[0] // 4            # padded conv1 lane width (128)
    assert W * C <= lane

    TB = _round_up(min(tile_b, _round_up(B, 8)), 8)    # batch tile, mult of 8
    Bp = _round_up(B, TB)

    # (B,C,H,W) -> (H, B, W*C) with (w, c) lane layout; pad lanes to 128, add
    # one zero conv-padding row top/bottom, zero-pad batch to a multiple of TB.
    x = jnp.transpose(x_nchw, (2, 0, 3, 1)).reshape(H, B, W * C)
    x = x.astype(jnp.bfloat16)
    x = jnp.pad(x, ((1, 1), (0, Bp - B), (0, lane - W * C)))  # (H+2, Bp, 128)

    names = ('m1', 'b1', 'm2', 'b2', 'm3', 'b3',
             'w4', 'b4', 'w5', 'b5', 'w6', 'b6')
    weights = [prep[k] for k in names]
    n_lanes = prep['w6'].shape[1]              # 128 (fc6 zero-padded)

    def full(a):
        return pl.BlockSpec(a.shape, lambda b, _nd=a.ndim: (0,) * _nd)

    stats_pad = pl.pallas_call(
        _encoder_b_kernel,
        out_shape=jax.ShapeDtypeStruct((Bp, n_lanes), jnp.float32),
        grid=(Bp // TB,),
        in_specs=[pl.BlockSpec((H + 2, TB, lane), lambda b: (0, b, 0))]
                 + [full(a) for a in weights],
        out_specs=pl.BlockSpec((TB, n_lanes), lambda b: (b, 0)),
        compiler_params=pltpu.CompilerParams(
            dimension_semantics=("parallel",)),
    )(x, *weights)

    stats = stats_pad[:B, :2 * (zP + zS)]
    muPrivate = stats[:, :zP]
    logvarPrivate = stats[:, zP:2 * zP]
    stdPrivate = jnp.exp(0.5 * logvarPrivate)          # == sqrt(exp(logvar))
    muShared = stats[:, 2 * zP:2 * zP + zS]
    logvarShared = stats[:, 2 * zP + zS:2 * zP + 2 * zS]
    stdShared = jnp.exp(0.5 * logvarShared)
    return (muPrivate, stdPrivate, logvarPrivate,
            muShared, stdShared, logvarShared)


# ----------------------- pure-JAX reference (f32) ---------------------------

def _reference_stats(x_nchw, params):
    (w1, b1, w2, b2, w3, b3, w4, b4, w5, b5, w6, b6) = params
    y = x_nchw
    for w, b in ((w1, b1), (w2, b2), (w3, b3)):
        y = jax.lax.conv_general_dilated(
            y, w, window_strides=(2, 2), padding=((1, 1), (1, 1)),
            dimension_numbers=('NCHW', 'OIHW', 'NCHW'))
        y = jax.nn.relu(y + b.reshape(1, -1, 1, 1))
    flat = y.reshape(y.shape[0], -1)
    h = jax.nn.relu(flat @ w4.T + b4)
    h = jax.nn.relu(h @ w5.T + b5)
    return h @ w6.T + b6


# ---------------------------------- driver ----------------------------------

if __name__ == "__main__":
    key = jax.random.PRNGKey(0)
    zP, zS = 3, 5
    out_dim = 2 * zP + 2 * zS                           # 16
    ks = jax.random.split(key, 16)

    def nrm(k, shape):                                  # N(0, 0.02)
        return 0.02 * jax.random.normal(k, shape, jnp.float32)

    # torch layouts: Conv2d [O, C, kH, kW], Linear [out, in].  Biases are made
    # nonzero here (unlike normal_init) purely to exercise the bias path.
    w1 = nrm(ks[0], (32, 3, 4, 4));     b1 = nrm(ks[7], (32,))
    w2 = nrm(ks[1], (32, 32, 4, 4));    b2 = nrm(ks[8], (32,))
    w3 = nrm(ks[2], (32, 32, 4, 4));    b3 = nrm(ks[9], (32,))
    w4 = nrm(ks[3], (256, 32 * 4 * 4)); b4 = nrm(ks[10], (256,))
    w5 = nrm(ks[4], (256, 256));        b5 = nrm(ks[11], (256,))
    w6 = nrm(ks[5], (out_dim, 256));    b6 = nrm(ks[12], (out_dim,))
    params = (w1, b1, w2, b2, w3, b3, w4, b4, w5, b5, w6, b6)

    prep = prepare_params(params)

    # Module requires 32x32 3-channel input (32 -> 16 -> 8 -> 4 spatial).
    # B=12 with tile_b=8 exercises both the batch padding (12 -> 16) and a
    # multi-step "parallel" grid (grid=(2,), both TCs on v7x).
    B = 12
    x = jax.random.normal(ks[6], (B, 3, 32, 32), jnp.float32)

    outs = encoder_b_forward(x, prep, zP=zP, zS=zS, tile_b=8)
    outs = jax.block_until_ready(outs)

    # shape / finiteness checks
    expected = [(B, zP), (B, zP), (B, zP), (B, zS), (B, zS), (B, zS)]
    assert [tuple(o.shape) for o in outs] == expected, \
        [tuple(o.shape) for o in outs]
    assert all(bool(jnp.all(jnp.isfinite(o))) for o in outs)

    # module contract: std == sqrt(exp(logvar))  (we use exp(0.5*logvar))
    assert bool(jnp.allclose(outs[1], jnp.sqrt(jnp.exp(outs[2])),
                             rtol=1e-5, atol=1e-6))
    assert bool(jnp.allclose(outs[4], jnp.sqrt(jnp.exp(outs[5])),
                             rtol=1e-5, atol=1e-6))

    # numeric check of the fused bf16 kernel against an f32 reference
    stats_kernel = jnp.concatenate([outs[0], outs[2], outs[3], outs[5]], axis=1)
    stats_ref = _reference_stats(x, params)
    err = float(jnp.max(jnp.abs(stats_kernel - stats_ref)))
    scale = float(jnp.max(jnp.abs(stats_ref))) + 1e-12
    assert err / scale < 0.1, ("kernel/reference mismatch", err, scale)

    print("KERNEL_OK")
</pallas_src>

<mosaic_0001>
module attributes {stable_mosaic.version = 11 : i64} {
  func.func @_encoder_b_kernel(%arg0: i32, %arg1: memref<34x8x128xbf16, #tpu.memory_space<vmem>>, %arg2: memref<512x512xbf16, #tpu.memory_space<vmem>>, %arg3: memref<1x512xf32, #tpu.memory_space<vmem>>, %arg4: memref<2048x256xbf16, #tpu.memory_space<vmem>>, %arg5: memref<1x256xf32, #tpu.memory_space<vmem>>, %arg6: memref<1024x128xbf16, #tpu.memory_space<vmem>>, %arg7: memref<1x128xf32, #tpu.memory_space<vmem>>, %arg8: memref<512x256xbf16, #tpu.memory_space<vmem>>, %arg9: memref<1x256xf32, #tpu.memory_space<vmem>>, %arg10: memref<256x256xbf16, #tpu.memory_space<vmem>>, %arg11: memref<1x256xf32, #tpu.memory_space<vmem>>, %arg12: memref<256x128xbf16, #tpu.memory_space<vmem>>, %arg13: memref<1x128xf32, #tpu.memory_space<vmem>>, %arg14: memref<8x128xf32, #tpu.memory_space<vmem>>) attributes {dimension_semantics = [#tpu.dimension_semantics<parallel>], iteration_bounds = array<i64: 2>, scalar_prefetch = 0 : i64, scratch_operands = 0 : i64, tpu.core_type = #tpu.core_type<tc>, window_params = [{transform_indices = @transform_0, window_bounds = array<i64: 34, 8, 128>}, {pipeline_mode = #tpu.pipeline_mode<synchronous>, transform_indices = @transform_1, window_bounds = array<i64: 512, 512>}, {pipeline_mode = #tpu.pipeline_mode<synchronous>, transform_indices = @transform_2, window_bounds = array<i64: 1, 512>}, {pipeline_mode = #tpu.pipeline_mode<synchronous>, transform_indices = @transform_3, window_bounds = array<i64: 2048, 256>}, {pipeline_mode = #tpu.pipeline_mode<synchronous>, transform_indices = @transform_4, window_bounds = array<i64: 1, 256>}, {pipeline_mode = #tpu.pipeline_mode<synchronous>, transform_indices = @transform_5, window_bounds = array<i64: 1024, 128>}, {pipeline_mode = #tpu.pipeline_mode<synchronous>, transform_indices = @transform_6, window_bounds = array<i64: 1, 128>}, {pipeline_mode = #tpu.pipeline_mode<synchronous>, transform_indices = @transform_7, window_bounds = array<i64: 512, 256>}, {pipeline_mode = #tpu.pipeline_mode<synchronous>, transform_indices = @transform_8, window_bounds = array<i64: 1, 256>}, {pipeline_mode = #tpu.pipeline_mode<synchronous>, transform_indices = @transform_9, window_bounds = array<i64: 256, 256>}, {pipeline_mode = #tpu.pipeline_mode<synchronous>, transform_indices = @transform_10, window_bounds = array<i64: 1, 256>}, {pipeline_mode = #tpu.pipeline_mode<synchronous>, transform_indices = @transform_11, window_bounds = array<i64: 256, 128>}, {pipeline_mode = #tpu.pipeline_mode<synchronous>, transform_indices = @transform_12, window_bounds = array<i64: 1, 128>}, {transform_indices = @transform_13, window_bounds = array<i64: 8, 128>}]} {
    %c0 = arith.constant 0 : index
    %c0_0 = arith.constant 0 : index
    %c0_1 = arith.constant 0 : index
    %0 = vector.load %arg1[%c0, %c0_0, %c0_1] : memref<34x8x128xbf16, #tpu.memory_space<vmem>>, vector<34x8x128xbf16>
    %1 = vector.extract_strided_slice %0 {offsets = [0, 0, 0], sizes = [32, 8, 128], strides = [1, 1, 1]} : vector<34x8x128xbf16> to vector<32x8x128xbf16>
    %2 = vector.shape_cast %1 : vector<32x8x128xbf16> to vector<16x2x8x128xbf16>
    %3 = vector.extract_strided_slice %0 {offsets = [2, 0, 0], sizes = [32, 8, 128], strides = [1, 1, 1]} : vector<34x8x128xbf16> to vector<32x8x128xbf16>
    %4 = vector.shape_cast %3 : vector<32x8x128xbf16> to vector<16x2x8x128xbf16>
    %5 = vector.extract_strided_slice %2 {offsets = [0, 0, 0, 0], sizes = [16, 1, 8, 128], strides = [1, 1, 1, 1]} : vector<16x2x8x128xbf16> to vector<16x1x8x128xbf16>
    %6 = vector.shape_cast %5 : vector<16x1x8x128xbf16> to vector<16x8x128xbf16>
    %7 = vector.extract_strided_slice %2 {offsets = [0, 1, 0, 0], sizes = [16, 1, 8, 128], strides = [1, 1, 1, 1]} : vector<16x2x8x128xbf16> to vector<16x1x8x128xbf16>
    %8 = vector.shape_cast %7 : vector<16x1x8x128xbf16> to vector<16x8x128xbf16>
    %9 = vector.extract_strided_slice %4 {offsets = [0, 0, 0, 0], sizes = [16, 1, 8, 128], strides = [1, 1, 1, 1]} : vector<16x2x8x128xbf16> to vector<16x1x8x128xbf16>
    %10 = vector.shape_cast %9 : vector<16x1x8x128xbf16> to vector<16x8x128xbf16>
    %11 = vector.extract_strided_slice %4 {offsets = [0, 1, 0, 0], sizes = [16, 1, 8, 128], strides = [1, 1, 1, 1]} : vector<16x2x8x128xbf16> to vector<16x1x8x128xbf16>
    %12 = vector.shape_cast %11 : vector<16x1x8x128xbf16> to vector<16x8x128xbf16>
    %13 = tpu.concatenate %6, %8, %10, %12 in 2 : vector<16x8x128xbf16>, vector<16x8x128xbf16>, vector<16x8x128xbf16>, vector<16x8x128xbf16> -> vector<16x8x512xbf16>
    %14 = vector.shape_cast %13 : vector<16x8x512xbf16> to vector<128x512xbf16>
    %c0_2 = arith.constant 0 : index
    %c0_3 = arith.constant 0 : index
    %15 = vector.load %arg2[%c0_2, %c0_3] : memref<512x512xbf16, #tpu.memory_space<vmem>>, vector<512x512xbf16>
    %cst = arith.constant dense<0.000000e+00> : vector<128x512xf32>
    %16 = tpu.matmul %14, %15, %cst {dimension_numbers = #tpu.dot_dimension_numbers<[1], [0], [0], [1], [0, 0, 1, 1], [], []>} : vector<128x512xbf16>, vector<512x512xbf16>, vector<128x512xf32> -> vector<128x512xf32>
    %c0_4 = arith.constant 0 : index
    %c0_5 = arith.constant 0 : index
    %17 = vector.load %arg3[%c0_4, %c0_5] : memref<1x512xf32, #tpu.memory_space<vmem>>, vector<1x512xf32>
    %18 = vector.broadcast %17 : vector<1x512xf32> to vector<128x512xf32>
    %19 = arith.addf %16, %18 : vector<128x512xf32>
    %cst_6 = arith.constant 0.000000e+00 : f32
    %20 = vector.broadcast %cst_6 : f32 to vector<128x512xf32>
    %21 = arith.maximumf %19, %20 : vector<128x512xf32>
    %22 = arith.truncf %21 : vector<128x512xf32> to vector<128x512xbf16>
    %23 = vector.shape_cast %22 : vector<128x512xbf16> to vector<16x8x512xbf16>
    %cst_7 = arith.constant 0.000000e+00 : bf16
    %24 = vector.broadcast %cst_7 : bf16 to vector<1x8x512xbf16>
    %25 = tpu.concatenate %24, %23, %24 in 0 : vector<1x8x512xbf16>, vector<16x8x512xbf16>, vector<1x8x512xbf16> -> vector<18x8x512xbf16>
    %26 = vector.extract_strided_slice %25 {offsets = [0, 0, 0], sizes = [16, 8, 512], strides = [1, 1, 1]} : vector<18x8x512xbf16> to vector<16x8x512xbf16>
    %27 = vector.shape_cast %26 : vector<16x8x512xbf16> to vector<8x2x8x512xbf16>
    %28 = vector.extract_strided_slice %25 {offsets = [2, 0, 0], sizes = [16, 8, 512], strides = [1, 1, 1]} : vector<18x8x512xbf16> to vector<16x8x512xbf16>
    %29 = vector.shape_cast %28 : vector<16x8x512xbf16> to vector<8x2x8x512xbf16>
    %30 = vector.extract_strided_slice %27 {offsets = [0, 0, 0, 0], sizes = [8, 1, 8, 512], strides = [1, 1, 1, 1]} : vector<8x2x8x512xbf16> to vector<8x1x8x512xbf16>
    %31 = vector.shape_cast %30 : vector<8x1x8x512xbf16> to vector<8x8x512xbf16>
    %32 = vector.extract_strided_slice %27 {offsets = [0, 1, 0, 0], sizes = [8, 1, 8, 512], strides = [1, 1, 1, 1]} : vector<8x2x8x512xbf16> to vector<8x1x8x512xbf16>
    %33 = vector.shape_cast %32 : vector<8x1x8x512xbf16> to vector<8x8x512xbf16>
    %34 = vector.extract_strided_slice %29 {offsets = [0, 0, 0, 0], sizes = [8, 1, 8, 512], strides = [1, 1, 1, 1]} : vector<8x2x8x512xbf16> to vector<8x1x8x512xbf16>
    %35 = vector.shape_cast %34 : vector<8x1x8x512xbf16> to vector<8x8x512xbf16>
    %36 = vector.extract_strided_slice %29 {offsets = [0, 1, 0, 0], sizes = [8, 1, 8, 512], strides = [1, 1, 1, 1]} : vector<8x2x8x512xbf16> to vector<8x1x8x512xbf16>
    %37 = vector.shape_cast %36 : vector<8x1x8x512xbf16> to vector<8x8x512xbf16>
    %38 = tpu.concatenate %31, %33, %35, %37 in 2 : vector<8x8x512xbf16>, vector<8x8x512xbf16>, vector<8x8x512xbf16>, vector<8x8x512xbf16> -> vector<8x8x2048xbf16>
    %39 = vector.shape_cast %38 : vector<8x8x2048xbf16> to vector<64x2048xbf16>
    %c0_8 = arith.constant 0 : index
    %c0_9 = arith.constant 0 : index
    %40 = vector.load %arg4[%c0_8, %c0_9] : memref<2048x256xbf16, #tpu.memory_space<vmem>>, vector<2048x256xbf16>
    %cst_10 = arith.constant dense<0.000000e+00> : vector<64x256xf32>
    %41 = tpu.matmul %39, %40, %cst_10 {dimension_numbers = #tpu.dot_dimension_numbers<[1], [0], [0], [1], [0, 0, 1, 1], [], []>} : vector<64x2048xbf16>, vector<2048x256xbf16>, vector<64x256xf32> -> vector<64x256xf32>
    %c0_11 = arith.constant 0 : index
    %c0_12 = arith.constant 0 : index
    %42 = vector.load %arg5[%c0_11, %c0_12] : memref<1x256xf32, #tpu.memory_space<vmem>>, vector<1x256xf32>
    %43 = vector.broadcast %42 : vector<1x256xf32> to vector<64x256xf32>
    %44 = arith.addf %41, %43 : vector<64x256xf32>
    %cst_13 = arith.constant 0.000000e+00 : f32
    %45 = vector.broadcast %cst_13 : f32 to vector<64x256xf32>
    %46 = arith.maximumf %44, %45 : vector<64x256xf32>
    %47 = arith.truncf %46 : vector<64x256xf32> to vector<64x256xbf16>
    %48 = vector.shape_cast %47 : vector<64x256xbf16> to vector<8x8x256xbf16>
    %cst_14 = arith.constant 0.000000e+00 : bf16
    %49 = vector.broadcast %cst_14 : bf16 to vector<1x8x256xbf16>
    %50 = tpu.concatenate %49, %48, %49 in 0 : vector<1x8x256xbf16>, vector<8x8x256xbf16>, vector<1x8x256xbf16> -> vector<10x8x256xbf16>
    %51 = vector.extract_strided_slice %50 {offsets = [0, 0, 0], sizes = [8, 8, 256], strides = [1, 1, 1]} : vector<10x8x256xbf16> to vector<8x8x256xbf16>
    %52 = vector.shape_cast %51 : vector<8x8x256xbf16> to vector<4x2x8x256xbf16>
    %53 = vector.extract_strided_slice %50 {offsets = [2, 0, 0], sizes = [8, 8, 256], strides = [1, 1, 1]} : vector<10x8x256xbf16> to vector<8x8x256xbf16>
    %54 = vector.shape_cast %53 : vector<8x8x256xbf16> to vector<4x2x8x256xbf16>
    %55 = vector.extract_strided_slice %52 {offsets = [0, 0, 0, 0], sizes = [4, 1, 8, 256], strides = [1, 1, 1, 1]} : vector<4x2x8x256xbf16> to vector<4x1x8x256xbf16>
    %56 = vector.shape_cast %55 : vector<4x1x8x256xbf16> to vector<4x8x256xbf16>
    %57 = vector.extract_strided_slice %52 {offsets = [0, 1, 0, 0], sizes = [4, 1, 8, 256], strides = [1, 1, 1, 1]} : vector<4x2x8x256xbf16> to vector<4x1x8x256xbf16>
    %58 = vector.shape_cast %57 : vector<4x1x8x256xbf16> to vector<4x8x256xbf16>
    %59 = vector.extract_strided_slice %54 {offsets = [0, 0, 0, 0], sizes = [4, 1, 8, 256], strides = [1, 1, 1, 1]} : vector<4x2x8x256xbf16> to vector<4x1x8x256xbf16>
    %60 = vector.shape_cast %59 : vector<4x1x8x256xbf16> to vector<4x8x256xbf16>
    %61 = vector.extract_strided_slice %54 {offsets = [0, 1, 0, 0], sizes = [4, 1, 8, 256], strides = [1, 1, 1, 1]} : vector<4x2x8x256xbf16> to vector<4x1x8x256xbf16>
    %62 = vector.shape_cast %61 : vector<4x1x8x256xbf16> to vector<4x8x256xbf16>
    %63 = tpu.concatenate %56, %58, %60, %62 in 2 : vector<4x8x256xbf16>, vector<4x8x256xbf16>, vector<4x8x256xbf16>, vector<4x8x256xbf16> -> vector<4x8x1024xbf16>
    %64 = vector.shape_cast %63 : vector<4x8x1024xbf16> to vector<32x1024xbf16>
    %c0_15 = arith.constant 0 : index
    %c0_16 = arith.constant 0 : index
    %65 = vector.load %arg6[%c0_15, %c0_16] : memref<1024x128xbf16, #tpu.memory_space<vmem>>, vector<1024x128xbf16>
    %cst_17 = arith.constant dense<0.000000e+00> : vector<32x128xf32>
    %66 = tpu.matmul %64, %65, %cst_17 {dimension_numbers = #tpu.dot_dimension_numbers<[1], [0], [0], [1], [0, 0, 1, 1], [], []>} : vector<32x1024xbf16>, vector<1024x128xbf16>, vector<32x128xf32> -> vector<32x128xf32>
    %c0_18 = arith.constant 0 : index
    %c0_19 = arith.constant 0 : index
    %67 = vector.load %arg7[%c0_18, %c0_19] : memref<1x128xf32, #tpu.memory_space<vmem>>, vector<1x128xf32>
    %68 = vector.broadcast %67 : vector<1x128xf32> to vector<32x128xf32>
    %69 = arith.addf %66, %68 : vector<32x128xf32>
    %cst_20 = arith.constant 0.000000e+00 : f32
    %70 = vector.broadcast %cst_20 : f32 to vector<32x128xf32>
    %71 = arith.maximumf %69, %70 : vector<32x128xf32>
    %72 = arith.truncf %71 : vector<32x128xf32> to vector<32x128xbf16>
    %73 = vector.shape_cast %72 : vector<32x128xbf16> to vector<4x8x128xbf16>
    %74 = vector.extract_strided_slice %73 {offsets = [0, 0, 0], sizes = [1, 8, 128], strides = [1, 1, 1]} : vector<4x8x128xbf16> to vector<1x8x128xbf16>
    %75 = vector.shape_cast %74 : vector<1x8x128xbf16> to vector<8x128xbf16>
    %76 = vector.extract_strided_slice %73 {offsets = [1, 0, 0], sizes = [1, 8, 128], strides = [1, 1, 1]} : vector<4x8x128xbf16> to vector<1x8x128xbf16>
    %77 = vector.shape_cast %76 : vector<1x8x128xbf16> to vector<8x128xbf16>
    %78 = vector.extract_strided_slice %73 {offsets = [2, 0, 0], sizes = [1, 8, 128], strides = [1, 1, 1]} : vector<4x8x128xbf16> to vector<1x8x128xbf16>
    %79 = vector.shape_cast %78 : vector<1x8x128xbf16> to vector<8x128xbf16>
    %80 = vector.extract_strided_slice %73 {offsets = [3, 0, 0], sizes = [1, 8, 128], strides = [1, 1, 1]} : vector<4x8x128xbf16> to vector<1x8x128xbf16>
    %81 = vector.shape_cast %80 : vector<1x8x128xbf16> to vector<8x128xbf16>
    %82 = tpu.concatenate %75, %77, %79, %81 in 1 : vector<8x128xbf16>, vector<8x128xbf16>, vector<8x128xbf16>, vector<8x128xbf16> -> vector<8x512xbf16>
    %c0_21 = arith.constant 0 : index
    %c0_22 = arith.constant 0 : index
    %83 = vector.load %arg8[%c0_21, %c0_22] : memref<512x256xbf16, #tpu.memory_space<vmem>>, vector<512x256xbf16>
    %cst_23 = arith.constant dense<0.000000e+00> : vector<8x256xf32>
    %84 = tpu.matmul %82, %83, %cst_23 {dimension_numbers = #tpu.dot_dimension_numbers<[1], [0], [0], [1], [0, 0, 1, 1], [], []>} : vector<8x512xbf16>, vector<512x256xbf16>, vector<8x256xf32> -> vector<8x256xf32>
    %c0_24 = arith.constant 0 : index
    %c0_25 = arith.constant 0 : index
    %85 = vector.load %arg9[%c0_24, %c0_25] : memref<1x256xf32, #tpu.memory_space<vmem>>, vector<1x256xf32>
    %86 = vector.broadcast %85 : vector<1x256xf32> to vector<8x256xf32>
    %87 = arith.addf %84, %86 : vector<8x256xf32>
    %cst_26 = arith.constant 0.000000e+00 : f32
    %88 = vector.broadcast %cst_26 : f32 to vector<8x256xf32>
    %89 = arith.maximumf %87, %88 : vector<8x256xf32>
    %90 = arith.truncf %89 : vector<8x256xf32> to vector<8x256xbf16>
    %c0_27 = arith.constant 0 : index
    %c0_28 = arith.constant 0 : index
    %91 = vector.load %arg10[%c0_27, %c0_28] : memref<256x256xbf16, #tpu.memory_space<vmem>>, vector<256x256xbf16>
    %cst_29 = arith.constant dense<0.000000e+00> : vector<8x256xf32>
    %92 = tpu.matmul %90, %91, %cst_29 {dimension_numbers = #tpu.dot_dimension_numbers<[1], [0], [0], [1], [0, 0, 1, 1], [], []>} : vector<8x256xbf16>, vector<256x256xbf16>, vector<8x256xf32> -> vector<8x256xf32>
    %c0_30 = arith.constant 0 : index
    %c0_31 = arith.constant 0 : index
    %93 = vector.load %arg11[%c0_30, %c0_31] : memref<1x256xf32, #tpu.memory_space<vmem>>, vector<1x256xf32>
    %94 = vector.broadcast %93 : vector<1x256xf32> to vector<8x256xf32>
    %95 = arith.addf %92, %94 : vector<8x256xf32>
    %cst_32 = arith.constant 0.000000e+00 : f32
    %96 = vector.broadcast %cst_32 : f32 to vector<8x256xf32>
    %97 = arith.maximumf %95, %96 : vector<8x256xf32>
    %98 = arith.truncf %97 : vector<8x256xf32> to vector<8x256xbf16>
    %c0_33 = arith.constant 0 : index
    %c0_34 = arith.constant 0 : index
    %99 = vector.load %arg12[%c0_33, %c0_34] : memref<256x128xbf16, #tpu.memory_space<vmem>>, vector<256x128xbf16>
    %cst_35 = arith.constant dense<0.000000e+00> : vector<8x128xf32>
    %100 = tpu.matmul %98, %99, %cst_35 {dimension_numbers = #tpu.dot_dimension_numbers<[1], [0], [0], [1], [0, 0, 1, 1], [], []>} : vector<8x256xbf16>, vector<256x128xbf16>, vector<8x128xf32> -> vector<8x128xf32>
    %c0_36 = arith.constant 0 : index
    %c0_37 = arith.constant 0 : index
    %101 = vector.load %arg13[%c0_36, %c0_37] : memref<1x128xf32, #tpu.memory_space<vmem>>, vector<1x128xf32>
    %102 = vector.broadcast %101 : vector<1x128xf32> to vector<8x128xf32>
    %103 = arith.addf %100, %102 : vector<8x128xf32>
    %c0_38 = arith.constant 0 : index
    %c0_39 = arith.constant 0 : index
    %104 = vector.load %arg14[%c0_38, %c0_39] : memref<8x128xf32, #tpu.memory_space<vmem>>, vector<8x128xf32>
    tpu.vector_store %arg14[%c0_38, %c0_39], %103 {strides = array<i32>} : memref<8x128xf32, #tpu.memory_space<vmem>>, vector<8x128xf32>,
    return
  }
  func.func @transform_0(%arg0: i32) -> (i32, i32, i32) {
    %c0_i32 = arith.constant 0 : i32
    %c0_i32_0 = arith.constant 0 : i32
    %c0_i32_1 = arith.constant 0 : i32
    return %c0_i32, %arg0, %c0_i32_0 : i32, i32, i32
  }
  func.func @transform_1(%arg0: i32) -> (i32, i32) {
    %c0_i32 = arith.constant 0 : i32
    %c0_i32_0 = arith.constant 0 : i32
    %c0_i32_1 = arith.constant 0 : i32
    return %c0_i32, %c0_i32_0 : i32, i32
  }
  func.func @transform_2(%arg0: i32) -> (i32, i32) {
    %c0_i32 = arith.constant 0 : i32
    %c0_i32_0 = arith.constant 0 : i32
    %c0_i32_1 = arith.constant 0 : i32
    return %c0_i32, %c0_i32_0 : i32, i32
  }
  func.func @transform_3(%arg0: i32) -> (i32, i32) {
    %c0_i32 = arith.constant 0 : i32
    %c0_i32_0 = arith.constant 0 : i32
    %c0_i32_1 = arith.constant 0 : i32
    return %c0_i32, %c0_i32_0 : i32, i32
  }
  func.func @transform_4(%arg0: i32) -> (i32, i32) {
    %c0_i32 = arith.constant 0 : i32
    %c0_i32_0 = arith.constant 0 : i32
    %c0_i32_1 = arith.constant 0 : i32
    return %c0_i32, %c0_i32_0 : i32, i32
  }
  func.func @transform_5(%arg0: i32) -> (i32, i32) {
    %c0_i32 = arith.constant 0 : i32
    %c0_i32_0 = arith.constant 0 : i32
    %c0_i32_1 = arith.constant 0 : i32
    return %c0_i32, %c0_i32_0 : i32, i32
  }
  func.func @transform_6(%arg0: i32) -> (i32, i32) {
    %c0_i32 = arith.constant 0 : i32
    %c0_i32_0 = arith.constant 0 : i32
    %c0_i32_1 = arith.constant 0 : i32
    return %c0_i32, %c0_i32_0 : i32, i32
  }
  func.func @transform_7(%arg0: i32) -> (i32, i32) {
    %c0_i32 = arith.constant 0 : i32
    %c0_i32_0 = arith.constant 0 : i32
    %c0_i32_1 = arith.constant 0 : i32
    return %c0_i32, %c0_i32_0 : i32, i32
  }
  func.func @transform_8(%arg0: i32) -> (i32, i32) {
    %c0_i32 = arith.constant 0 : i32
    %c0_i32_0 = arith.constant 0 : i32
    %c0_i32_1 = arith.constant 0 : i32
    return %c0_i32, %c0_i32_0 : i32, i32
  }
  func.func @transform_9(%arg0: i32) -> (i32, i32) {
    %c0_i32 = arith.constant 0 : i32
    %c0_i32_0 = arith.constant 0 : i32
    %c0_i32_1 = arith.constant 0 : i32
    return %c0_i32, %c0_i32_0 : i32, i32
  }
  func.func @transform_10(%arg0: i32) -> (i32, i32) {
    %c0_i32 = arith.constant 0 : i32
    %c0_i32_0 = arith.constant 0 : i32
    %c0_i32_1 = arith.constant 0 : i32
    return %c0_i32, %c0_i32_0 : i32, i32
  }
  func.func @transform_11(%arg0: i32) -> (i32, i32) {
    %c0_i32 = arith.constant 0 : i32
    %c0_i32_0 = arith.constant 0 : i32
    %c0_i32_1 = arith.constant 0 : i32
    return %c0_i32, %c0_i32_0 : i32, i32
  }
  func.func @transform_12(%arg0: i32) -> (i32, i32) {
    %c0_i32 = arith.constant 0 : i32
    %c0_i32_0 = arith.constant 0 : i32
    %c0_i32_1 = arith.constant 0 : i32
    return %c0_i32, %c0_i32_0 : i32, i32
  }
  func.func @transform_13(%arg0: i32) -> (i32, i32) {
    %c0_i32 = arith.constant 0 : i32
    %c0_i32_0 = arith.constant 0 : i32
    return %arg0, %c0_i32 : i32, i32
  }
}

</mosaic_0001>

<bundles_post_ra>
// kernel: tpu_custom_call.1
= control target key start
LH: loop header
LB: loop body
LE: loop exit
PB: predicated region body
PF: predicated region fallthrough
CT: control target
= control target key end

     0   :  { %s9571_s0 = inlined_call_operand.hbm [shape: bf16[34,16,128], index: 0, kind: input, shape index: {}]   ;;  %s9572_s1 = inlined_call_operand.hbm [shape: bf16[512,512], index: 1, kind: input, shape index: {}]   ;;  %s9573_s2 = inlined_call_operand.vmem [shape: f32[1,512], index: 2, kind: input, shape index: {}]   ;;  %s9574_s3 = inlined_call_operand.hbm [shape: bf16[2048,256], index: 3, kind: input, shape index: {}]   ;;  %s9575_s4 = inlined_call_operand.vmem [shape: f32[1,256], index: 4, kind: input, shape index: {}]   ;;  %s9576_s5 = inlined_call_operand.hbm [shape: bf16[1024,128], index: 5, kind: input, shape index: {}]   ;;  %s9577_s6 = inlined_call_operand.vmem [shape: f32[1,128], index: 6, kind: input, shape index: {}]   ;;  %s9578_s7 = inlined_call_operand.hbm [shape: bf16[512,256], index: 7, kind: input, shape index: {}]   ;;  %s9579_s8 = inlined_call_operand.vmem [shape: f32[1,256], index: 8, kind: input, shape index: {}]   ;;  %s9580_s9 = inlined_call_operand.hbm [shape: bf16[256,256], index: 9, kind: input, shape index: {}]   ;;  %s9581_s10 = inlined_call_operand.vmem [shape: f32[1,256], index: 10, kind: input, shape index: {}]   ;;  %s9582_s11 = inlined_call_operand.hbm [shape: bf16[256,128], index: 11, kind: input, shape index: {}]   ;;  %s9583_s12 = inlined_call_operand.vmem [shape: f32[1,128], index: 12, kind: input, shape index: {}]   ;;  %s9584_s13 = inlined_call_operand.hbm [shape: f32[16,128], index: 13, kind: output, shape index: {}]  }
   0x1   :  { %9602 = sst [smem:[#allocation24_spill]] %s9572_s1 }
   0x2   :  { %9603 = sst [smem:[#allocation25_spill]] %s9574_s3 }
   0x3   :  { %9604 = sst [smem:[#allocation26_spill]] %s9576_s5 }
   0x4   :  { %9605 = sst [smem:[#allocation27_spill]] %s9578_s7 }
   0x5   :  { %9606 = sst [smem:[#allocation28_spill]] %s9579_s8 }
   0x6   :  { %9607 = sst [smem:[#allocation29_spill]] %s9580_s9 }
   0x7   :  { %9608 = sst [smem:[#allocation30_spill]] %s9581_s10 }
   0x8   :  { %9609 = sst [smem:[#allocation31_spill]] %s9583_s12 }
   0x9   :  { %9610 = sst [smem:[#allocation32_spill]] %s9584_s13 }
   0xa   :  { %18 = vsyncpa [#allocation3], 0 }
   0xb   :  { %20 = vsyncpa [#allocation3 + $0x1], 0 }
   0xc   :  { %21 = vsyncpa [#allocation6], 0 }
   0xd   :  { %22 = vsyncpa [#allocation9], 0 }
   0xe   :  { %23 = vsyncpa [#allocation12], 0 }
   0xf   :  { %24 = vsyncpa [#allocation4], 0 }
  0x10   :  { %26 = vsyncpa [#allocation4 + $0x1], 0  ;;  %s8744_s25 = smov 0   ;;  %s8746_s26 = smov 0  }
  0x11   :  { %s8748_s27 = smov 0   ;;  %s8750_s28 = smov 0  }
  0x12 LB: > { %s8659_s29 = smov [#allocation5]   ;;  %s8765_s14 = sadd.s32 4294967295, %s8657_s28   ;;  %s8657_s28 = sphi %s8750_s28, %s9653_s28   ;;  %s8653_s27 = sphi %s8748_s27, %s9652_s27   ;;  %s8649_s26 = sphi %s8746_s26, %s9651_s26   ;;  %s8645_s25 = sphi %s8744_s25, %s9650_s25  }
  0x13   : > { %s353_s30 = sshll.u32 %s8659_s29, 4  ;;  %p6272_p0 = scmp.ge.s32.totalorder %s8657_s28, 1  ;;  %s8770_s30 = int_to_ptr.vmem [resolvable:$true] %s353_s30 }
  0x14   : > { %p9586_p1 = scmp.eq.s32.totalorder %s8765_s14, 0  ;;  %p341_p2 = scmp.lt.s32.totalorder %s8657_s28, 3 }
  0x15   : > { %s8660_s16 = smov [#allocation8]   ;;  %s9613_s1 = sld [smem:[#allocation24_spill]] }
  0x16   : > { %p8772_p3 = pnand %p6272_p0, %p341_p2  ;;  %s385_s17 = sshll.u32 %s8660_s16, 4  ;;  %s8785_s17 = int_to_ptr.vmem [resolvable:$true] %s385_s17 }
  0x18   : > { %s9611_s15 = scalar_select %p8772_p3, 1, 0 }
  0x19   : > { %p7463_p5 = pneg %p8772_p3 }
  0x1b   : > { %p8781_p6 = pnand %p7463_p5, %p9586_p1  ;;  %s8381_s21 = scalar_lea.hbm %s9613_s1, 16384 }
  0x1c   : > { %p8382_p7 = scmp.ne.s32.totalorder %s9613_s1, %s8381_s21  ;;  %p8388_p11 = scmp.lt.u32.totalorder %s8381_s21, %s9613_s1 }
  0x1d   : > { %p8795_p8 = pneg %p8781_p6 }
  0x1f   : > { %p8384_p9 = pnand %p8795_p8, %p8382_p7 }
  0x21   : > { %p8385_p10 = pneg %p8384_p9 }
  0x23   : > { %p8390_p12 = pnand %p8388_p11, %p8385_p10 }
  0x25   : > { %8393 = shalt.err (!%p8390_p12)
}
  0x26   : > { %s8394_s19 = scalar_lea.vmem %s8770_s30, 16384  ;;  %p8402_p5 = scmp.lt.s32.totalorder %s8770_s30, %s8770_s30 }
  0x27   : > { %p8395_p13 = scmp.ne.s32.totalorder %s8770_s30, %s8394_s19  ;;  %p8403_p4 = scmp.lt.s32.totalorder %s8394_s19, %s8394_s19 }
  0x29   : > { %p8397_p0 = pnand %p8395_p13, %p8795_p8  ;;  %p8404_p7 = por %p8403_p4, %p8402_p5 }
  0x2b   : > { %p8398_p2 = pneg %p8397_p0 }
  0x2d   : > { %p8405_p9 = pnand %p8404_p7, %p8398_p2 }
  0x2f   : > { %8408 = shalt.err (!%p8405_p9)
}
  0x30   : > { %s8661_s20 = smov 256   ;;  %s8662_s21 = smov 16  }
  0x31   : > { %7466 = dma.hbm_to_vmem [thread:$0]  (!%p8781_p6), %s9613_s1, 16384, %s8770_s30, [#allocation6], %s8661_s20, %s8661_s20, %s8662_s21  }
  0x32   : > { %s9615_s5 = sld [smem:[#allocation26_spill]] }
  0x38   : > { %s8409_s13 = scalar_lea.hbm %s9615_s5, 8192 }
  0x39   : > { %p8410_p4 = scmp.ne.s32.totalorder %s9615_s5, %s8409_s13  ;;  %p8416_p12 = scmp.lt.u32.totalorder %s8409_s13, %s9615_s5 }
  0x3b   : > { %p8412_p10 = pnand %p8410_p4, %p8795_p8 }
  0x3d   : > { %p8413_p11 = pneg %p8412_p10 }
  0x3f   : > { %p8418_p13 = pnand %p8416_p12, %p8413_p11 }
  0x41   : > { %8421 = shalt.err (!%p8418_p13)
}
  0x42   : > { %s8422_s30 = scalar_lea.vmem %s8785_s17, 8192  ;;  %p8430_p7 = scmp.lt.s32.totalorder %s8785_s17, %s8785_s17 }
  0x43   : > { %p8423_p0 = scmp.ne.s32.totalorder %s8785_s17, %s8422_s30  ;;  %p8431_p9 = scmp.lt.s32.totalorder %s8422_s30, %s8422_s30 }
  0x45   : > { %p8425_p2 = pnand %p8423_p0, %p8795_p8  ;;  %p8432_p4 = por %p8431_p9, %p8430_p7 }
  0x47   : > { %p8426_p5 = pneg %p8425_p2 }
  0x49   : > { %p8433_p10 = pnand %p8432_p4, %p8426_p5 }
  0x4b   : > { %8436 = shalt.err (!%p8433_p10)
}
  0x4c   : > { %s9588_s10 = smov 64   ;;  %s9590_s8 = smov 4  }
  0x4d   : > { %7472 = dma.hbm_to_vmem [thread:$0]  (!%p8781_p6), %s9615_s5, 8192, %s8785_s17, [#allocation9], %s9588_s10, %s9588_s10, %s9590_s8  }
  0x4e   : > { %s8665_s20 = smov [#allocation11]   ;;  %s8666_s22 = smov [#allocation7]  }
  0x4f   : > { %s417_s21 = sshll.u32 %s8665_s20, 4  ;;  %s369_s23 = sshll.u32 %s8666_s22, 4  ;;  %s418_s21 = int_to_ptr.vmem [resolvable:$true] %s417_s21  ;;  %s8842_s23 = int_to_ptr.vmem [resolvable:$true] %s369_s23 }
  0x50   : > { %s9616_s9 = sld [smem:[#allocation29_spill]] }
  0x56   : > { %s8437_s19 = scalar_lea.hbm %s9616_s9, 4096 }
  0x57   : > { %p8438_p11 = scmp.ne.s32.totalorder %s9616_s9, %s8437_s19  ;;  %p8444_p0 = scmp.lt.u32.totalorder %s8437_s19, %s9616_s9 }
  0x59   : > { %p8440_p12 = pnand %p8438_p11, %p8795_p8 }
  0x5b   : > { %p8441_p13 = pneg %p8440_p12 }
  0x5d   : > { %p8446_p2 = pnand %p8444_p0, %p8441_p13 }
  0x5f   : > { %8449 = shalt.err (!%p8446_p2)
}
  0x60   : > { %s8450_s13 = scalar_lea.vmem %s418_s21, 4096  ;;  %p8458_p4 = scmp.lt.s32.totalorder %s418_s21, %s418_s21 }
  0x61   : > { %p8451_p5 = scmp.ne.s32.totalorder %s418_s21, %s8450_s13  ;;  %p8459_p10 = scmp.lt.s32.totalorder %s8450_s13, %s8450_s13 }
  0x63   : > { %p8453_p7 = pnand %p8451_p5, %p8795_p8  ;;  %p8460_p1 = por %p8459_p10, %p8458_p4 }
  0x65   : > { %p8454_p9 = pneg %p8453_p7 }
  0x67   : > { %p8461_p3 = pnand %p8460_p1, %p8454_p9 }
  0x69   : > { %8464 = shalt.err (!%p8461_p3)
}
  0x6a   : > { %s9592_s1 = smov 128   ;;  %s8668_s20 = smov 8  }
  0x6b   : > { %7478 = dma.hbm_to_vmem [thread:$0]  (!%p8781_p6), %s9616_s9, 4096, %s418_s21, [#allocation12], %s9592_s1, %s9592_s1, %s8668_s20  }
  0x6c   : > { %s9617_s3 = sld [smem:[#allocation25_spill]] }
  0x72   : > { %s8465_s30 = scalar_lea.hbm %s9617_s3, 32768 }
  0x73   : > { %p8466_p1 = scmp.ne.s32.totalorder %s9617_s3, %s8465_s30  ;;  %p8472_p12 = scmp.lt.u32.totalorder %s8465_s30, %s9617_s3 }
  0x75   : > { %p8468_p3 = pnand %p8466_p1, %p8795_p8 }
  0x77   : > { %p8469_p11 = pneg %p8468_p3 }
  0x79   : > { %p8474_p13 = pnand %p8472_p12, %p8469_p11 }
  0x7b   : > { %8477 = shalt.err (!%p8474_p13)
}
  0x7c   : > { %s8478_s21 = scalar_lea.vmem %s8842_s23, 32768  ;;  %p8486_p7 = scmp.lt.s32.totalorder %s8842_s23, %s8842_s23 }
  0x7d   : > { %p8479_p0 = scmp.ne.s32.totalorder %s8842_s23, %s8478_s21  ;;  %p8487_p9 = scmp.lt.s32.totalorder %s8478_s21, %s8478_s21 }
  0x7f   : > { %p8481_p2 = pnand %p8479_p0, %p8795_p8  ;;  %p8488_p4 = por %p8487_p9, %p8486_p7 }
  0x81   : > { %p8482_p5 = pneg %p8481_p2 }
  0x83   : > { %p8489_p10 = pnand %p8488_p4, %p8482_p5 }
  0x85   : > { %8492 = shalt.err (!%p8489_p10)
}
  0x86   : > { %7469 = dma.hbm_to_vmem [thread:$0]  (!%p8781_p6), %s9617_s3, 32768, %s8842_s23, [#allocation6], %s9592_s1, %s9592_s1, %s8668_s20  }
  0x87   : > { %s8669_s29 = smov [#allocation10]   ;;  %s8670_s19 = smov [#allocation13]  }
  0x88   : > { %s401_s16 = sshll.u32 %s8669_s29, 4  ;;  %s433_s30 = sshll.u32 %s8670_s19, 4  ;;  %s402_s16 = int_to_ptr.vmem [resolvable:$true] %s401_s16  ;;  %s8891_s30 = int_to_ptr.vmem [resolvable:$true] %s433_s30 }
  0x89   : > { %s9618_s7 = sld [smem:[#allocation27_spill]] }
  0x8f   : > { %s8493_s13 = scalar_lea.hbm %s9618_s7, 8192 }
  0x90   : > { %p8494_p1 = scmp.ne.s32.totalorder %s9618_s7, %s8493_s13  ;;  %p8500_p12 = scmp.lt.u32.totalorder %s8493_s13, %s9618_s7 }
  0x92   : > { %p8496_p3 = pnand %p8494_p1, %p8795_p8 }
  0x94   : > { %p8497_p11 = pneg %p8496_p3 }
  0x96   : > { %p8502_p13 = pnand %p8500_p12, %p8497_p11 }
  0x98   : > { %8505 = shalt.err (!%p8502_p13)
}
  0x99   : > { %s8506_s22 = scalar_lea.vmem %s402_s16, 8192  ;;  %p8514_p7 = scmp.lt.s32.totalorder %s402_s16, %s402_s16 }
  0x9a   : > { %p8507_p0 = scmp.ne.s32.totalorder %s402_s16, %s8506_s22  ;;  %p8515_p9 = scmp.lt.s32.totalorder %s8506_s22, %s8506_s22 }
  0x9c   : > { %p8509_p2 = pnand %p8507_p0, %p8795_p8  ;;  %p8516_p4 = por %p8515_p9, %p8514_p7 }
  0x9e   : > { %p8510_p5 = pneg %p8509_p2 }
  0xa0   : > { %p8517_p10 = pnand %p8516_p4, %p8510_p5 }
  0xa2   : > { %8520 = shalt.err (!%p8517_p10)
}
  0xa3   : > { %7475 = dma.hbm_to_vmem [thread:$0]  (!%p8781_p6), %s9618_s7, 8192, %s402_s16, [#allocation9], %s9592_s1, %s9592_s1, %s8668_s20  }
  0xa4   : > { %s8521_s17 = scalar_lea.hbm %s9582_s11, 2048 }
  0xa5   : > { %p8522_p1 = scmp.ne.s32.totalorder %s9582_s11, %s8521_s17  ;;  %p8528_p12 = scmp.lt.u32.totalorder %s8521_s17, %s9582_s11 }
  0xa7   : > { %p8524_p3 = pnand %p8522_p1, %p8795_p8 }
  0xa9   : > { %p8525_p11 = pneg %p8524_p3 }
  0xab   : > { %p8530_p13 = pnand %p8528_p12, %p8525_p11 }
  0xad   : > { %8533 = shalt.err (!%p8530_p13)
}
  0xae   : > { %s8534_s20 = scalar_lea.vmem %s8891_s30, 2048  ;;  %p8542_p7 = scmp.lt.s32.totalorder %s8891_s30, %s8891_s30 }
  0xaf   : > { %p8535_p0 = scmp.ne.s32.totalorder %s8891_s30, %s8534_s20  ;;  %p8543_p9 = scmp.lt.s32.totalorder %s8534_s20, %s8534_s20 }
  0xb1   : > { %p8537_p2 = pnand %p8535_p0, %p8795_p8  ;;  %p8544_p4 = por %p8543_p9, %p8542_p7 }
  0xb3   : > { %p8538_p5 = pneg %p8537_p2 }
  0xb5   : > { %p8545_p10 = pnand %p8544_p4, %p8538_p5 }
  0xb7   : > { %8548 = shalt.err (!%p8545_p10)
}
  0xb8   : > { %s9619_s16 = smov 4   ;;  %s9620_s22 = smov 64  }
  0xb9   : > { %7481 = dma.hbm_to_vmem [thread:$0]  (!%p8781_p6), %s9582_s11, 2048, %s8891_s30, [#allocation12], %s9620_s22, %s9620_s22, %s9619_s16  }
  0xba   : > { %s6271_s18 = sadd.s32 4294967294, %s8657_s28   ;;  %s8942_s24 = sadd.s32 1, %s8657_s28  }
  0xbb   : > { %s36_s19 = ssub.s32 %s8657_s28, %s8942_s24  ;;  %s39_s12 = sadd.s32 1, %s8653_s27 }
  0xbc   : > { %p37_p8 = scmp.eq.s32.totalorder %s36_s19, 0  ;;  %p46_p1 = scmp.ne.s32.totalorder %s8653_s27, %s8649_s26 }
  0xbd   : > { %p47_p3 = scmp.eq.s32.totalorder %s8657_s28, 0  ;;  %p52_p11 = scmp.ne.s32.totalorder %s8649_s26, %s8645_s25 }
  0xbe   : > { %s8953_s17 = scalar_select %p37_p8, %s8653_s27, %s39_s12  }
  0xbf   : > { %p48_p12 = por %p47_p3, %p46_p1  ;;  %p9621_p13 = scmp.eq.s32.totalorder %s8765_s14, 0 }
  0xc0   : > { %p328_p6 = scmp.eq.s32.totalorder %s8765_s14, 1  ;;  %p334_p2 = scmp.eq.s32.totalorder %s6271_s18, 1 }
  0xc1   : > { %p8957_p0 = por %p9621_p13, %p52_p11  ;;  %p7496_p5 = scmp.lt.s32.totalorder %s8657_s28, 2 }
  0xc2   : > { %s450_s30 = sand.u32 1, %s8653_s27   ;;  %p8964_p7 = por %p328_p6, %p46_p1 }
  0xc3   : > { %p8968_p9 = por %p334_p2, %p52_p11  ;;  %s7433_s23 = smul.u32 136, %s450_s30 }
  0xc4   : > { %s9623_s21 = scalar_select %p8964_p7, 1, 0 }
  0xc5   : > { %s9624_s10 = scalar_select %p8968_p9, 1, 0 }
  0xc6   : > { %s6280_s20 = sshll.u32 %s8657_s28, 6  ;;  %p8973_p4 = pnand %p7496_p5, %p48_p12 }
  0xc7   : > { %s8980_s18 = scalar_lea.hbm %s9571_s0, %s6280_s20  ;;  %s454_s12 = scalar_lea.vmem [#allocation2], %s7433_s23 }
  0xc8   : > { %s460_s1 = sshll.u32 %s454_s12, 4  ;;  %s8984_s3 = scalar_lea.sflag [#allocation3], %s450_s30  ;;  %s8982_s1 = int_to_ptr.vmem [resolvable:$true] %s460_s1 }
  0xc9   : > { %s8549_s5 = scalar_lea.hbm %s8980_s18, 2176  ;;  %p8551_p8 = pneg %p8973_p4 }
  0xca   : > { %p8550_p10 = scmp.ne.s32.totalorder %s8980_s18, %s8549_s5  ;;  %s8554_s19 = scalar_lea.hbm %s9571_s0, 4352 }
  0xcb   : > { %p8555_p11 = scmp.lt.u32.totalorder %s8980_s18, %s9571_s0  ;;  %p8556_p12 = scmp.lt.u32.totalorder %s8554_s19, %s8549_s5 }
  0xcc   : > { %p8552_p1 = pnand %p8551_p8, %p8550_p10  ;;  %p8558_p6 = scmp.lt.u32.totalorder %s8549_s5, %s8980_s18 }
  0xcd   : > { %p8557_p13 = por %p8556_p12, %p8555_p11 }
  0xce   : > { %p8553_p3 = pneg %p8552_p1 }
  0xcf   : > { %p8559_p2 = por %p8558_p6, %p8557_p13 }
  0xd1   : > { %p8560_p5 = pnand %p8559_p2, %p8553_p3 }
  0xd3   : > { %8563 = shalt.err (!%p8560_p5)
}
  0xd4   : > { %s8564_s30 = scalar_lea.vmem %s8982_s1, 2176  ;;  %s8671_s23 = smov [#allocation2]  }
  0xd5   : > { %p8565_p10 = scmp.ne.s32.totalorder %s8982_s1, %s8564_s30  ;;  %s8569_s12 = sshll.u32 %s8671_s23, 4  ;;  %s8570_s12 = int_to_ptr.vmem [resolvable:$false] %s8569_s12 }
  0xd6   : > { %s8571_s7 = scalar_lea.vmem %s8570_s12, 4352  ;;  %p8572_p7 = scmp.lt.s32.totalorder %s8982_s1, %s8570_s12 }
  0xd7   : > { %p8567_p1 = pnand %p8565_p10, %p8551_p8  ;;  %p8573_p11 = scmp.lt.s32.totalorder %s8571_s7, %s8564_s30 }
  0xd9   : > { %p8568_p9 = pneg %p8567_p1  ;;  %p8574_p12 = por %p8573_p11, %p8572_p7 }
  0xdb   : > { %p8575_p13 = pnand %p8574_p12, %p8568_p9 }
  0xdd   : > { %8578 = shalt.err (!%p8575_p13)
}
  0xde   : > { %s9626_s5 = smov 128   ;;  %p9627_p8 = scmp.ne.s32.totalorder %s9611_s15, 0 }
  0xdf   : > { %7485 = dma.hbm_to_vmem [thread:$0]  (!%p8973_p4), %s8980_s18, 2176, %s8982_s1, %s8984_s3, %s9626_s5, %s9620_s22, %s9619_s16  }
  0xe0   : > { %472 = sbr.rel (%p9627_p8) target bundleno = 2330 (0x91a), region = 72 }
  0xe7   : > { %s9018_s9 = sand.u32 1, %s8649_s26  }
  0xe8   : > { %s7434_s20 = smul.u32 136, %s9018_s9  ;;  %s475_s29 = scalar_lea.sflag [#allocation3], %s9018_s9 }
  0xea   : > { %s9022_s19 = scalar_lea.vmem [#allocation2], %s7434_s20 }
  0xeb   : > { %8624 = dma.done.wait (%p8957_p0), %s475_s29, 2176  }
  0xec   : > { %8626 = vsyncadd (%p8957_p0), %s475_s29, 4294965120  ;;  %p9628_p7 = scmp.eq.s32.totalorder %s8765_s14, 0 }
  0xee   : > { %8628 = dma.done.wait (%p9628_p7), [#allocation6], 49152   ;;  %p9629_p9 = pmov %p9628_p7 }
  0xef   : > { %p9630_p4 = pmov %p9628_p7 }
  0xf0   : > { %8630 = vsyncadd (%p9629_p9), [#allocation6], 4294918144 }
  0xf1   : > { %8632 = dma.done.wait (%p9630_p4), [#allocation9], 16384   ;;  %p9631_p3 = pmov %p9630_p4 }
  0xf3   : > { %8634 = vsyncadd (%p9631_p3), [#allocation9], 4294950912  ;;  %p9632_p6 = pmov %p9631_p3 }
  0xf4   : > { %p9633_p2 = pmov %p9631_p3 }
  0xf5   : > { %8636 = dma.done.wait (%p9632_p6), [#allocation12], 6144  }
  0xf6   : > { %8638 = vsyncadd (%p9633_p2), [#allocation12], 4294961152  ;;  %v7549_v0 = vld [vmem:[#allocation5 + $0x4] ss:$16 sps:$4 sm:$0xff]   ;;  %v7551_v1 = vld [vmem:[#allocation5] ss:$16 sps:$4 sm:$0xff]  }
  0xf7   : > { %1502 = vmatprep.subr.bf16.mxu1 %v7549_v0  ;;  %v7552_v2 = vld [vmem:[#allocation5 + $0x204] ss:$16 sps:$4 sm:$0xff]   ;;  %v7554_v3 = vld [vmem:[#allocation5 + $0x200] ss:$16 sps:$4 sm:$0xff]   ;;  %s9643_s30 = sld [smem:[#allocation28_spill]]  ;;  %s9644_s7 = sld [smem:[#allocation30_spill]] }
  0xf8   : > { %1503 = vmatpush1.bf16.msra.mxu1 %v7551_v1  ;;  %v7555_v4 = vld [vmem:[#allocation5 + $0x24] ss:$16 sps:$4 sm:$0xff]   ;;  %v7557_v5 = vld [vmem:[#allocation5 + $0x20] ss:$16 sps:$4 sm:$0xff]   ;;  %1615 = vmatprep.subr.bf16.mxu0 %v7552_v2  ;;  %s6288_s5 = sshll.u32 %s9018_s9, 3  ;;  %s6962_s3 = sshll.u32 %s8765_s14, 7 }
  0xf9   : > { %v7558_v6 = vld [vmem:[#allocation5 + $0x224] ss:$16 sps:$4 sm:$0xff]   ;;  %1616 = vmatpush1.bf16.msra.mxu0 %v7554_v3  ;;  %1504 = vmatprep.subr.bf16.mxu1 %v7555_v4  ;;  %v7560_v7 = vld [vmem:[#allocation5 + $0x220] ss:$16 sps:$4 sm:$0xff]   ;;  %s544_s15 = scalar_lea.vmem [#allocation14], %s6288_s5  ;;  %s9646_s13 = sld [smem:[#allocation32_spill]] }
  0xfa   : > { %1617 = vmatprep.subr.bf16.mxu0 %v7558_v6  ;;  %v7561_v8 = vld [vmem:[#allocation5 + $0x44] ss:$16 sps:$4 sm:$0xff]   ;;  %v7563_v9 = vld [vmem:[#allocation5 + $0x40] ss:$16 sps:$4 sm:$0xff]   ;;  %v7649_v6 = vld [vmem:[#allocation5 + $0xc] ss:$16 sps:$4 sm:$0xff]  }
  0xfb   : > { %v7564_v10 = vld [vmem:[#allocation5 + $0x244] ss:$16 sps:$4 sm:$0xff]   ;;  %v7566_v12 = vld [vmem:[#allocation5 + $0x240] ss:$16 sps:$4 sm:$0xff]   ;;  %s6144_s1 = sshll.u32 %s544_s15, 4  ;;  %s6131_s18 = scalar_lea.sflag [#allocation4], %s9018_s9  ;;  %s9529_s1 = int_to_ptr.vmem [resolvable:$true] %s6144_s1 }
  0xfc   : > { %1505 = vmatpush1.bf16.msra.mxu1 %v7557_v5  ;;  %v7567_v11 = vld [vmem:[#allocation5 + $0x64] ss:$16 sps:$4 sm:$0xff]   ;;  %v7569_v14 = vld [vmem:[#allocation5 + $0x60] ss:$16 sps:$4 sm:$0xff]   ;;  %p9647_p5 = scmp.ne.s32.totalorder %s9623_s21, 0  ;;  %s8673_s14 = smov [#allocation14]  }
  0xfd   : > { %1506 = vmatprep.subr.bf16.mxu1 %v7561_v8  ;;  %1618 = vmatpush1.bf16.msra.mxu0 %v7560_v7  ;;  %v7570_v13 = vld [vmem:[#allocation5 + $0x264] ss:$16 sps:$4 sm:$0xff]   ;;  %v7572_v16 = vld [vmem:[#allocation5 + $0x260] ss:$16 sps:$4 sm:$0xff]   ;;  %s8583_s23 = sshll.u32 %s8673_s14, 4  ;;  %s8584_s23 = int_to_ptr.vmem [resolvable:$false] %s8583_s23 }
  0xfe   : > { %1619 = vmatprep.subr.bf16.mxu0 %v7564_v10  ;;  %v7573_v15 = vld [vmem:[#allocation5 + $0x84] ss:$16 sps:$4 sm:$0xff]   ;;  %v7575_v18 = vld [vmem:[#allocation5 + $0x80] ss:$16 sps:$4 sm:$0xff]   ;;  %s8585_s12 = scalar_lea.vmem %s8584_s23, 256  ;;  %p8586_p11 = scmp.lt.s32.totalorder %s9529_s1, %s8584_s23 }
  0xff   : > { %v7576_v17 = vld [vmem:[#allocation5 + $0x284] ss:$16 sps:$4 sm:$0xff]   ;;  %v7578_v20 = vld [vmem:[#allocation5 + $0x280] ss:$16 sps:$4 sm:$0xff]   ;;  %s9527_s8 = scalar_lea.hbm %s9646_s13, %s6962_s3 }
 0x100   : > { %1507 = vmatpush1.bf16.msra.mxu1 %v7563_v9  ;;  %v7579_v19 = vld [vmem:[#allocation5 + $0xa4] ss:$16 sps:$4 sm:$0xff]   ;;  %v7581_v22 = vld [vmem:[#allocation5 + $0xa0] ss:$16 sps:$4 sm:$0xff]  }
 0x101   : > { %1508 = vmatprep.subr.bf16.mxu1 %v7567_v11  ;;  %1620 = vmatpush1.bf16.msra.mxu0 %v7566_v12  ;;  %v7582_v21 = vld [vmem:[#allocation5 + $0x2a4] ss:$16 sps:$4 sm:$0xff]   ;;  %v7584_v24 = vld [vmem:[#allocation5 + $0x2a0] ss:$16 sps:$4 sm:$0xff]   ;;  %v7647_v12 = vld [vmem:[#allocation5 + $0x8] ss:$16 sps:$4 sm:$0xff]  }
 0x102   : > { %1621 = vmatprep.subr.bf16.mxu0 %v7570_v13  ;;  %v7585_v23 = vld [vmem:[#allocation5 + $0xc4] ss:$16 sps:$4 sm:$0xff]   ;;  %v7587_v26 = vld [vmem:[#allocation5 + $0xc0] ss:$16 sps:$4 sm:$0xff]  }
 0x103   : > { %v7588_v25 = vld [vmem:[#allocation5 + $0x2c4] ss:$16 sps:$4 sm:$0xff]   ;;  %v7590_v28 = vld [vmem:[#allocation5 + $0x2c0] ss:$16 sps:$4 sm:$0xff]  }
 0x104   : > { %1509 = vmatpush1.bf16.msra.mxu1 %v7569_v14  ;;  %v7591_v27 = vld [vmem:[#allocation5 + $0xe4] ss:$16 sps:$4 sm:$0xff]   ;;  %v7593_v30 = vld [vmem:[#allocation5 + $0xe0] ss:$16 sps:$4 sm:$0xff]  }
 0x105   : > { %1510 = vmatprep.subr.bf16.mxu1 %v7573_v15  ;;  %1622 = vmatpush1.bf16.msra.mxu0 %v7572_v16  ;;  %v7594_v29 = vld [vmem:[#allocation5 + $0x2e4] ss:$16 sps:$4 sm:$0xff]   ;;  %v7596_v32 = vld [vmem:[#allocation5 + $0x2e0] ss:$16 sps:$4 sm:$0xff]   ;;  %v7655_v15 = vld [vmem:[#allocation5 + $0x2c] ss:$16 sps:$4 sm:$0xff]  }
 0x106   : > { %1623 = vmatprep.subr.bf16.mxu0 %v7576_v17  ;;  %v7597_v31 = vld [vmem:[#allocation5 + $0x104] ss:$16 sps:$4 sm:$0xff]   ;;  %v7599_v34 = vld [vmem:[#allocation5 + $0x100] ss:$16 sps:$4 sm:$0xff]   ;;  %v7653_v17 = vld [vmem:[#allocation5 + $0x28] ss:$16 sps:$4 sm:$0xff]  }
 0x107   : > { %v7600_v33 = vld [vmem:[#allocation5 + $0x304] ss:$16 sps:$4 sm:$0xff]   ;;  %v7602_v36 = vld [vmem:[#allocation5 + $0x300] ss:$16 sps:$4 sm:$0xff]  }
 0x108   : > { %1511 = vmatpush1.bf16.msra.mxu1 %v7575_v18  ;;  %v7603_v35 = vld [vmem:[#allocation5 + $0x124] ss:$16 sps:$4 sm:$0xff]   ;;  %v7605_v38 = vld [vmem:[#allocation5 + $0x120] ss:$16 sps:$4 sm:$0xff]  }
 0x109   : > { %1512 = vmatprep.subr.bf16.mxu1 %v7579_v19  ;;  %1624 = vmatpush1.bf16.msra.mxu0 %v7578_v20  ;;  %v7606_v37 = vld [vmem:[#allocation5 + $0x324] ss:$16 sps:$4 sm:$0xff]   ;;  %v7608_v40 = vld [vmem:[#allocation5 + $0x320] ss:$16 sps:$4 sm:$0xff]   ;;  %v7659_v19 = vld [vmem:[#allocation5 + $0x4c] ss:$16 sps:$4 sm:$0xff]  }
 0x10a   : > { %1625 = vmatprep.subr.bf16.mxu0 %v7582_v21  ;;  %v7609_v39 = vld [vmem:[#allocation5 + $0x144] ss:$16 sps:$4 sm:$0xff]   ;;  %v7611_v42 = vld [vmem:[#allocation5 + $0x140] ss:$16 sps:$4 sm:$0xff]  }
 0x10b   : > { %v7612_v41 = vld [vmem:[#allocation5 + $0x344] ss:$16 sps:$4 sm:$0xff]   ;;  %v7614_v44 = vld [vmem:[#allocation5 + $0x340] ss:$16 sps:$4 sm:$0xff]  }
 0x10c   : > { %1513 = vmatpush1.bf16.msra.mxu1 %v7581_v22  ;;  %v7615_v43 = vld [vmem:[#allocation5 + $0x164] ss:$16 sps:$4 sm:$0xff]   ;;  %v7617_v48 = vld [vmem:[#allocation5 + $0x160] ss:$16 sps:$4 sm:$0xff]  }
 0x10d   : > { %1514 = vmatprep.subr.bf16.mxu1 %v7585_v23  ;;  %1626 = vmatpush1.bf16.msra.mxu0 %v7584_v24  ;;  %v7618_v45 = vld [vmem:[#allocation5 + $0x364] ss:$16 sps:$4 sm:$0xff]   ;;  %v7620_v51 = vld [vmem:[#allocation5 + $0x360] ss:$16 sps:$4 sm:$0xff]   ;;  %v7657_v24 = vld [vmem:[#allocation5 + $0x48] ss:$16 sps:$4 sm:$0xff]  }
 0x10e   : > { %1627 = vmatprep.subr.bf16.mxu0 %v7588_v25  ;;  %v547_v46 = vld [vmem:[%s9022_s19 + $0x4] sm:$0xf]  ;;  %v549_v47 = vld [vmem:[%s9022_s19 + $0xc] sm:$0xf]  ;;  %v551_v52 = vld [vmem:[%s9022_s19 + $0x14] sm:$0xf] }
 0x10f   : > { %v9042_v49 = vcombine.low %v547_v46, %v549_v47  ;;  %v7621_v50 = vld [vmem:[#allocation5 + $0x184] ss:$16 sps:$4 sm:$0xff]   ;;  %v9046_v54 = vcombine.low %v549_v47, %v551_v52  ;;  %v7623_v55 = vld [vmem:[#allocation5 + $0x180] ss:$16 sps:$4 sm:$0xff]  }
 0x110   : > { %1515 = vmatpush1.bf16.msra.mxu1 %v7587_v26  ;;  %v7624_v53 = vld [vmem:[#allocation5 + $0x384] ss:$16 sps:$4 sm:$0xff]   ;;  %v7626_v57 = vld [vmem:[#allocation5 + $0x380] ss:$16 sps:$4 sm:$0xff]  }
 0x111   : > { %1516 = vmatprep.subr.bf16.mxu1 %v7591_v27  ;;  %1628 = vmatpush1.bf16.msra.mxu0 %v7590_v28  ;;  %v7627_v56 = vld [vmem:[#allocation5 + $0x1a4] ss:$16 sps:$4 sm:$0xff]   ;;  %v7629_v59 = vld [vmem:[#allocation5 + $0x1a0] ss:$16 sps:$4 sm:$0xff]   ;;  %v7664_v27 = vld [vmem:[#allocation5 + $0x6c] ss:$16 sps:$4 sm:$0xff]  }
 0x112   : > { %1629 = vmatprep.subr.bf16.mxu0 %v7594_v29  ;;  %1534 = vmatprep.mubr.bf16.mxu1 %v9042_v49  ;;  %v7630_v58 = vld [vmem:[#allocation5 + $0x3a4] ss:$16 sps:$4 sm:$0xff]   ;;  %v7632_v61 = vld [vmem:[#allocation5 + $0x3a0] ss:$16 sps:$4 sm:$0xff]   ;;  %v7662_v29 = vld [vmem:[#allocation5 + $0x68] ss:$16 sps:$4 sm:$0xff]  }
 0x113   : > { %1647 = vmatprep.mubr.bf16.mxu0 %v9046_v54  ;;  %v7633_v60 = vld [vmem:[#allocation5 + $0x1c4] ss:$16 sps:$4 sm:$0xff]   ;;  %v7635_v63 = vld [vmem:[#allocation5 + $0x1c0] ss:$16 sps:$4 sm:$0xff]  }
 0x114   : > { %1517 = vmatpush1.bf16.msra.mxu1 %v7593_v30  ;;  %v7636_v62 = vld [vmem:[#allocation5 + $0x3c4] ss:$16 sps:$4 sm:$0xff]   ;;  %v7638_v1 = vld [vmem:[#allocation5 + $0x3c0] ss:$16 sps:$4 sm:$0xff]  }
 0x115   : > { %1518 = vmatprep.subr.bf16.mxu1 %v7597_v31  ;;  %1630 = vmatpush1.bf16.msra.mxu0 %v7596_v32  ;;  %v7639_v0 = vld [vmem:[#allocation5 + $0x1e4] ss:$16 sps:$4 sm:$0xff]   ;;  %v7641_v2 = vld [vmem:[#allocation5 + $0x1e0] ss:$16 sps:$4 sm:$0xff]   ;;  %v7669_v31 = vld [vmem:[#allocation5 + $0x8c] ss:$16 sps:$4 sm:$0xff]  }
 0x116   : > { %1631 = vmatprep.subr.bf16.mxu0 %v7600_v33  ;;  %v7642_v3 = vld [vmem:[#allocation5 + $0x3e4] ss:$16 sps:$4 sm:$0xff]   ;;  %v546_v4 = vld [vmem:[%s9022_s19] sm:$0xf]  ;;  %v548_v5 = vld [vmem:[%s9022_s19 + $0x8] sm:$0xf] }
 0x117   : > { %v553_v7 = vld [vmem:[%s9022_s19 + $0x1c] sm:$0xf]  ;;  %v7645_v8 = vld [vmem:[#allocation5 + $0x3e0] ss:$16 sps:$4 sm:$0xff]   ;;  %v9053_v10 = vcombine.low %v546_v4, %v548_v5  ;;  %v555_v11 = vld [vmem:[%s9022_s19 + $0x24] sm:$0xf] }
 0x118   : > { %1519 = vmatpush1.bf16.msra.mxu1 %v7599_v34  ;;  %v550_v9 = vld [vmem:[%s9022_s19 + $0x10] sm:$0xf]  ;;  %v9056_v13 = vcombine.low %v551_v52, %v553_v7  ;;  %v9060_v16 = vcombine.low %v553_v7, %v555_v11  ;;  %v552_v18 = vld [vmem:[%s9022_s19 + $0x18] sm:$0xf]  ;;  %v557_v20 = vld [vmem:[%s9022_s19 + $0x2c] sm:$0xf] }
 0x119   : > { %1520 = vmatprep.subr.bf16.mxu1 %v7603_v35  ;;  %1632 = vmatpush1.bf16.msra.mxu0 %v7602_v36  ;;  %v9058_v14 = vcombine.low %v548_v5, %v550_v9  ;;  %v554_v21 = vld [vmem:[%s9022_s19 + $0x20] sm:$0xf]  ;;  %v9069_v22 = vcombine.low %v550_v9, %v552_v18  ;;  %v559_v23 = vld [vmem:[%s9022_s19 + $0x34] sm:$0xf]  ;;  %v9072_v25 = vcombine.low %v555_v11, %v557_v20  ;;  %v556_v30 = vld [vmem:[%s9022_s19 + $0x28] sm:$0xf] }
 0x11a   : > { %1633 = vmatprep.subr.bf16.mxu0 %v7606_v37  ;;  %v9074_v26 = vcombine.low %v552_v18, %v554_v21  ;;  %v9076_v28 = vcombine.low %v557_v20, %v559_v23  ;;  %v561_v32 = vld [vmem:[%s9022_s19 + $0x3c] sm:$0xf]  ;;  %v558_v33 = vld [vmem:[%s9022_s19 + $0x30] sm:$0xf]  ;;  %v9085_v34 = vcombine.low %v554_v21, %v556_v30  ;;  %v563_v35 = vld [vmem:[%s9022_s19 + $0x44] sm:$0xf] }
 0x11b   : > { %v7667_v36 = vld [vmem:[#allocation5 + $0x88] ss:$16 sps:$4 sm:$0xff]   ;;  %v9088_v37 = vcombine.low %v559_v23, %v561_v32  ;;  %v567_v47 = vld [vmem:[%s9022_s19 + $0x54] sm:$0xf]  ;;  %v7778_v20 = vld [vmem:[#allocation7 + $0x14] ss:$8 sps:$4 sm:$0xff]  }
 0x11c   : > { %1521 = vmatpush1.bf16.msra.mxu1 %v7605_v38  ;;  %v9090_v38 = vcombine.low %v556_v30, %v558_v33  ;;  %v7684_v52 = vld [vmem:[#allocation5 + $0xec] ss:$16 sps:$4 sm:$0xff]   ;;  %v7773_v7 = vld [vmem:[#allocation7] ss:$8 sps:$4 sm:$0xff]   ;;  %v570_v9 = vld [vmem:[%s9022_s19 + $0x60] sm:$0xf] }
 0x11d   : > { %1522 = vmatprep.subr.bf16.mxu1 %v7609_v39  ;;  %1634 = vmatpush1.bf16.msra.mxu0 %v7608_v40  ;;  %v7674_v39 = vld [vmem:[#allocation5 + $0xac] ss:$16 sps:$4 sm:$0xff]   ;;  %v9092_v40 = vcombine.low %v561_v32, %v563_v35  ;;  %v7702_v21 = vld [vmem:[#allocation5 + $0x168] ss:$16 sps:$4 sm:$0xff]  }
 0x11e   : > { %1635 = vmatprep.subr.bf16.mxu0 %v7612_v41  ;;  %v7672_v41 = vld [vmem:[#allocation5 + $0xa8] ss:$16 sps:$4 sm:$0xff]   ;;  %v7699_v5 = vld [vmem:[#allocation5 + $0x14c] ss:$16 sps:$4 sm:$0xff]  }
 0x11f   : > { %v575_v11 = vld [vmem:[%s9022_s19 + $0x74] sm:$0xf]  ;;  %v572_v23 = vld [vmem:[%s9022_s19 + $0x68] sm:$0xf]  ;;  %v577_v30 = vld [vmem:[%s9022_s19 + $0x7c] sm:$0xf] }
 0x120   : > { %1523 = vmatpush1.bf16.msra.mxu1 %v7611_v42  ;;  %v560_v42 = vld [vmem:[%s9022_s19 + $0x38] sm:$0xf]  ;;  %v574_v32 = vld [vmem:[%s9022_s19 + $0x70] sm:$0xf] }
 0x121   : > { %1524 = vmatprep.subr.bf16.mxu1 %v7615_v43  ;;  %1636 = vmatpush1.bf16.msra.mxu0 %v7614_v44  ;;  %v7679_v43 = vld [vmem:[#allocation5 + $0xcc] ss:$16 sps:$4 sm:$0xff]   ;;  %v9101_v46 = vcombine.low %v558_v33, %v560_v42  ;;  %v7779_v33 = vld [vmem:[#allocation7 + $0x20] ss:$8 sps:$4 sm:$0xff]  }
 0x122   : > { %1637 = vmatprep.subr.bf16.mxu0 %v7618_v45  ;;  %v565_v44 = vld [vmem:[%s9022_s19 + $0x4c] sm:$0xf]  ;;  %v562_v45 = vld [vmem:[%s9022_s19 + $0x40] sm:$0xf] }
 0x124   : > { %1525 = vmatpush1.bf16.msra.mxu1 %v7617_v48  ;;  %v7677_v48 = vld [vmem:[#allocation5 + $0xc8] ss:$16 sps:$4 sm:$0xff]  }
 0x125   : > { %1526 = vmatprep.subr.bf16.mxu1 %v7621_v50  ;;  %1638 = vmatpush1.bf16.msra.mxu0 %v7620_v51  ;;  %v9104_v50 = vcombine.low %v563_v35, %v565_v44  ;;  %v9106_v51 = vcombine.low %v560_v42, %v562_v45  ;;  %v579_v35 = vld [vmem:[%s9022_s19 + $0x84] sm:$0xf]  ;;  %v9152_v42 = vcombine.low %v575_v11, %v577_v30 }
 0x126   : > { %1639 = vmatprep.subr.bf16.mxu0 %v7624_v53  ;;  %v9108_v53 = vcombine.low %v565_v44, %v567_v47  ;;  %v7784_v44 = vld [vmem:[#allocation7 + $0x34] ss:$8 sps:$4 sm:$0xff]  }
 0x128   : > { %1527 = vmatpush1.bf16.msra.mxu1 %v7623_v55  ;;  %v7682_v55 = vld [vmem:[#allocation5 + $0xe8] ss:$16 sps:$4 sm:$0xff]  }
 0x129   : > { %1528 = vmatprep.subr.bf16.mxu1 %v7627_v56  ;;  %1640 = vmatpush1.bf16.msra.mxu0 %v7626_v57  ;;  %v564_v56 = vld [vmem:[%s9022_s19 + $0x48] sm:$0xf]  ;;  %v7689_v57 = vld [vmem:[#allocation5 + $0x10c] ss:$16 sps:$4 sm:$0xff]  }
 0x12a   : > { %1641 = vmatprep.subr.bf16.mxu0 %v7630_v58  ;;  %v569_v58 = vld [vmem:[%s9022_s19 + $0x5c] sm:$0xf] }
 0x12c   : > { %1529 = vmatpush1.bf16.msra.mxu1 %v7629_v59  ;;  %v566_v59 = vld [vmem:[%s9022_s19 + $0x50] sm:$0xf] }
 0x12d   : > { %1530 = vmatprep.subr.bf16.mxu1 %v7633_v60  ;;  %1642 = vmatpush1.bf16.msra.mxu0 %v7632_v61  ;;  %v9117_v60 = vcombine.low %v562_v45, %v564_v56  ;;  %v571_v61 = vld [vmem:[%s9022_s19 + $0x64] sm:$0xf]  ;;  %v7712_v45 = vld [vmem:[#allocation5 + $0x1a8] ss:$16 sps:$4 sm:$0xff]  }
 0x12e   : > { %1643 = vmatprep.subr.bf16.mxu0 %v7636_v62  ;;  %v7687_v62 = vld [vmem:[#allocation5 + $0x108] ss:$16 sps:$4 sm:$0xff]   ;;  %v9125_v4 = vcombine.low %v569_v58, %v571_v61 }
 0x130   : > { %1531 = vmatpush1.bf16.msra.mxu1 %v7635_v63  ;;  %v9120_v63 = vcombine.low %v567_v47, %v569_v58  ;;  %v576_v47 = vld [vmem:[%s9022_s19 + $0x78] sm:$0xf] }
 0x131   : > { %1532 = vmatprep.subr.bf16.mxu1 %v7639_v0  ;;  %1644 = vmatpush1.bf16.msra.mxu0 %v7638_v1  ;;  %v9122_v0 = vcombine.low %v564_v56, %v566_v59  ;;  %v7694_v1 = vld [vmem:[#allocation5 + $0x12c] ss:$16 sps:$4 sm:$0xff]   ;;  %v7785_v58 = vld [vmem:[#allocation7 + $0x40] ss:$8 sps:$4 sm:$0xff]  }
 0x132   : > { %1645 = vmatprep.subr.bf16.mxu0 %v7642_v3  ;;  %v568_v3 = vld [vmem:[%s9022_s19 + $0x58] sm:$0xf]  ;;  %v7787_v56 = vld [vmem:[#allocation7 + $0x44] ss:$8 sps:$4 sm:$0xff]  }
 0x134   : > { %1533 = vmatpush1.bf16.msra.mxu1 %v7641_v2  ;;  %v7692_v2 = vld [vmem:[#allocation5 + $0x128] ss:$16 sps:$4 sm:$0xff]  }
 0x135   : > { %1728 = vmatprep.subr.bf16.mxu1 %v7649_v6  ;;  %1646 = vmatpush1.bf16.msra.mxu0 %v7645_v8  ;;  %v573_v6 = vld [vmem:[%s9022_s19 + $0x6c] sm:$0xf] }
 0x136   : > { %v7775_v8 = vld [vmem:[#allocation7 + $0x4] ss:$8 sps:$4 sm:$0xff]   ;;  %v9136_v18 = vcombine.low %v571_v61, %v573_v6  ;;  %v9164_v61 = vcombine.low %v574_v32, %v576_v47 }
 0x137   : > { %1535 = vmatmul.mubr.bf16.vlgmr.msra.gmra.mrb[0].mxu1 %v9053_v10  ;;  %3824 = vmatprep.subr.bf16.mxu0 %v7775_v8  ;;  %v7725_v8 = vld [vmem:[#allocation5 + $0x208] ss:$16 sps:$4 sm:$0xff]  }
 0x138   : > { %1729 = vmatpush1.bf16.msra.mxu1 %v7647_v12  ;;  %1544 = vmatprep.mubr.bf16.mxu1 %v9056_v13  ;;  %v7697_v12 = vld [vmem:[#allocation5 + $0x148] ss:$16 sps:$4 sm:$0xff]  }
 0x139   : > { %1648 = vmatmul.mubr.bf16.vlgmr.msra.gmra.mrb[0].mxu0 %v9058_v14  ;;  %1730 = vmatprep.subr.bf16.mxu1 %v7655_v15  ;;  %v9134_v15 = vcombine.low %v566_v59, %v568_v3  ;;  %v7717_v59 = vld [vmem:[#allocation5 + $0x1c8] ss:$16 sps:$4 sm:$0xff]  }
 0x13a   : > { %1657 = vmatprep.mubr.bf16.mxu0 %v9060_v16  ;;  %3825 = vmatpush1.bf16.msra.mxu0 %v7773_v7  ;;  %v7727_v7 = vld [vmem:[#allocation5 + $0x20c] ss:$16 sps:$4 sm:$0xff]  }
 0x13b   : > { %3826 = vmatprep.subr.bf16.mxu0 %v7778_v20  ;;  %v7799_v20 = vld [vmem:[#allocation7 + $0x84] ss:$8 sps:$4 sm:$0xff]  }
 0x13c   : > { %1731 = vmatpush1.bf16.msra.mxu1 %v7653_v17  ;;  %v7704_v17 = vld [vmem:[#allocation5 + $0x16c] ss:$16 sps:$4 sm:$0xff]  }
 0x13d   : > { %1732 = vmatprep.subr.bf16.mxu1 %v7659_v19  ;;  %v9138_v19 = vcombine.low %v568_v3, %v570_v9  ;;  %v7788_v3 = vld [vmem:[#allocation7 + $0x50] ss:$8 sps:$4 sm:$0xff]  }
 0x13f   : > { %1545 = vmatmul.mubr.bf16.gmra.mrb[4].mxu1 %v9069_v22 }
 0x140   : > { %1733 = vmatpush1.bf16.msra.mxu1 %v7657_v24  ;;  %1554 = vmatprep.mubr.bf16.mxu1 %v9072_v25  ;;  %v9141_v24 = vcombine.low %v573_v6, %v575_v11  ;;  %v7722_v6 = vld [vmem:[#allocation5 + $0x1e8] ss:$16 sps:$4 sm:$0xff]   ;;  %v7730_v11 = vld [vmem:[#allocation5 + $0x22c] ss:$16 sps:$4 sm:$0xff]  }
 0x141   : > { %1658 = vmatmul.mubr.bf16.gmra.mrb[4].mxu0 %v9074_v26  ;;  %1734 = vmatprep.subr.bf16.mxu1 %v7664_v27  ;;  %v7776_v27 = vld [vmem:[#allocation7 + $0x10] ss:$8 sps:$4 sm:$0xff]  }
 0x142   : > { %1667 = vmatprep.mubr.bf16.mxu0 %v9076_v28  ;;  %3827 = vmatpush1.bf16.msra.mxu0 %v7776_v27  ;;  %v7802_v27 = vld [vmem:[#allocation7 + $0x94] ss:$8 sps:$4 sm:$0xff]  }
 0x144   : > { %1735 = vmatpush1.bf16.msra.mxu1 %v7662_v29  ;;  %v7709_v29 = vld [vmem:[#allocation5 + $0x18c] ss:$16 sps:$4 sm:$0xff]  }
 0x145   : > { %1736 = vmatprep.subr.bf16.mxu1 %v7669_v31  ;;  %v7781_v31 = vld [vmem:[#allocation7 + $0x24] ss:$8 sps:$4 sm:$0xff]  }
 0x146   : > { %3828 = vmatprep.subr.bf16.mxu0 %v7781_v31  ;;  %v7800_v31 = vld [vmem:[#allocation7 + $0x90] ss:$8 sps:$4 sm:$0xff]  }
 0x147   : > { %1555 = vmatmul.mubr.bf16.gmra.mrb[8].mxu1 %v9085_v34  ;;  %3829 = vmatpush1.bf16.msra.mxu0 %v7779_v33  ;;  %v7734_v33 = vld [vmem:[#allocation5 + $0x268] ss:$16 sps:$4 sm:$0xff]  }
 0x148   : > { %1737 = vmatpush1.bf16.msra.mxu1 %v7667_v36  ;;  %1564 = vmatprep.mubr.bf16.mxu1 %v9088_v37  ;;  %v7707_v36 = vld [vmem:[#allocation5 + $0x188] ss:$16 sps:$4 sm:$0xff]  }
 0x149   : > { %1668 = vmatmul.mubr.bf16.gmra.mrb[8].mxu0 %v9090_v38  ;;  %1738 = vmatprep.subr.bf16.mxu1 %v7674_v39  ;;  %v9150_v39 = vcombine.low %v570_v9, %v572_v23  ;;  %v7791_v9 = vld [vmem:[#allocation7 + $0x60] ss:$8 sps:$4 sm:$0xff]  }
 0x14a   : > { %1677 = vmatprep.mubr.bf16.mxu0 %v9092_v40  ;;  %3830 = vmatprep.subr.bf16.mxu0 %v7784_v44  ;;  %v7806_v44 = vld [vmem:[#allocation7 + $0xb0] ss:$8 sps:$4 sm:$0xff]  }
 0x14c   : > { %1739 = vmatpush1.bf16.msra.mxu1 %v7672_v41  ;;  %v7714_v41 = vld [vmem:[#allocation5 + $0x1ac] ss:$16 sps:$4 sm:$0xff]  }
 0x14d   : > { %1740 = vmatprep.subr.bf16.mxu1 %v7679_v43  ;;  %v9154_v43 = vcombine.low %v572_v23, %v574_v32  ;;  %v7733_v23 = vld [vmem:[#allocation5 + $0x24c] ss:$16 sps:$4 sm:$0xff]  }
 0x14e   : > { %v7805_v32 = vld [vmem:[#allocation7 + $0xa4] ss:$8 sps:$4 sm:$0xff]  }
 0x14f   : > { %1565 = vmatmul.mubr.bf16.gmra.mrb[12].mxu1 %v9101_v46 }
 0x150   : > { %1741 = vmatpush1.bf16.msra.mxu1 %v7677_v48  ;;  %1574 = vmatprep.mubr.bf16.mxu1 %v9104_v50  ;;  %v9157_v48 = vcombine.low %v577_v30, %v579_v35  ;;  %v7736_v30 = vld [vmem:[#allocation5 + $0x26c] ss:$16 sps:$4 sm:$0xff]  }
 0x151   : > { %1678 = vmatmul.mubr.bf16.gmra.mrb[12].mxu0 %v9106_v51  ;;  %1742 = vmatprep.subr.bf16.mxu1 %v7684_v52  ;;  %v7782_v52 = vld [vmem:[#allocation7 + $0x30] ss:$8 sps:$4 sm:$0xff]   ;;  %v7808_v35 = vld [vmem:[#allocation7 + $0xb4] ss:$8 sps:$4 sm:$0xff]  }
 0x152   : > { %1687 = vmatprep.mubr.bf16.mxu0 %v9108_v53  ;;  %3831 = vmatpush1.bf16.msra.mxu0 %v7782_v52  ;;  %v7809_v52 = vld [vmem:[#allocation7 + $0xc0] ss:$8 sps:$4 sm:$0xff]  }
 0x153   : > { %3832 = vmatprep.subr.bf16.mxu0 %v7787_v56  ;;  %v7814_v56 = vld [vmem:[#allocation7 + $0xd4] ss:$8 sps:$4 sm:$0xff]  }
 0x154   : > { %1743 = vmatpush1.bf16.msra.mxu1 %v7682_v55  ;;  %v7719_v55 = vld [vmem:[#allocation5 + $0x1cc] ss:$16 sps:$4 sm:$0xff]  }
 0x155   : > { %1744 = vmatprep.subr.bf16.mxu1 %v7689_v57  ;;  %v578_v57 = vld [vmem:[%s9022_s19 + $0x80] sm:$0xf]  ;;  %s9645_s19 = sld [smem:[#allocation31_spill]] }
 0x156   : > { %3833 = vmatpush1.bf16.msra.mxu0 %v7785_v58  ;;  %v7812_v58 = vld [vmem:[#allocation7 + $0xd0] ss:$8 sps:$4 sm:$0xff]  }
 0x157   : > { %1575 = vmatmul.mubr.bf16.gmra.mrb[16].mxu1 %v9117_v60 }
 0x158   : > { %1745 = vmatpush1.bf16.msra.mxu1 %v7687_v62  ;;  %1584 = vmatprep.mubr.bf16.mxu1 %v9120_v63  ;;  %v7724_v62 = vld [vmem:[#allocation5 + $0x1ec] ss:$16 sps:$4 sm:$0xff]  }
 0x159   : > { %1688 = vmatmul.mubr.bf16.gmra.mrb[16].mxu0 %v9122_v0  ;;  %1746 = vmatprep.subr.bf16.mxu1 %v7694_v1  ;;  %v9166_v1 = vcombine.low %v576_v47, %v578_v57  ;;  %v7743_v47 = vld [vmem:[#allocation5 + $0x2c8] ss:$16 sps:$4 sm:$0xff]  }
 0x15a   : > { %1697 = vmatprep.mubr.bf16.mxu0 %v9125_v4  ;;  %v7746_v57 = vld [vmem:[#allocation5 + $0x2e8] ss:$16 sps:$4 sm:$0xff]  }
 0x15c   : > { %1747 = vmatpush1.bf16.msra.mxu1 %v7692_v2  ;;  %v7790_v2 = vld [vmem:[#allocation7 + $0x54] ss:$8 sps:$4 sm:$0xff]  }
 0x15d   : > { %1748 = vmatprep.subr.bf16.mxu1 %v7699_v5  ;;  %3834 = vmatprep.subr.bf16.mxu0 %v7790_v2  ;;  %v7793_v5 = vld [vmem:[#allocation7 + $0x64] ss:$8 sps:$4 sm:$0xff]  }
 0x15e   : > { %3835 = vmatpush1.bf16.msra.mxu0 %v7788_v3  ;;  %v7754_v2 = vld [vmem:[#allocation5 + $0x32c] ss:$16 sps:$4 sm:$0xff]  }
 0x15f   : > { %1585 = vmatmul.mubr.bf16.gmra.mrb[20].mxu1 %v9134_v15  ;;  %3836 = vmatprep.subr.bf16.mxu0 %v7793_v5  ;;  %v7820_v3 = vld [vmem:[#allocation7 + $0xf4] ss:$8 sps:$4 sm:$0xff]   ;;  %v7752_v5 = vld [vmem:[#allocation5 + $0x328] ss:$16 sps:$4 sm:$0xff]  }
 0x160   : > { %1749 = vmatpush1.bf16.msra.mxu1 %v7697_v12  ;;  %1594 = vmatprep.mubr.bf16.mxu1 %v9136_v18  ;;  %v7796_v12 = vld [vmem:[#allocation7 + $0x74] ss:$8 sps:$4 sm:$0xff]  }
 0x161   : > { %1698 = vmatmul.mubr.bf16.gmra.mrb[20].mxu0 %v9138_v19  ;;  %1750 = vmatprep.subr.bf16.mxu1 %v7704_v17  ;;  %v7794_v17 = vld [vmem:[#allocation7 + $0x70] ss:$8 sps:$4 sm:$0xff]  }
 0x162   : > { %1707 = vmatprep.mubr.bf16.mxu0 %v9141_v24  ;;  %3837 = vmatpush1.bf16.msra.mxu0 %v7791_v9  ;;  %v7763_v9 = vld [vmem:[#allocation5 + $0x38c] ss:$16 sps:$4 sm:$0xff]  }
 0x163   : > { %3838 = vmatprep.subr.bf16.mxu0 %v7796_v12  ;;  %v7764_v12 = vld [vmem:[#allocation5 + $0x3a8] ss:$16 sps:$4 sm:$0xff]  }
 0x164   : > { %1751 = vmatpush1.bf16.msra.mxu1 %v7702_v21  ;;  %v7728_v21 = vld [vmem:[#allocation5 + $0x228] ss:$16 sps:$4 sm:$0xff]  }
 0x165   : > { %1752 = vmatprep.subr.bf16.mxu1 %v7709_v29  ;;  %v7731_v29 = vld [vmem:[#allocation5 + $0x248] ss:$16 sps:$4 sm:$0xff]  }
 0x166   : > { %3839 = vmatpush1.bf16.msra.mxu0 %v7794_v17  ;;  %v7767_v17 = vld [vmem:[#allocation5 + $0x3c8] ss:$16 sps:$4 sm:$0xff]  }
 0x167   : > { %1595 = vmatmul.mubr.bf16.gmra.mrb[24].mxu1 %v9150_v39  ;;  %3840 = vmatprep.subr.bf16.mxu0 %v7799_v20  ;;  %v7772_v20 = vld [vmem:[#allocation5 + $0x3ec] ss:$16 sps:$4 sm:$0xff]  }
 0x168   : > { %1753 = vmatpush1.bf16.msra.mxu1 %v7707_v36  ;;  %1604 = vmatprep.mubr.bf16.mxu1 %v9152_v42  ;;  %v7737_v36 = vld [vmem:[#allocation5 + $0x288] ss:$16 sps:$4 sm:$0xff]  }
 0x169   : > { %1708 = vmatmul.mubr.bf16.gmra.mrb[24].mxu0 %v9154_v43  ;;  %1754 = vmatprep.subr.bf16.mxu1 %v7714_v41  ;;  %v7742_v41 = vld [vmem:[#allocation5 + $0x2ac] ss:$16 sps:$4 sm:$0xff]  }
 0x16a   : > { %1717 = vmatprep.mubr.bf16.mxu0 %v9157_v48 }
 0x16c   : > { %1755 = vmatpush1.bf16.msra.mxu1 %v7712_v45  ;;  %v7740_v45 = vld [vmem:[#allocation5 + $0x2a8] ss:$16 sps:$4 sm:$0xff]  }
 0x16d   : > { %1756 = vmatprep.subr.bf16.mxu1 %v7719_v55  ;;  %v7748_v55 = vld [vmem:[#allocation5 + $0x2ec] ss:$16 sps:$4 sm:$0xff]  }
 0x16f   : > { %1605 = vmatmul.mubr.bf16.gmra.mrb[28].mxu1 %v9164_v61 }
 0x170   : > { %1757 = vmatpush1.bf16.msra.mxu1 %v7717_v59  ;;  %1760 = vmatprep.mubr.bf16.mxu1 %v9042_v49  ;;  %v7797_v49 = vld [vmem:[#allocation7 + $0x80] ss:$8 sps:$4 sm:$0xff]  }
 0x171   : > { %1718 = vmatmul.mubr.bf16.gmra.mrb[28].mxu0 %v9166_v1  ;;  %1758 = vmatprep.subr.bf16.mxu1 %v7724_v62  ;;  %v7749_v59 = vld [vmem:[#allocation5 + $0x308] ss:$16 sps:$4 sm:$0xff]  }
 0x172   : > { %3841 = vmatpush1.bf16.msra.mxu0 %v7797_v49  ;;  %v7815_v62 = vld [vmem:[#allocation7 + $0xe0] ss:$8 sps:$4 sm:$0xff]  }
 0x173   : > { %3842 = vmatprep.subr.bf16.mxu0 %v7802_v27 }
 0x174   : > { %1759 = vmatpush1.bf16.msra.mxu1 %v7722_v6  ;;  %v7818_v6 = vld [vmem:[#allocation7 + $0xf0] ss:$8 sps:$4 sm:$0xff]  }
 0x175   : > { %1841 = vmatprep.subr.bf16.mxu1 %v7727_v7  ;;  %v7760_v7 = vld [vmem:[#allocation5 + $0x36c] ss:$16 sps:$4 sm:$0xff]  }
 0x176   : > { %3843 = vmatpush1.bf16.msra.mxu0 %v7800_v31 }
 0x177   : > { %1761 = vmatmul.mubr.bf16.vlgmr.msra.gmra.mrb[32].mxu1 %v9053_v10  ;;  %v7739_v10 = vld [vmem:[#allocation5 + $0x28c] ss:$16 sps:$4 sm:$0xff]   ;;  %3844 = vmatprep.subr.bf16.mxu0 %v7805_v32 }
 0x178   : > { %1842 = vmatpush1.bf16.msra.mxu1 %v7725_v8  ;;  %1770 = vmatprep.mubr.bf16.mxu1 %v9056_v13  ;;  %v7803_v13 = vld [vmem:[#allocation7 + $0xa0] ss:$8 sps:$4 sm:$0xff]  }
 0x179   : > { %1843 = vmatprep.subr.bf16.mxu1 %v7730_v11  ;;  %v7758_v8 = vld [vmem:[#allocation5 + $0x368] ss:$16 sps:$4 sm:$0xff]   ;;  %v7766_v11 = vld [vmem:[#allocation5 + $0x3ac] ss:$16 sps:$4 sm:$0xff]  }
 0x17a   : > { %3845 = vmatpush1.bf16.msra.mxu0 %v7803_v13 }
 0x17b   : > { %3846 = vmatprep.subr.bf16.mxu0 %v7808_v35 }
 0x17c   : > { %1844 = vmatpush1.bf16.msra.mxu1 %v7728_v21 }
 0x17d   : > { %1845 = vmatprep.subr.bf16.mxu1 %v7733_v23 }
 0x17e   : > { %3847 = vmatpush1.bf16.msra.mxu0 %v7806_v44 }
 0x17f   : > { %1771 = vmatmul.mubr.bf16.gmra.mrb[36].mxu1 %v9069_v22  ;;  %v7745_v22 = vld [vmem:[#allocation5 + $0x2cc] ss:$16 sps:$4 sm:$0xff]  }
 0x180   : > { %1846 = vmatpush1.bf16.msra.mxu1 %v7731_v29  ;;  %1780 = vmatprep.mubr.bf16.mxu1 %v9072_v25  ;;  %v7811_v25 = vld [vmem:[#allocation7 + $0xc4] ss:$8 sps:$4 sm:$0xff]  }
 0x181   : > { %1847 = vmatprep.subr.bf16.mxu1 %v7736_v30  ;;  %3848 = vmatprep.subr.bf16.mxu0 %v7811_v25 }
 0x182   : > { %3849 = vmatpush1.bf16.msra.mxu0 %v7809_v52 }
 0x183   : > { %3850 = vmatprep.subr.bf16.mxu0 %v7814_v56 }
 0x184   : > { %1848 = vmatpush1.bf16.msra.mxu1 %v7734_v33 }
 0x185   : > { %1849 = vmatprep.subr.bf16.mxu1 %v7739_v10 }
 0x186   : > { %3851 = vmatpush1.bf16.msra.mxu0 %v7812_v58 }
 0x187   : > { %1781 = vmatmul.mubr.bf16.gmra.mrb[40].mxu1 %v9085_v34  ;;  %v7751_v34 = vld [vmem:[#allocation5 + $0x30c] ss:$16 sps:$4 sm:$0xff]  }
 0x188   : > { %1850 = vmatpush1.bf16.msra.mxu1 %v7737_v36  ;;  %1790 = vmatprep.mubr.bf16.mxu1 %v9088_v37  ;;  %v7817_v37 = vld [vmem:[#allocation7 + $0xe4] ss:$8 sps:$4 sm:$0xff]   ;;  %v9594_v36 = vmov 0  }
 0x189   : > { %1851 = vmatprep.subr.bf16.mxu1 %v7742_v41  ;;  %3852 = vmatprep.subr.bf16.mxu0 %v7817_v37  ;;  %v9229_v41 = vunpack.c.l.b16 %v9594_v36 }
 0x18a   : > { %3853 = vmatpush1.bf16.msra.mxu0 %v7815_v62  ;;  %v7821_v62 = vld [vmem:[#allocation7 + $0x100] ss:$8 sps:$4 sm:$0xff]  }
 0x18b   : > { %3854 = vmatprep.subr.bf16.mxu0 %v7820_v3  ;;  %9636 = vst [vmem:[#allocation22_spill] sm:$0xff] %v9229_v41 }
 0x18c   : > { %1852 = vmatpush1.bf16.msra.mxu1 %v7740_v45 }
 0x18d   : > { %1853 = vmatprep.subr.bf16.mxu1 %v7745_v22 }
 0x18e   : > { %3855 = vmatpush1.bf16.msra.mxu0 %v7818_v6  ;;  %v7826_v6 = vld [vmem:[#allocation7 + $0x114] ss:$8 sps:$4 sm:$0xff]  }
 0x18f   : > { %1791 = vmatmul.mubr.bf16.gmra.mrb[44].mxu1 %v9101_v46  ;;  %v7757_v46 = vld [vmem:[#allocation5 + $0x34c] ss:$16 sps:$4 sm:$0xff]  }
 0x190   : > { %1854 = vmatpush1.bf16.msra.mxu1 %v7743_v47  ;;  %1800 = vmatprep.mubr.bf16.mxu1 %v9104_v50  ;;  %v7755_v50 = vld [vmem:[#allocation5 + $0x348] ss:$16 sps:$4 sm:$0xff]  }
 0x191   : > { %1855 = vmatprep.subr.bf16.mxu1 %v7748_v55 }
 0x194   : > { %1856 = vmatpush1.bf16.msra.mxu1 %v7746_v57 }
 0x195   : > { %1857 = vmatprep.subr.bf16.mxu1 %v7751_v34 }
 0x197   : > { %1801 = vmatmul.mubr.bf16.gmra.mrb[48].mxu1 %v9117_v60  ;;  %v7761_v60 = vld [vmem:[#allocation5 + $0x388] ss:$16 sps:$4 sm:$0xff]  }
 0x198   : > { %1858 = vmatpush1.bf16.msra.mxu1 %v7749_v59  ;;  %1810 = vmatprep.mubr.bf16.mxu1 %v9120_v63  ;;  %v7769_v63 = vld [vmem:[#allocation5 + $0x3cc] ss:$16 sps:$4 sm:$0xff]  }
 0x199   : > { %1859 = vmatprep.subr.bf16.mxu1 %v7754_v2 }
 0x19c   : > { %1860 = vmatpush1.bf16.msra.mxu1 %v7752_v5 }
 0x19d   : > { %1861 = vmatprep.subr.bf16.mxu1 %v7757_v46 }
 0x19f   : > { %1811 = vmatmul.mubr.bf16.gmra.mrb[52].mxu1 %v9134_v15  ;;  %v7770_v15 = vld [vmem:[#allocation5 + $0x3e8] ss:$16 sps:$4 sm:$0xff]  }
 0x1a0   : > { %1862 = vmatpush1.bf16.msra.mxu1 %v7755_v50  ;;  %1820 = vmatprep.mubr.bf16.mxu1 %v9136_v18  ;;  %v7823_v18 = vld [vmem:[#allocation7 + $0x104] ss:$8 sps:$4 sm:$0xff]  }
 0x1a1   : > { %1863 = vmatprep.subr.bf16.mxu1 %v7760_v7  ;;  %3897 = vmatprep.subr.bf16.mxu0 %v7823_v18  ;;  %v7824_v18 = vld [vmem:[#allocation7 + $0x110] ss:$8 sps:$4 sm:$0xff]  }
 0x1a4   : > { %1864 = vmatpush1.bf16.msra.mxu1 %v7758_v8 }
 0x1a5   : > { %1865 = vmatprep.subr.bf16.mxu1 %v7763_v9 }
 0x1a7   : > { %1821 = vmatmul.mubr.bf16.gmra.mrb[56].mxu1 %v9150_v39 }
 0x1a8   : > { %1866 = vmatpush1.bf16.msra.mxu1 %v7761_v60  ;;  %1830 = vmatprep.mubr.bf16.mxu1 %v9152_v42 }
 0x1a9   : > { %1867 = vmatprep.subr.bf16.mxu1 %v7766_v11 }
 0x1ac   : > { %1868 = vmatpush1.bf16.msra.mxu1 %v7764_v12 }
 0x1ad   : > { %1869 = vmatprep.subr.bf16.mxu1 %v7769_v63 }
 0x1af   : > { %1831 = vmatmul.mubr.bf16.gmra.mrb[60].mxu1 %v9164_v61 }
 0x1b0   : > { %1870 = vmatpush1.bf16.msra.mxu1 %v7767_v17  ;;  %1873 = vmatprep.mubr.bf16.mxu1 %v9046_v54  ;;  %v778_v54 = vlaneseq }
 0x1b1   : > { %1871 = vmatprep.subr.bf16.mxu1 %v7772_v20 }
 0x1b4   : > { %1872 = vmatpush1.bf16.msra.mxu1 %v7770_v15 }
 0x1b7   : > { %1874 = vmatmul.mubr.bf16.vlgmr.msra.gmra.mrb[32].mxu1 %v9058_v14  ;;  %v9202_v14 = vshrl.u32 %v778_v54, 7 }
 0x1b8   : > { %1883 = vmatprep.mubr.bf16.mxu1 %v9060_v16  ;;  %v9207_v16 = vld [vmem:[%s9573_s2] sm:$0xf] }
 0x1bf   : > { %1884 = vmatmul.mubr.bf16.gmra.mrb[36].mxu1 %v9074_v26  ;;  %v9210_v26 = vsub.s32 0, %v9202_v14 }
 0x1c0   : > { %1893 = vmatprep.mubr.bf16.mxu1 %v9076_v28  ;;  %v9213_v28 = vsub.s32 1, %v9202_v14 }
 0x1c1   : > { %9634 = vst [vmem:[#allocation20_spill] sm:$0xff] %v9210_v26 }
 0x1c2   : > { %9635 = vst [vmem:[#allocation21_spill] sm:$0xff] %v9213_v28 }
 0x1c7   : > { %1894 = vmatmul.mubr.bf16.gmra.mrb[40].mxu1 %v9090_v38  ;;  %v9217_v38 = vrot.slane %v9207_v16, %v9210_v26 }
 0x1c8   : > { %1903 = vmatprep.mubr.bf16.mxu1 %v9092_v40  ;;  %v9221_v40 = vrot.slane %v9207_v16, %v9213_v28 }
 0x1cf   : > { %1904 = vmatmul.mubr.bf16.gmra.mrb[44].mxu1 %v9106_v51 }
 0x1d0   : > { %1913 = vmatprep.mubr.bf16.mxu1 %v9108_v53 }
 0x1d7   : > { %1914 = vmatmul.mubr.bf16.gmra.mrb[48].mxu1 %v9122_v0 }
 0x1d8   : > { %1923 = vmatprep.mubr.bf16.mxu1 %v9125_v4 }
 0x1df   : > { %1924 = vmatmul.mubr.bf16.gmra.mrb[52].mxu1 %v9138_v19 }
 0x1e0   : > { %1933 = vmatprep.mubr.bf16.mxu1 %v9141_v24 }
 0x1e7   : > { %1934 = vmatmul.mubr.bf16.gmra.mrb[56].mxu1 %v9154_v43 }
 0x1e8   : > { %1943 = vmatprep.mubr.bf16.mxu1 %v9157_v48 }
 0x1ef   : > { %1944 = vmatmul.mubr.bf16.gmra.mrb[60].mxu1 %v9166_v1 }
 0x20a   : > { %v1536_v51 = vpop.f32.mrb[0].mxu1 }
 0x20b   : > { %v1537_v53 = vadd.f32 %v1536_v51, %v9217_v38  ;;  %v1538_v0 = vpop.f32.mrb[1].mxu1 }
 0x20c   : > { %v1539_v4 = vadd.f32 %v1538_v0, %v9221_v40  ;;  %v1540_v19 = vpop.f32.mrb[2].mxu1  ;;  %v1649_v24 = vpop.f32.mrb[0].mxu0 }
 0x20d   : > { %v1541_v39 = vadd.f32 %v1540_v19, %v9217_v38  ;;  %v1650_v42 = vadd.f32 %v1649_v24, %v1537_v53  ;;  %v1542_v43 = vpop.f32.mrb[3].mxu1  ;;  %v1651_v48 = vpop.f32.mrb[1].mxu0 }
 0x20e   : > { %v1543_v61 = vadd.f32 %v1542_v43, %v9221_v40  ;;  %v1652_v1 = vadd.f32 %v1651_v48, %v1539_v4  ;;  %v1653_v21 = vpop.f32.mrb[2].mxu0  ;;  %v7829_v4 = vld [vmem:[#allocation7 + $0x124] ss:$8 sps:$4 sm:$0xff]  }
 0x20f   : > { %v1654_v23 = vadd.f32 %v1653_v21, %v1541_v39  ;;  %v1655_v49 = vpop.f32.mrb[3].mxu0  ;;  %v1954_v29 = vmax.f32 %v1650_v42, 0.0 }
 0x210   : > { %v1656_v27 = vadd.f32 %v1655_v49, %v1543_v61  ;;  %v1955_v31 = vmax.f32 %v1652_v1, 0.0 }
 0x211   : > { %v1958_v30 = vmax.f32 %v1654_v23, 0.0 }
 0x212   : > { %v1959_v32 = vmax.f32 %v1656_v27, 0.0  ;;  %v1546_v33 = vpop.f32.mrb[4].mxu1 }
 0x213   : > { %v2018_v10 = vpack.c.bf16 %v1958_v30, %v1954_v29  ;;  %v1547_v13 = vadd.f32 %v1546_v33, %v9217_v38  ;;  %v1548_v35 = vpop.f32.mrb[5].mxu1 }
 0x214   : > { %v2019_v44 = vpack.c.bf16 %v1959_v32, %v1955_v31  ;;  %v1549_v45 = vadd.f32 %v1548_v35, %v9221_v40  ;;  %v1550_v22 = vpop.f32.mrb[6].mxu1  ;;  %v1659_v25 = vpop.f32.mrb[4].mxu0 }
 0x215   : > { %v2086_v47 = vunpack.c.h.b16 %v2018_v10  ;;  %v1551_v52 = vadd.f32 %v1550_v22, %v9217_v38  ;;  %v1660_v55 = vadd.f32 %v1659_v25, %v1547_v13  ;;  %v1552_v56 = vpop.f32.mrb[7].mxu1  ;;  %v1661_v57 = vpop.f32.mrb[5].mxu0 }
 0x216   : > { %v2087_v58 = vunpack.c.h.b16 %v2019_v44  ;;  %v1553_v34 = vadd.f32 %v1552_v56, %v9221_v40  ;;  %v1662_v37 = vadd.f32 %v1661_v57, %v1549_v45  ;;  %v1663_v59 = vpop.f32.mrb[6].mxu0 }
 0x217   : > { %v1962_v2 = vmax.f32 %v1660_v55, 0.0  ;;  %v1664_v3 = vadd.f32 %v1663_v59, %v1551_v52  ;;  %v1665_v5 = vpop.f32.mrb[7].mxu0  ;;  %v2416_v8 = vpack.c.b16 %v2086_v47, %v9229_v41  ;;  %v7830_v55 = vld [vmem:[#allocation7 + $0x130] ss:$8 sps:$4 sm:$0xff]  }
 0x218   : > { %v1963_v46 = vmax.f32 %v1662_v37, 0.0  ;;  %v1666_v50 = vadd.f32 %v1665_v5, %v1553_v34  ;;  %v2417_v7 = vpack.c.b16 %v2087_v58, %v9229_v41  ;;  %v7835_v37 = vld [vmem:[#allocation7 + $0x144] ss:$8 sps:$4 sm:$0xff]  }
 0x219   : > { %v9236_v9 = vpack.c.bf16 %v1962_v2, %v1954_v29  ;;  %v1966_v60 = vmax.f32 %v1664_v3, 0.0  ;;  %v7827_v29 = vld [vmem:[#allocation7 + $0x120] ss:$8 sps:$4 sm:$0xff]  }
 0x21a   : > { %v9238_v11 = vpack.c.bf16 %v1963_v46, %v1955_v31  ;;  %v1967_v12 = vmax.f32 %v1666_v50, 0.0  ;;  %v1556_v63 = vpop.f32.mrb[8].mxu1  ;;  %3856 = vmatprep.mubr.bf16.mxu0 %v2417_v7  ;;  %v7833_v7 = vld [vmem:[#allocation7 + $0x140] ss:$8 sps:$4 sm:$0xff]  }
 0x21b   : > { %v9240_v17 = vpack.c.bf16 %v1966_v60, %v1958_v30  ;;  %v1557_v20 = vadd.f32 %v1556_v63, %v9217_v38  ;;  %v1558_v15 = vpop.f32.mrb[9].mxu1  ;;  %3857 = vmatmul.mubr.bf16.vlgmr.msra.gmra.mrb[32].mxu0 %v2416_v8 }
 0x21c   : > { %v9243_v54 = vpack.c.bf16 %v1967_v12, %v1959_v32  ;;  %v1559_v51 = vadd.f32 %v1558_v15, %v9221_v40  ;;  %v1560_v53 = vpop.f32.mrb[10].mxu1  ;;  %v1669_v0 = vpop.f32.mrb[8].mxu0  ;;  %3898 = vmatpush1.bf16.msra.mxu0 %v7821_v62  ;;  %v7832_v32 = vld [vmem:[#allocation7 + $0x134] ss:$8 sps:$4 sm:$0xff]  }
 0x21d   : > { %v1561_v19 = vadd.f32 %v1560_v53, %v9217_v38  ;;  %v1670_v24 = vadd.f32 %v1669_v0, %v1557_v20  ;;  %v1562_v39 = vpop.f32.mrb[11].mxu1  ;;  %v1671_v42 = vpop.f32.mrb[9].mxu0  ;;  %3899 = vmatprep.subr.bf16.mxu0 %v7826_v6 }
 0x21e   : > { %v1563_v43 = vadd.f32 %v1562_v39, %v9221_v40  ;;  %v1672_v48 = vadd.f32 %v1671_v42, %v1559_v51  ;;  %v1673_v61 = vpop.f32.mrb[10].mxu0  ;;  %v7836_v39 = vld [vmem:[#allocation7 + $0x150] ss:$8 sps:$4 sm:$0xff]  }
 0x21f   : > { %v1970_v1 = vmax.f32 %v1670_v24, 0.0  ;;  %v1674_v21 = vadd.f32 %v1673_v61, %v1561_v19  ;;  %v1675_v23 = vpop.f32.mrb[11].mxu0 }
 0x220   : > { %v1971_v49 = vmax.f32 %v1672_v48, 0.0  ;;  %v1676_v27 = vadd.f32 %v1675_v23, %v1563_v43  ;;  %3900 = vmatpush1.bf16.msra.mxu0 %v7824_v18 }
 0x221   : > { %v9248_v30 = vpack.c.bf16 %v1970_v1, %v1962_v2  ;;  %v1974_v31 = vmax.f32 %v1674_v21, 0.0  ;;  %3901 = vmatprep.subr.bf16.mxu0 %v7829_v4 }
 0x222   : > { %v9250_v33 = vpack.c.bf16 %v1971_v49, %v1963_v46  ;;  %v1975_v10 = vmax.f32 %v1676_v27, 0.0  ;;  %v1566_v13 = vpop.f32.mrb[12].mxu1 }
 0x223   : > { %v6977_v35 = vpack.c.bf16 %v1974_v31, %v1966_v60  ;;  %v1567_v44 = vadd.f32 %v1566_v13, %v9217_v38  ;;  %v1568_v45 = vpop.f32.mrb[13].mxu1  ;;  %v7839_v13 = vld [vmem:[#allocation7 + $0x160] ss:$8 sps:$4 sm:$0xff]  }
 0x224   : > { %v6978_v22 = vpack.c.bf16 %v1975_v10, %v1967_v12  ;;  %v1569_v25 = vadd.f32 %v1568_v45, %v9221_v40  ;;  %v1570_v47 = vpop.f32.mrb[14].mxu1  ;;  %v1679_v52 = vpop.f32.mrb[12].mxu0  ;;  %3902 = vmatpush1.bf16.msra.mxu0 %v7827_v29  ;;  %v7838_v12 = vld [vmem:[#allocation7 + $0x154] ss:$8 sps:$4 sm:$0xff]  }
 0x225   : > { %v1571_v56 = vadd.f32 %v1570_v47, %v9217_v38  ;;  %v1680_v57 = vadd.f32 %v1679_v52, %v1567_v44  ;;  %v1572_v58 = vpop.f32.mrb[15].mxu1  ;;  %v1681_v34 = vpop.f32.mrb[13].mxu0  ;;  %3903 = vmatprep.subr.bf16.mxu0 %v7832_v32  ;;  %v7844_v45 = vld [vmem:[#allocation7 + $0x174] ss:$8 sps:$4 sm:$0xff]  }
 0x226   : > { %v1573_v59 = vadd.f32 %v1572_v58, %v9221_v40  ;;  %v1682_v62 = vadd.f32 %v1681_v34, %v1569_v25  ;;  %v1683_v2 = vpop.f32.mrb[14].mxu0  ;;  %3866 = vmatprep.mubr.bf16.mxu0 %v6978_v22 }
 0x227   : > { %v1978_v3 = vmax.f32 %v1680_v57, 0.0  ;;  %v1684_v5 = vadd.f32 %v1683_v2, %v1571_v56  ;;  %v1685_v6 = vpop.f32.mrb[15].mxu0  ;;  %3867 = vmatmul.mubr.bf16.gmra.mrb[36].mxu0 %v6977_v35 }
 0x228   : > { %v1979_v46 = vmax.f32 %v1682_v62, 0.0  ;;  %v1686_v50 = vadd.f32 %v1685_v6, %v1573_v59  ;;  %3904 = vmatpush1.bf16.msra.mxu0 %v7830_v55  ;;  %v7842_v59 = vld [vmem:[#allocation7 + $0x170] ss:$8 sps:$4 sm:$0xff]   ;;  %v7847_v6 = vld [vmem:[#allocation7 + $0x184] ss:$8 sps:$4 sm:$0xff]  }
 0x229   : > { %v9256_v8 = vpack.c.bf16 %v1978_v3, %v1970_v1  ;;  %v1982_v60 = vmax.f32 %v1684_v5, 0.0  ;;  %3905 = vmatprep.subr.bf16.mxu0 %v7835_v37  ;;  %v7841_v1 = vld [vmem:[#allocation7 + $0x164] ss:$8 sps:$4 sm:$0xff]  }
 0x22a   : > { %v9258_v63 = vpack.c.bf16 %v1979_v46, %v1971_v49  ;;  %v1983_v20 = vmax.f32 %v1686_v50, 0.0  ;;  %v1576_v15 = vpop.f32.mrb[16].mxu1 }
 0x22b   : > { %v9260_v18 = vpack.c.bf16 %v1982_v60, %v1974_v31  ;;  %v1577_v51 = vadd.f32 %v1576_v15, %v9217_v38  ;;  %v1578_v53 = vpop.f32.mrb[17].mxu1 }
 0x22c   : > { %v9263_v0 = vpack.c.bf16 %v1983_v20, %v1975_v10  ;;  %v1579_v4 = vadd.f32 %v1578_v53, %v9221_v40  ;;  %v1580_v19 = vpop.f32.mrb[18].mxu1  ;;  %v1689_v24 = vpop.f32.mrb[16].mxu0  ;;  %3906 = vmatpush1.bf16.msra.mxu0 %v7833_v7  ;;  %v7845_v53 = vld [vmem:[#allocation7 + $0x180] ss:$8 sps:$4 sm:$0xff]  }
 0x22d   : > { %v1581_v42 = vadd.f32 %v1580_v19, %v9217_v38  ;;  %v1690_v43 = vadd.f32 %v1689_v24, %v1577_v51  ;;  %v1582_v48 = vpop.f32.mrb[19].mxu1  ;;  %v1691_v61 = vpop.f32.mrb[17].mxu0  ;;  %3907 = vmatprep.subr.bf16.mxu0 %v7838_v12  ;;  %v7850_v24 = vld [vmem:[#allocation7 + $0x194] ss:$8 sps:$4 sm:$0xff]  }
 0x22e   : > { %v1583_v21 = vadd.f32 %v1582_v48, %v9221_v40  ;;  %v1692_v23 = vadd.f32 %v1691_v61, %v1579_v4  ;;  %v1693_v49 = vpop.f32.mrb[18].mxu0 }
 0x22f   : > { %v1986_v27 = vmax.f32 %v1690_v43, 0.0  ;;  %v1694_v29 = vadd.f32 %v1693_v49, %v1581_v42  ;;  %v1695_v31 = vpop.f32.mrb[19].mxu0 }
 0x230   : > { %v1987_v32 = vmax.f32 %v1692_v23, 0.0  ;;  %v1696_v10 = vadd.f32 %v1695_v31, %v1583_v21  ;;  %3908 = vmatpush1.bf16.msra.mxu0 %v7836_v39 }
 0x231   : > { %v9268_v35 = vpack.c.bf16 %v1986_v27, %v1978_v3  ;;  %v1990_v44 = vmax.f32 %v1694_v29, 0.0  ;;  %3909 = vmatprep.subr.bf16.mxu0 %v7841_v1 }
 0x232   : > { %v9270_v22 = vpack.c.bf16 %v1987_v32, %v1979_v46  ;;  %v1991_v25 = vmax.f32 %v1696_v10, 0.0  ;;  %v1586_v47 = vpop.f32.mrb[20].mxu1 }
 0x233   : > { %v6993_v52 = vpack.c.bf16 %v1990_v44, %v1982_v60  ;;  %v1587_v55 = vadd.f32 %v1586_v47, %v9217_v38  ;;  %v1588_v56 = vpop.f32.mrb[21].mxu1 }
 0x234   : > { %v6994_v57 = vpack.c.bf16 %v1991_v25, %v1983_v20  ;;  %v1589_v58 = vadd.f32 %v1588_v56, %v9221_v40  ;;  %v1590_v34 = vpop.f32.mrb[22].mxu1  ;;  %v1699_v37 = vpop.f32.mrb[20].mxu0  ;;  %3910 = vmatpush1.bf16.msra.mxu0 %v7839_v13 }
 0x235   : > { %v1591_v62 = vadd.f32 %v1590_v34, %v9217_v38  ;;  %v1700_v2 = vadd.f32 %v1699_v37, %v1587_v55  ;;  %v1592_v3 = vpop.f32.mrb[23].mxu1  ;;  %v1701_v5 = vpop.f32.mrb[21].mxu0  ;;  %3911 = vmatprep.subr.bf16.mxu0 %v7844_v45  ;;  %v7853_v45 = vld [vmem:[#allocation7 + $0x1a4] ss:$8 sps:$4 sm:$0xff]   ;;  %v7851_v34 = vld [vmem:[#allocation7 + $0x1a0] ss:$8 sps:$4 sm:$0xff]  }
 0x236   : > { %v1593_v46 = vadd.f32 %v1592_v3, %v9221_v40  ;;  %v1702_v50 = vadd.f32 %v1701_v5, %v1589_v58  ;;  %v1703_v7 = vpop.f32.mrb[22].mxu0  ;;  %3876 = vmatprep.mubr.bf16.mxu0 %v6994_v57 }
 0x237   : > { %v1994_v60 = vmax.f32 %v1700_v2, 0.0  ;;  %v1704_v12 = vadd.f32 %v1703_v7, %v1591_v62  ;;  %v1705_v20 = vpop.f32.mrb[23].mxu0  ;;  %3877 = vmatmul.mubr.bf16.gmra.mrb[40].mxu0 %v6993_v52  ;;  %v7856_v62 = vld [vmem:[#allocation7 + $0x1b4] ss:$8 sps:$4 sm:$0xff]  }
 0x238   : > { %v1995_v15 = vmax.f32 %v1702_v50, 0.0  ;;  %v1706_v51 = vadd.f32 %v1705_v20, %v1593_v46  ;;  %3912 = vmatpush1.bf16.msra.mxu0 %v7842_v59 }
 0x239   : > { %v9276_v4 = vpack.c.bf16 %v1994_v60, %v1986_v27  ;;  %v1998_v19 = vmax.f32 %v1704_v12, 0.0  ;;  %3913 = vmatprep.subr.bf16.mxu0 %v7847_v6  ;;  %v7848_v27 = vld [vmem:[#allocation7 + $0x190] ss:$8 sps:$4 sm:$0xff]  }
 0x23a   : > { %v9278_v39 = vpack.c.bf16 %v1995_v15, %v1987_v32  ;;  %v1999_v42 = vmax.f32 %v1706_v51, 0.0  ;;  %v1596_v43 = vpop.f32.mrb[24].mxu1 }
 0x23b   : > { %v9280_v48 = vpack.c.bf16 %v1998_v19, %v1990_v44  ;;  %v1597_v61 = vadd.f32 %v1596_v43, %v9217_v38  ;;  %v1598_v1 = vpop.f32.mrb[25].mxu1 }
 0x23c   : > { %v9283_v21 = vpack.c.bf16 %v1999_v42, %v1991_v25  ;;  %v1599_v23 = vadd.f32 %v1598_v1, %v9221_v40  ;;  %v1600_v49 = vpop.f32.mrb[26].mxu1  ;;  %v1709_v29 = vpop.f32.mrb[24].mxu0  ;;  %3914 = vmatpush1.bf16.msra.mxu0 %v7845_v53  ;;  %v7854_v53 = vld [vmem:[#allocation7 + $0x1b0] ss:$8 sps:$4 sm:$0xff]  }
 0x23d   : > { %v1601_v31 = vadd.f32 %v1600_v49, %v9217_v38  ;;  %v1710_v10 = vadd.f32 %v1709_v29, %v1597_v61  ;;  %v1602_v32 = vpop.f32.mrb[27].mxu1  ;;  %v1711_v13 = vpop.f32.mrb[25].mxu0  ;;  %3915 = vmatprep.subr.bf16.mxu0 %v7850_v24 }
 0x23e   : > { %v1603_v44 = vadd.f32 %v1602_v32, %v9221_v40  ;;  %v1712_v47 = vadd.f32 %v1711_v13, %v1599_v23  ;;  %v1713_v52 = vpop.f32.mrb[26].mxu0  ;;  %v7862_v13 = vld [vmem:[#allocation7 + $0x1d4] ss:$8 sps:$4 sm:$0xff]  }
 0x23f   : > { %v2002_v55 = vmax.f32 %v1710_v10, 0.0  ;;  %v1714_v25 = vadd.f32 %v1713_v52, %v1601_v31  ;;  %v1715_v56 = vpop.f32.mrb[27].mxu0  ;;  %v7857_v10 = vld [vmem:[#allocation7 + $0x1c0] ss:$8 sps:$4 sm:$0xff]  }
 0x240   : > { %v2003_v57 = vmax.f32 %v1712_v47, 0.0  ;;  %v1716_v58 = vadd.f32 %v1715_v56, %v1603_v44  ;;  %3916 = vmatpush1.bf16.msra.mxu0 %v7848_v27  ;;  %v7860_v56 = vld [vmem:[#allocation7 + $0x1d0] ss:$8 sps:$4 sm:$0xff]  }
 0x241   : > { %v9288_v37 = vpack.c.bf16 %v2002_v55, %v1994_v60  ;;  %v2006_v59 = vmax.f32 %v1714_v25, 0.0  ;;  %3917 = vmatprep.subr.bf16.mxu0 %v7853_v45 }
 0x242   : > { %v9290_v2 = vpack.c.bf16 %v2003_v57, %v1995_v15  ;;  %v2007_v3 = vmax.f32 %v1716_v58, 0.0  ;;  %v1606_v5 = vpop.f32.mrb[28].mxu1  ;;  %v7859_v15 = vld [vmem:[#allocation7 + $0x1c4] ss:$8 sps:$4 sm:$0xff]  }
 0x243   : > { %v7009_v6 = vpack.c.bf16 %v2006_v59, %v1998_v19  ;;  %v1607_v46 = vadd.f32 %v1606_v5, %v9217_v38  ;;  %v1608_v50 = vpop.f32.mrb[29].mxu1  ;;  %v7865_v58 = vld [vmem:[#allocation7 + $0x1e4] ss:$8 sps:$4 sm:$0xff]   ;;  %v792_v5 = vsub.s32 3, %v9202_v14 }
 0x244   : > { %v7010_v7 = vpack.c.bf16 %v2007_v3, %v1999_v42  ;;  %v1609_v12 = vadd.f32 %v1608_v50, %v9221_v40  ;;  %v1610_v20 = vpop.f32.mrb[30].mxu1  ;;  %v1719_v51 = vpop.f32.mrb[28].mxu0  ;;  %3918 = vmatpush1.bf16.msra.mxu0 %v7851_v34  ;;  %v7868_v34 = vld [vmem:[#allocation7 + $0x1f4] ss:$8 sps:$4 sm:$0xff]  }
 0x245   : > { %v1611_v60 = vadd.f32 %v1610_v20, %v9217_v38  ;;  %v1720_v24 = vadd.f32 %v1719_v51, %v1607_v46  ;;  %v1612_v43 = vpop.f32.mrb[31].mxu1  ;;  %v1721_v61 = vpop.f32.mrb[29].mxu0  ;;  %3919 = vmatprep.subr.bf16.mxu0 %v7856_v62  ;;  %v7871_v62 = vld [vmem:[#allocation7 + $0x204] ss:$8 sps:$4 sm:$0xff]  }
 0x246   : > { %v1613_v1 = vadd.f32 %v1612_v43, %v9221_v40  ;;  %v1722_v19 = vadd.f32 %v1721_v61, %v1609_v12  ;;  %v1723_v23 = vpop.f32.mrb[30].mxu0  ;;  %3886 = vmatprep.mubr.bf16.mxu0 %v7010_v7 }
 0x247   : > { %v2010_v49 = vmax.f32 %v1720_v24, 0.0  ;;  %v1724_v42 = vadd.f32 %v1723_v23, %v1611_v60  ;;  %v1725_v29 = vpop.f32.mrb[31].mxu0  ;;  %3887 = vmatmul.mubr.bf16.gmra.mrb[44].mxu0 %v7009_v6  ;;  %v9314_v6 = vrot.slane %v9207_v16, %v792_v5 }
 0x248   : > { %v2011_v27 = vmax.f32 %v1722_v19, 0.0  ;;  %v1726_v31 = vadd.f32 %v1725_v29, %v1613_v1  ;;  %3920 = vmatpush1.bf16.msra.mxu0 %v7854_v53 }
 0x249   : > { %v9296_v32 = vpack.c.bf16 %v2010_v49, %v2002_v55  ;;  %v2014_v38 = vmax.f32 %v1724_v42, 0.0  ;;  %3921 = vmatprep.subr.bf16.mxu0 %v7859_v15  ;;  %v7863_v55 = vld [vmem:[#allocation7 + $0x1e0] ss:$8 sps:$4 sm:$0xff]  }
 0x24a   : > { %v9298_v45 = vpack.c.bf16 %v2011_v27, %v2003_v57  ;;  %v2015_v44 = vmax.f32 %v1726_v31, 0.0  ;;  %v7866_v57 = vld [vmem:[#allocation7 + $0x1f0] ss:$8 sps:$4 sm:$0xff]  }
 0x24b   : > { %v9300_v40 = vpack.c.bf16 %v2014_v38, %v2010_v49  ;;  %v9302_v47 = vpack.c.bf16 %v2014_v38, %v2006_v59  ;;  %v788_v59 = vsub.s32 2, %v9202_v14 }
 0x24c   : > { %v9304_v52 = vpack.c.bf16 %v2015_v44, %v2011_v27  ;;  %v9306_v25 = vpack.c.bf16 %v2015_v44, %v2007_v3  ;;  %3922 = vmatpush1.bf16.msra.mxu0 %v7857_v10 }
 0x24d   : > { %3923 = vmatprep.subr.bf16.mxu0 %v7862_v13  ;;  %v9311_v3 = vrot.slane %v9207_v16, %v788_v59 }
 0x250   : > { %3924 = vmatpush1.bf16.msra.mxu0 %v7860_v56 }
 0x251   : > { %3925 = vmatprep.subr.bf16.mxu0 %v7865_v58  ;;  %v7869_v58 = vld [vmem:[#allocation7 + $0x200] ss:$8 sps:$4 sm:$0xff]  }
 0x254   : > { %3926 = vmatpush1.bf16.msra.mxu0 %v7863_v55 }
 0x255   : > { %3927 = vmatprep.subr.bf16.mxu0 %v7868_v34 }
 0x258   : > { %3928 = vmatpush1.bf16.msra.mxu0 %v7866_v57 }
 0x259   : > { %3970 = vmatprep.subr.bf16.mxu0 %v7871_v62  ;;  %v7874_v62 = vld [vmem:[#allocation7 + $0x214] ss:$8 sps:$4 sm:$0xff]  }
 0x28a   : > { %v1875_v46 = vpop.f32.mrb[32].mxu1 }
 0x28b   : > { %v7235_v50 = vadd.f32 %v1875_v46, %v9311_v3  ;;  %v1877_v7 = vpop.f32.mrb[33].mxu1 }
 0x28c   : > { %v7236_v12 = vadd.f32 %v1877_v7, %v9314_v6  ;;  %v1879_v20 = vpop.f32.mrb[34].mxu1 }
 0x28d   : > { %v7237_v51 = vadd.f32 %v1879_v20, %v9311_v3  ;;  %v1881_v53 = vpop.f32.mrb[35].mxu1  ;;  %v1956_v24 = vmax.f32 %v7235_v50, 0.0 }
 0x28e   : > { %v7238_v60 = vadd.f32 %v1881_v53, %v9314_v6  ;;  %v1957_v43 = vmax.f32 %v7236_v12, 0.0  ;;  %v7872_v12 = vld [vmem:[#allocation7 + $0x210] ss:$8 sps:$4 sm:$0xff]   ;;  %v7877_v53 = vld [vmem:[#allocation7 + $0x224] ss:$8 sps:$4 sm:$0xff]  }
 0x28f   : > { %v1960_v14 = vmax.f32 %v7237_v51, 0.0 }
 0x290   : > { %v1961_v61 = vmax.f32 %v7238_v60, 0.0 }
 0x291   : > { %v2020_v15 = vpack.c.bf16 %v1960_v14, %v1956_v24 }
 0x292   : > { %v2021_v1 = vpack.c.bf16 %v1961_v61, %v1957_v43  ;;  %v1885_v16 = vpop.f32.mrb[36].mxu1 }
 0x293   : > { %v2088_v19 = vunpack.c.h.b16 %v2020_v15  ;;  %v7239_v23 = vadd.f32 %v1885_v16, %v9311_v3  ;;  %v1887_v49 = vpop.f32.mrb[37].mxu1 }
 0x294   : > { %v2089_v42 = vunpack.c.h.b16 %v2021_v1  ;;  %v7240_v29 = vadd.f32 %v1887_v49, %v9314_v6  ;;  %v1889_v27 = vpop.f32.mrb[38].mxu1  ;;  %v7880_v49 = vld [vmem:[#allocation7 + $0x234] ss:$8 sps:$4 sm:$0xff]  }
 0x295   : > { %v1964_v31 = vmax.f32 %v7239_v23, 0.0  ;;  %v7241_v10 = vadd.f32 %v1889_v27, %v9311_v3  ;;  %v1891_v38 = vpop.f32.mrb[39].mxu1  ;;  %v2418_v55 = vpack.c.b16 %v2088_v19, %v9229_v41 }
 0x296   : > { %v1965_v13 = vmax.f32 %v7240_v29, 0.0  ;;  %v7242_v44 = vadd.f32 %v1891_v38, %v9314_v6  ;;  %v2419_v56 = vpack.c.b16 %v2089_v42, %v9229_v41 }
 0x297   : > { %v9326_v34 = vpack.c.bf16 %v1964_v31, %v1956_v24  ;;  %v1968_v57 = vmax.f32 %v7241_v10, 0.0 }
 0x298   : > { %v9328_v59 = vpack.c.bf16 %v1965_v13, %v1957_v43  ;;  %v1969_v5 = vmax.f32 %v7242_v44, 0.0  ;;  %3929 = vmatprep.mubr.bf16.mxu0 %v2419_v56  ;;  %v7878_v44 = vld [vmem:[#allocation7 + $0x230] ss:$8 sps:$4 sm:$0xff]  }
 0x299   : > { %v9330_v46 = vpack.c.bf16 %v1968_v57, %v1960_v14  ;;  %3930 = vmatmul.mubr.bf16.vlgmr.msra.gmra.mrb[32].mxu0 %v2418_v55  ;;  %v7883_v55 = vld [vmem:[#allocation7 + $0x244] ss:$8 sps:$4 sm:$0xff]  }
 0x29a   : > { %v9332_v50 = vpack.c.bf16 %v1969_v5, %v1961_v61  ;;  %3971 = vmatpush1.bf16.msra.mxu0 %v7869_v58  ;;  %v1895_v7 = vpop.f32.mrb[40].mxu1  ;;  %v7875_v61 = vld [vmem:[#allocation7 + $0x220] ss:$8 sps:$4 sm:$0xff]  }
 0x29b   : > { %v7243_v20 = vadd.f32 %v1895_v7, %v9311_v3  ;;  %v1897_v51 = vpop.f32.mrb[41].mxu1  ;;  %3972 = vmatprep.subr.bf16.mxu0 %v7874_v62 }
 0x29c   : > { %v7244_v60 = vadd.f32 %v1897_v51, %v9314_v6  ;;  %v1899_v24 = vpop.f32.mrb[42].mxu1 }
 0x29d   : > { %v1972_v43 = vmax.f32 %v7243_v20, 0.0  ;;  %v7245_v15 = vadd.f32 %v1899_v24, %v9311_v3  ;;  %v1901_v1 = vpop.f32.mrb[43].mxu1 }
 0x29e   : > { %v1973_v14 = vmax.f32 %v7244_v60, 0.0  ;;  %v7246_v16 = vadd.f32 %v1901_v1, %v9314_v6  ;;  %3973 = vmatpush1.bf16.msra.mxu0 %v7872_v12  ;;  %v7886_v60 = vld [vmem:[#allocation7 + $0x254] ss:$8 sps:$4 sm:$0xff]  }
 0x29f   : > { %v9338_v19 = vpack.c.bf16 %v1972_v43, %v1964_v31  ;;  %v1976_v23 = vmax.f32 %v7245_v15, 0.0  ;;  %3974 = vmatprep.subr.bf16.mxu0 %v7877_v53 }
 0x2a0   : > { %v9340_v42 = vpack.c.bf16 %v1973_v14, %v1965_v13  ;;  %v1977_v29 = vmax.f32 %v7246_v16, 0.0 }
 0x2a1   : > { %v6979_v27 = vpack.c.bf16 %v1976_v23, %v1968_v57 }
 0x2a2   : > { %v6980_v10 = vpack.c.bf16 %v1977_v29, %v1969_v5  ;;  %3975 = vmatpush1.bf16.msra.mxu0 %v7875_v61  ;;  %v1905_v38 = vpop.f32.mrb[44].mxu1  ;;  %v7881_v5 = vld [vmem:[#allocation7 + $0x240] ss:$8 sps:$4 sm:$0xff]  }
 0x2a3   : > { %v7247_v56 = vadd.f32 %v1905_v38, %v9311_v3  ;;  %v1907_v58 = vpop.f32.mrb[45].mxu1  ;;  %3976 = vmatprep.subr.bf16.mxu0 %v7880_v49  ;;  %v7884_v49 = vld [vmem:[#allocation7 + $0x250] ss:$8 sps:$4 sm:$0xff]   ;;  %v7889_v38 = vld [vmem:[#allocation7 + $0x264] ss:$8 sps:$4 sm:$0xff]  }
 0x2a4   : > { %v7248_v62 = vadd.f32 %v1907_v58, %v9314_v6  ;;  %v1909_v31 = vpop.f32.mrb[46].mxu1  ;;  %3939 = vmatprep.mubr.bf16.mxu0 %v6980_v10 }
 0x2a5   : > { %v1980_v7 = vmax.f32 %v7247_v56, 0.0  ;;  %v7249_v12 = vadd.f32 %v1909_v31, %v9311_v3  ;;  %v1911_v13 = vpop.f32.mrb[47].mxu1  ;;  %3940 = vmatmul.mubr.bf16.gmra.mrb[36].mxu0 %v6979_v27 }
 0x2a6   : > { %v1981_v20 = vmax.f32 %v7248_v62, 0.0  ;;  %v7250_v57 = vadd.f32 %v1911_v13, %v9314_v6  ;;  %3977 = vmatpush1.bf16.msra.mxu0 %v7878_v44 }
 0x2a7   : > { %v9346_v51 = vpack.c.bf16 %v1980_v7, %v1972_v43  ;;  %v1984_v53 = vmax.f32 %v7249_v12, 0.0  ;;  %3978 = vmatprep.subr.bf16.mxu0 %v7883_v55  ;;  %v7892_v12 = vld [vmem:[#allocation7 + $0x274] ss:$8 sps:$4 sm:$0xff]  }
 0x2a8   : > { %v9348_v24 = vpack.c.bf16 %v1981_v20, %v1973_v14  ;;  %v1985_v15 = vmax.f32 %v7250_v57, 0.0 }
 0x2a9   : > { %v9350_v1 = vpack.c.bf16 %v1984_v53, %v1976_v23 }
 0x2aa   : > { %v9352_v16 = vpack.c.bf16 %v1985_v15, %v1977_v29  ;;  %3979 = vmatpush1.bf16.msra.mxu0 %v7881_v5  ;;  %v1915_v61 = vpop.f32.mrb[48].mxu1  ;;  %v7887_v29 = vld [vmem:[#allocation7 + $0x260] ss:$8 sps:$4 sm:$0xff]  }
 0x2ab   : > { %v7251_v27 = vadd.f32 %v1915_v61, %v9311_v3  ;;  %v1917_v10 = vpop.f32.mrb[49].mxu1  ;;  %3980 = vmatprep.subr.bf16.mxu0 %v7886_v60 }
 0x2ac   : > { %v7252_v43 = vadd.f32 %v1917_v10, %v9314_v6  ;;  %v1919_v44 = vpop.f32.mrb[50].mxu1 }
 0x2ad   : > { %v1988_v56 = vmax.f32 %v7251_v27, 0.0  ;;  %v7253_v14 = vadd.f32 %v1919_v44, %v9311_v3  ;;  %v1921_v58 = vpop.f32.mrb[51].mxu1  ;;  %v7890_v27 = vld [vmem:[#allocation7 + $0x270] ss:$8 sps:$4 sm:$0xff]   ;;  %v7895_v44 = vld [vmem:[#allocation7 + $0x284] ss:$8 sps:$4 sm:$0xff]  }
 0x2ae   : > { %v1989_v55 = vmax.f32 %v7252_v43, 0.0  ;;  %v7254_v23 = vadd.f32 %v1921_v58, %v9314_v6  ;;  %3981 = vmatpush1.bf16.msra.mxu0 %v7884_v49 }
 0x2af   : > { %v9358_v62 = vpack.c.bf16 %v1988_v56, %v1980_v7  ;;  %v1992_v31 = vmax.f32 %v7253_v14, 0.0  ;;  %3982 = vmatprep.subr.bf16.mxu0 %v7889_v38 }
 0x2b0   : > { %v9360_v13 = vpack.c.bf16 %v1989_v55, %v1981_v20  ;;  %v1993_v57 = vmax.f32 %v7254_v23, 0.0 }
 0x2b1   : > { %9637 = vst [vmem:[#allocation23_spill] sm:$0xff] %v9358_v62  ;;  %v6995_v5 = vpack.c.bf16 %v1992_v31, %v1984_v53  ;;  %v7902_v62 = vld [vmem:[#allocation7 + $0x2b0] ss:$8 sps:$4 sm:$0xff]  }
 0x2b2   : > { %v6996_v60 = vpack.c.bf16 %v1993_v57, %v1985_v15  ;;  %3983 = vmatpush1.bf16.msra.mxu0 %v7887_v29  ;;  %v1925_v61 = vpop.f32.mrb[52].mxu1  ;;  %v7893_v15 = vld [vmem:[#allocation7 + $0x280] ss:$8 sps:$4 sm:$0xff]  }
 0x2b3   : > { %v7255_v10 = vadd.f32 %v1925_v61, %v9311_v3  ;;  %v1927_v43 = vpop.f32.mrb[53].mxu1  ;;  %3984 = vmatprep.subr.bf16.mxu0 %v7892_v12  ;;  %v7898_v12 = vld [vmem:[#allocation7 + $0x294] ss:$8 sps:$4 sm:$0xff]  }
 0x2b4   : > { %v7256_v49 = vadd.f32 %v1927_v43, %v9314_v6  ;;  %v1929_v7 = vpop.f32.mrb[54].mxu1  ;;  %3949 = vmatprep.mubr.bf16.mxu0 %v6996_v60 }
 0x2b5   : > { %v1996_v14 = vmax.f32 %v7255_v10, 0.0  ;;  %v7257_v38 = vadd.f32 %v1929_v7, %v9311_v3  ;;  %v1931_v20 = vpop.f32.mrb[55].mxu1  ;;  %3950 = vmatmul.mubr.bf16.gmra.mrb[40].mxu0 %v6995_v5  ;;  %v7896_v5 = vld [vmem:[#allocation7 + $0x290] ss:$8 sps:$4 sm:$0xff]  }
 0x2b6   : > { %v1997_v58 = vmax.f32 %v7256_v49, 0.0  ;;  %v7258_v53 = vadd.f32 %v1931_v20, %v9314_v6  ;;  %3985 = vmatpush1.bf16.msra.mxu0 %v7890_v27  ;;  %v7901_v27 = vld [vmem:[#allocation7 + $0x2a4] ss:$8 sps:$4 sm:$0xff]  }
 0x2b7   : > { %v9366_v23 = vpack.c.bf16 %v1996_v14, %v1988_v56  ;;  %v2000_v29 = vmax.f32 %v7257_v38, 0.0  ;;  %3986 = vmatprep.subr.bf16.mxu0 %v7895_v44 }
 0x2b8   : > { %v9368_v61 = vpack.c.bf16 %v1997_v58, %v1989_v55  ;;  %v2001_v43 = vmax.f32 %v7258_v53, 0.0 }
 0x2b9   : > { %v9370_v36 = vpack.c.bf16 %v2000_v29, %v1992_v31 }
 0x2ba   : > { %v9372_v60 = vpack.c.bf16 %v2001_v43, %v1993_v57  ;;  %3987 = vmatpush1.bf16.msra.mxu0 %v7893_v15  ;;  %v1935_v10 = vpop.f32.mrb[56].mxu1  ;;  %v7899_v57 = vld [vmem:[#allocation7 + $0x2a0] ss:$8 sps:$4 sm:$0xff]  }
 0x2bb   : > { %v7259_v49 = vadd.f32 %v1935_v10, %v9311_v3  ;;  %v1937_v7 = vpop.f32.mrb[57].mxu1  ;;  %3988 = vmatprep.subr.bf16.mxu0 %v7898_v12  ;;  %v7904_v10 = vld [vmem:[#allocation7 + $0x2b4] ss:$8 sps:$4 sm:$0xff]  }
 0x2bc   : > { %v7260_v56 = vadd.f32 %v1937_v7, %v9314_v6  ;;  %v1939_v38 = vpop.f32.mrb[58].mxu1 }
 0x2bd   : > { %v2004_v44 = vmax.f32 %v7259_v49, 0.0  ;;  %v7261_v55 = vadd.f32 %v1939_v38, %v9311_v3  ;;  %v1941_v20 = vpop.f32.mrb[59].mxu1 }
 0x2be   : > { %v2005_v53 = vmax.f32 %v7260_v56, 0.0  ;;  %v7262_v31 = vadd.f32 %v1941_v20, %v9314_v6  ;;  %3989 = vmatpush1.bf16.msra.mxu0 %v7896_v5  ;;  %v7907_v20 = vld [vmem:[#allocation7 + $0x2c4] ss:$8 sps:$4 sm:$0xff]  }
 0x2bf   : > { %v9378_v15 = vpack.c.bf16 %v2004_v44, %v1996_v14  ;;  %v2008_v41 = vmax.f32 %v7261_v55, 0.0  ;;  %3990 = vmatprep.subr.bf16.mxu0 %v7901_v27 }
 0x2c0   : > { %v9380_v28 = vpack.c.bf16 %v2005_v53, %v1997_v58  ;;  %v2009_v12 = vmax.f32 %v7262_v31, 0.0 }
 0x2c1   : > { %v7011_v26 = vpack.c.bf16 %v2008_v41, %v2000_v29 }
 0x2c2   : > { %v7012_v7 = vpack.c.bf16 %v2009_v12, %v2001_v43  ;;  %3991 = vmatpush1.bf16.msra.mxu0 %v7899_v57  ;;  %v1945_v49 = vpop.f32.mrb[60].mxu1  ;;  %v7905_v43 = vld [vmem:[#allocation7 + $0x2c0] ss:$8 sps:$4 sm:$0xff]  }
 0x2c3   : > { %v7263_v38 = vadd.f32 %v1945_v49, %v9311_v3  ;;  %v1947_v56 = vpop.f32.mrb[61].mxu1  ;;  %3992 = vmatprep.subr.bf16.mxu0 %v7904_v10  ;;  %v7910_v49 = vld [vmem:[#allocation7 + $0x2d4] ss:$8 sps:$4 sm:$0xff]  }
 0x2c4   : > { %v7264_v5 = vadd.f32 %v1947_v56, %v9314_v6  ;;  %v1949_v14 = vpop.f32.mrb[62].mxu1  ;;  %3959 = vmatprep.mubr.bf16.mxu0 %v7012_v7 }
 0x2c5   : > { %v2012_v55 = vmax.f32 %v7263_v38, 0.0  ;;  %v7265_v27 = vadd.f32 %v1949_v14, %v9311_v3  ;;  %v1951_v58 = vpop.f32.mrb[63].mxu1  ;;  %3960 = vmatmul.mubr.bf16.gmra.mrb[44].mxu0 %v7011_v26  ;;  %v7917_v14 = vld [vmem:[#allocation7 + $0x300] ss:$8 sps:$4 sm:$0xff]  }
 0x2c6   : > { %v2013_v31 = vmax.f32 %v7264_v5, 0.0  ;;  %v7266_v29 = vadd.f32 %v1951_v58, %v9314_v6  ;;  %3993 = vmatpush1.bf16.msra.mxu0 %v7902_v62  ;;  %4002 = vmatprep.mubr.bf16.mxu0 %v9238_v11  ;;  %v7908_v6 = vld [vmem:[#allocation7 + $0x2d0] ss:$8 sps:$4 sm:$0xff]   ;;  %v7913_v11 = vld [vmem:[#allocation7 + $0x2e4] ss:$8 sps:$4 sm:$0xff]  }
 0x2c7   : > { %v9387_v57 = vpack.c.bf16 %v2012_v55, %v2004_v44  ;;  %v2016_v10 = vmax.f32 %v7265_v27, 0.0  ;;  %3994 = vmatprep.subr.bf16.mxu0 %v7907_v20  ;;  %v7911_v62 = vld [vmem:[#allocation7 + $0x2e0] ss:$8 sps:$4 sm:$0xff]   ;;  %v7916_v44 = vld [vmem:[#allocation7 + $0x2f4] ss:$8 sps:$4 sm:$0xff]  }
 0x2c8   : > { %v9389_v56 = vpack.c.bf16 %v2013_v31, %v2005_v53  ;;  %v2017_v7 = vmax.f32 %v7266_v29, 0.0  ;;  %v7914_v53 = vld [vmem:[#allocation7 + $0x2f0] ss:$8 sps:$4 sm:$0xff]   ;;  %v7919_v20 = vld [vmem:[#allocation7 + $0x304] ss:$8 sps:$4 sm:$0xff]  }
 0x2c9   : > { %v9391_v38 = vpack.c.bf16 %v2016_v10, %v2012_v55  ;;  %v9393_v3 = vpack.c.bf16 %v2016_v10, %v2008_v41  ;;  %v7922_v41 = vld [vmem:[#allocation7 + $0x314] ss:$8 sps:$4 sm:$0xff]   ;;  %v7925_v55 = vld [vmem:[#allocation7 + $0x324] ss:$8 sps:$4 sm:$0xff]   ;;  %v7923_v27 = vld [vmem:[#allocation7 + $0x320] ss:$8 sps:$4 sm:$0xff]  }
 0x2ca   : > { %v9395_v26 = vpack.c.bf16 %v2017_v7, %v2013_v31  ;;  %v9397_v5 = vpack.c.bf16 %v2017_v7, %v2009_v12  ;;  %3995 = vmatpush1.bf16.msra.mxu0 %v7905_v43  ;;  %v7920_v12 = vld [vmem:[#allocation7 + $0x310] ss:$8 sps:$4 sm:$0xff]   ;;  %v7928_v58 = vld [vmem:[#allocation7 + $0x334] ss:$8 sps:$4 sm:$0xff]   ;;  %v7931_v29 = vld [vmem:[#allocation7 + $0x344] ss:$8 sps:$4 sm:$0xff]  }
 0x2cb   : > { %3996 = vmatprep.subr.bf16.mxu0 %v7910_v49  ;;  %v7926_v31 = vld [vmem:[#allocation7 + $0x330] ss:$8 sps:$4 sm:$0xff]   ;;  %v7937_v10 = vld [vmem:[#allocation7 + $0x364] ss:$8 sps:$4 sm:$0xff]  }
 0x2cc   : > { %v7932_v43 = vld [vmem:[#allocation7 + $0x350] ss:$8 sps:$4 sm:$0xff]   ;;  %v7943_v7 = vld [vmem:[#allocation7 + $0x384] ss:$8 sps:$4 sm:$0xff]  }
 0x2cd   : > { %v7938_v49 = vld [vmem:[#allocation7 + $0x370] ss:$8 sps:$4 sm:$0xff]  }
 0x2ce   : > { %3997 = vmatpush1.bf16.msra.mxu0 %v7908_v6  ;;  %v7944_v6 = vld [vmem:[#allocation7 + $0x390] ss:$8 sps:$4 sm:$0xff]  }
 0x2cf   : > { %3998 = vmatprep.subr.bf16.mxu0 %v7913_v11  ;;  %v7949_v11 = vld [vmem:[#allocation7 + $0x3a4] ss:$8 sps:$4 sm:$0xff]  }
 0x2d2   : > { %3999 = vmatpush1.bf16.msra.mxu0 %v7911_v62  ;;  %v7947_v62 = vld [vmem:[#allocation7 + $0x3a0] ss:$8 sps:$4 sm:$0xff]  }
 0x2d3   : > { %4000 = vmatprep.subr.bf16.mxu0 %v7916_v44  ;;  %v7952_v44 = vld [vmem:[#allocation7 + $0x3b4] ss:$8 sps:$4 sm:$0xff]  }
 0x2d6   : > { %4001 = vmatpush1.bf16.msra.mxu0 %v7914_v53  ;;  %v7955_v53 = vld [vmem:[#allocation7 + $0x3c4] ss:$8 sps:$4 sm:$0xff]  }
 0x2d7   : > { %4043 = vmatprep.subr.bf16.mxu0 %v7919_v20  ;;  %v7958_v20 = vld [vmem:[#allocation7 + $0x3d4] ss:$8 sps:$4 sm:$0xff]  }
 0x2d9   : > { %4003 = vmatmul.mubr.bf16.vlgmr.msra.gmra.mrb[32].mxu0 %v9236_v9  ;;  %v7929_v9 = vld [vmem:[#allocation7 + $0x340] ss:$8 sps:$4 sm:$0xff]  }
 0x2da   : > { %4012 = vmatprep.mubr.bf16.mxu0 %v9258_v63  ;;  %4044 = vmatpush1.bf16.msra.mxu0 %v7917_v14  ;;  %v7934_v63 = vld [vmem:[#allocation7 + $0x354] ss:$8 sps:$4 sm:$0xff]   ;;  %v7956_v14 = vld [vmem:[#allocation7 + $0x3d0] ss:$8 sps:$4 sm:$0xff]  }
 0x2db   : > { %4045 = vmatprep.subr.bf16.mxu0 %v7922_v41  ;;  %v7961_v41 = vld [vmem:[#allocation7 + $0x3e4] ss:$8 sps:$4 sm:$0xff]  }
 0x2de   : > { %4046 = vmatpush1.bf16.msra.mxu0 %v7920_v12  ;;  %v7959_v12 = vld [vmem:[#allocation7 + $0x3e0] ss:$8 sps:$4 sm:$0xff]  }
 0x2df   : > { %4047 = vmatprep.subr.bf16.mxu0 %v7925_v55  ;;  %v7964_v55 = vld [vmem:[#allocation7 + $0x3f4] ss:$8 sps:$4 sm:$0xff]  }
 0x2e1   : > { %4013 = vmatmul.mubr.bf16.gmra.mrb[36].mxu0 %v9256_v8  ;;  %v7935_v8 = vld [vmem:[#allocation7 + $0x360] ss:$8 sps:$4 sm:$0xff]  }
 0x2e2   : > { %4022 = vmatprep.mubr.bf16.mxu0 %v9278_v39  ;;  %4048 = vmatpush1.bf16.msra.mxu0 %v7923_v27  ;;  %v7940_v39 = vld [vmem:[#allocation7 + $0x374] ss:$8 sps:$4 sm:$0xff]   ;;  %v7962_v27 = vld [vmem:[#allocation7 + $0x3f0] ss:$8 sps:$4 sm:$0xff]  }
 0x2e3   : > { %4049 = vmatprep.subr.bf16.mxu0 %v7928_v58  ;;  %v7967_v58 = vld [vmem:[#allocation7 + $0x404] ss:$8 sps:$4 sm:$0xff]  }
 0x2e6   : > { %4050 = vmatpush1.bf16.msra.mxu0 %v7926_v31  ;;  %v7965_v31 = vld [vmem:[#allocation7 + $0x400] ss:$8 sps:$4 sm:$0xff]  }
 0x2e7   : > { %4051 = vmatprep.subr.bf16.mxu0 %v7931_v29  ;;  %v7970_v29 = vld [vmem:[#allocation7 + $0x414] ss:$8 sps:$4 sm:$0xff]  }
 0x2e9   : > { %4023 = vmatmul.mubr.bf16.gmra.mrb[40].mxu0 %v9276_v4  ;;  %v7941_v4 = vld [vmem:[#allocation7 + $0x380] ss:$8 sps:$4 sm:$0xff]  }
 0x2ea   : > { %4032 = vmatprep.mubr.bf16.mxu0 %v9298_v45  ;;  %4052 = vmatpush1.bf16.msra.mxu0 %v7929_v9  ;;  %v7946_v45 = vld [vmem:[#allocation7 + $0x394] ss:$8 sps:$4 sm:$0xff]   ;;  %v7968_v9 = vld [vmem:[#allocation7 + $0x410] ss:$8 sps:$4 sm:$0xff]  }
 0x2eb   : > { %4053 = vmatprep.subr.bf16.mxu0 %v7934_v63  ;;  %v7973_v63 = vld [vmem:[#allocation7 + $0x424] ss:$8 sps:$4 sm:$0xff]  }
 0x2ee   : > { %4054 = vmatpush1.bf16.msra.mxu0 %v7932_v43  ;;  %v7971_v43 = vld [vmem:[#allocation7 + $0x420] ss:$8 sps:$4 sm:$0xff]  }
 0x2ef   : > { %4055 = vmatprep.subr.bf16.mxu0 %v7937_v10  ;;  %v7976_v10 = vld [vmem:[#allocation7 + $0x434] ss:$8 sps:$4 sm:$0xff]  }
 0x2f1   : > { %4033 = vmatmul.mubr.bf16.gmra.mrb[44].mxu0 %v9296_v32  ;;  %v7950_v32 = vld [vmem:[#allocation7 + $0x3b0] ss:$8 sps:$4 sm:$0xff]  }
 0x2f2   : > { %4056 = vmatpush1.bf16.msra.mxu0 %v7935_v8  ;;  %4075 = vmatprep.mubr.bf16.mxu0 %v9328_v59  ;;  %v7953_v59 = vld [vmem:[#allocation7 + $0x3c0] ss:$8 sps:$4 sm:$0xff]   ;;  %v7974_v8 = vld [vmem:[#allocation7 + $0x430] ss:$8 sps:$4 sm:$0xff]  }
 0x2f3   : > { %4057 = vmatprep.subr.bf16.mxu0 %v7940_v39  ;;  %v7979_v39 = vld [vmem:[#allocation7 + $0x444] ss:$8 sps:$4 sm:$0xff]  }
 0x2f6   : > { %4058 = vmatpush1.bf16.msra.mxu0 %v7938_v49  ;;  %v7980_v49 = vld [vmem:[#allocation7 + $0x450] ss:$8 sps:$4 sm:$0xff]  }
 0x2f7   : > { %4059 = vmatprep.subr.bf16.mxu0 %v7943_v7  ;;  %v7985_v7 = vld [vmem:[#allocation7 + $0x464] ss:$8 sps:$4 sm:$0xff]  }
 0x2fa   : > { %4060 = vmatpush1.bf16.msra.mxu0 %v7941_v4  ;;  %v7986_v4 = vld [vmem:[#allocation7 + $0x470] ss:$8 sps:$4 sm:$0xff]  }
 0x2fb   : > { %4061 = vmatprep.subr.bf16.mxu0 %v7946_v45  ;;  %v7991_v45 = vld [vmem:[#allocation7 + $0x484] ss:$8 sps:$4 sm:$0xff]  }
 0x2fe   : > { %4062 = vmatpush1.bf16.msra.mxu0 %v7944_v6  ;;  %v7992_v6 = vld [vmem:[#allocation7 + $0x490] ss:$8 sps:$4 sm:$0xff]  }
 0x2ff   : > { %4063 = vmatprep.subr.bf16.mxu0 %v7949_v11  ;;  %v7997_v11 = vld [vmem:[#allocation7 + $0x4a4] ss:$8 sps:$4 sm:$0xff]  }
 0x302   : > { %4064 = vmatpush1.bf16.msra.mxu0 %v7947_v62  ;;  %v7995_v62 = vld [vmem:[#allocation7 + $0x4a0] ss:$8 sps:$4 sm:$0xff]  }
 0x303   : > { %4065 = vmatprep.subr.bf16.mxu0 %v7952_v44  ;;  %v8000_v44 = vld [vmem:[#allocation7 + $0x4b4] ss:$8 sps:$4 sm:$0xff]  }
 0x306   : > { %4066 = vmatpush1.bf16.msra.mxu0 %v7950_v32  ;;  %v8003_v32 = vld [vmem:[#allocation7 + $0x4c4] ss:$8 sps:$4 sm:$0xff]  }
 0x307   : > { %4067 = vmatprep.subr.bf16.mxu0 %v7955_v53  ;;  %v8006_v53 = vld [vmem:[#allocation7 + $0x4d4] ss:$8 sps:$4 sm:$0xff]  }
 0x30a   : > { %4068 = vmatpush1.bf16.msra.mxu0 %v7953_v59  ;;  %v8004_v59 = vld [vmem:[#allocation7 + $0x4d0] ss:$8 sps:$4 sm:$0xff]  }
 0x30b   : > { %4069 = vmatprep.subr.bf16.mxu0 %v7958_v20  ;;  %v8009_v20 = vld [vmem:[#allocation7 + $0x4e4] ss:$8 sps:$4 sm:$0xff]  }
 0x30e   : > { %4070 = vmatpush1.bf16.msra.mxu0 %v7956_v14  ;;  %v8007_v14 = vld [vmem:[#allocation7 + $0x4e0] ss:$8 sps:$4 sm:$0xff]  }
 0x30f   : > { %4071 = vmatprep.subr.bf16.mxu0 %v7961_v41  ;;  %v8012_v41 = vld [vmem:[#allocation7 + $0x4f4] ss:$8 sps:$4 sm:$0xff]  }
 0x312   : > { %4072 = vmatpush1.bf16.msra.mxu0 %v7959_v12  ;;  %v8010_v12 = vld [vmem:[#allocation7 + $0x4f0] ss:$8 sps:$4 sm:$0xff]  }
 0x313   : > { %4073 = vmatprep.subr.bf16.mxu0 %v7964_v55  ;;  %v8015_v55 = vld [vmem:[#allocation7 + $0x504] ss:$8 sps:$4 sm:$0xff]  }
 0x316   : > { %4074 = vmatpush1.bf16.msra.mxu0 %v7962_v27  ;;  %v8013_v27 = vld [vmem:[#allocation7 + $0x500] ss:$8 sps:$4 sm:$0xff]  }
 0x317   : > { %4116 = vmatprep.subr.bf16.mxu0 %v7967_v58  ;;  %v8018_v58 = vld [vmem:[#allocation7 + $0x514] ss:$8 sps:$4 sm:$0xff]  }
 0x319   : > { %4076 = vmatmul.mubr.bf16.vlgmr.msra.gmra.mrb[32].mxu0 %v9326_v34  ;;  %v7977_v34 = vld [vmem:[#allocation7 + $0x440] ss:$8 sps:$4 sm:$0xff]  }
 0x31a   : > { %4085 = vmatprep.mubr.bf16.mxu0 %v9348_v24  ;;  %4117 = vmatpush1.bf16.msra.mxu0 %v7965_v31  ;;  %v7982_v24 = vld [vmem:[#allocation7 + $0x454] ss:$8 sps:$4 sm:$0xff]   ;;  %v8016_v31 = vld [vmem:[#allocation7 + $0x510] ss:$8 sps:$4 sm:$0xff]  }
 0x31b   : > { %4118 = vmatprep.subr.bf16.mxu0 %v7970_v29  ;;  %v8021_v29 = vld [vmem:[#allocation7 + $0x524] ss:$8 sps:$4 sm:$0xff]  }
 0x31e   : > { %4119 = vmatpush1.bf16.msra.mxu0 %v7968_v9  ;;  %v8019_v9 = vld [vmem:[#allocation7 + $0x520] ss:$8 sps:$4 sm:$0xff]  }
 0x31f   : > { %4120 = vmatprep.subr.bf16.mxu0 %v7973_v63  ;;  %v8024_v63 = vld [vmem:[#allocation7 + $0x534] ss:$8 sps:$4 sm:$0xff]  }
 0x321   : > { %4086 = vmatmul.mubr.bf16.gmra.mrb[36].mxu0 %v9346_v51  ;;  %v7983_v51 = vld [vmem:[#allocation7 + $0x460] ss:$8 sps:$4 sm:$0xff]  }
 0x322   : > { %4095 = vmatprep.mubr.bf16.mxu0 %v9368_v61  ;;  %4121 = vmatpush1.bf16.msra.mxu0 %v7971_v43  ;;  %v7988_v61 = vld [vmem:[#allocation7 + $0x474] ss:$8 sps:$4 sm:$0xff]   ;;  %v8022_v43 = vld [vmem:[#allocation7 + $0x530] ss:$8 sps:$4 sm:$0xff]  }
 0x323   : > { %4122 = vmatprep.subr.bf16.mxu0 %v7976_v10  ;;  %v8027_v10 = vld [vmem:[#allocation7 + $0x544] ss:$8 sps:$4 sm:$0xff]  }
 0x326   : > { %4123 = vmatpush1.bf16.msra.mxu0 %v7974_v8  ;;  %v8028_v8 = vld [vmem:[#allocation7 + $0x550] ss:$8 sps:$4 sm:$0xff]  }
 0x327   : > { %4124 = vmatprep.subr.bf16.mxu0 %v7979_v39  ;;  %v8033_v39 = vld [vmem:[#allocation7 + $0x564] ss:$8 sps:$4 sm:$0xff]  }
 0x329   : > { %4096 = vmatmul.mubr.bf16.gmra.mrb[40].mxu0 %v9366_v23  ;;  %v7989_v23 = vld [vmem:[#allocation7 + $0x480] ss:$8 sps:$4 sm:$0xff]  }
 0x32a   : > { %4105 = vmatprep.mubr.bf16.mxu0 %v9389_v56  ;;  %4125 = vmatpush1.bf16.msra.mxu0 %v7977_v34  ;;  %v7994_v56 = vld [vmem:[#allocation7 + $0x494] ss:$8 sps:$4 sm:$0xff]   ;;  %v8034_v34 = vld [vmem:[#allocation7 + $0x570] ss:$8 sps:$4 sm:$0xff]  }
 0x32b   : > { %4126 = vmatprep.subr.bf16.mxu0 %v7982_v24  ;;  %v8039_v24 = vld [vmem:[#allocation7 + $0x584] ss:$8 sps:$4 sm:$0xff]  }
 0x32e   : > { %4127 = vmatpush1.bf16.msra.mxu0 %v7980_v49  ;;  %v8040_v49 = vld [vmem:[#allocation7 + $0x590] ss:$8 sps:$4 sm:$0xff]  }
 0x32f   : > { %4128 = vmatprep.subr.bf16.mxu0 %v7985_v7  ;;  %v8045_v7 = vld [vmem:[#allocation7 + $0x5a4] ss:$8 sps:$4 sm:$0xff]  }
 0x331   : > { %4106 = vmatmul.mubr.bf16.gmra.mrb[44].mxu0 %v9387_v57  ;;  %v7998_v57 = vld [vmem:[#allocation7 + $0x4b0] ss:$8 sps:$4 sm:$0xff]  }
 0x332   : > { %4129 = vmatpush1.bf16.msra.mxu0 %v7983_v51  ;;  %4148 = vmatprep.mubr.bf16.mxu0 %v9243_v54  ;;  %v8001_v54 = vld [vmem:[#allocation7 + $0x4c0] ss:$8 sps:$4 sm:$0xff]  }
 0x333   : > { %4130 = vmatprep.subr.bf16.mxu0 %v7988_v61  ;;  %v8043_v51 = vld [vmem:[#allocation7 + $0x5a0] ss:$8 sps:$4 sm:$0xff]   ;;  %v8048_v61 = vld [vmem:[#allocation7 + $0x5b4] ss:$8 sps:$4 sm:$0xff]  }
 0x336   : > { %4131 = vmatpush1.bf16.msra.mxu0 %v7986_v4  ;;  %v8051_v4 = vld [vmem:[#allocation7 + $0x5c4] ss:$8 sps:$4 sm:$0xff]  }
 0x337   : > { %4132 = vmatprep.subr.bf16.mxu0 %v7991_v45  ;;  %v8054_v45 = vld [vmem:[#allocation7 + $0x5d4] ss:$8 sps:$4 sm:$0xff]  }
 0x33a   : > { %4133 = vmatpush1.bf16.msra.mxu0 %v7989_v23  ;;  %v8052_v23 = vld [vmem:[#allocation7 + $0x5d0] ss:$8 sps:$4 sm:$0xff]  }
 0x33b   : > { %4134 = vmatprep.subr.bf16.mxu0 %v7994_v56  ;;  %v8057_v56 = vld [vmem:[#allocation7 + $0x5e4] ss:$8 sps:$4 sm:$0xff]  }
 0x33e   : > { %4135 = vmatpush1.bf16.msra.mxu0 %v7992_v6  ;;  %v8055_v6 = vld [vmem:[#allocation7 + $0x5e0] ss:$8 sps:$4 sm:$0xff]  }
 0x33f   : > { %4136 = vmatprep.subr.bf16.mxu0 %v7997_v11  ;;  %v8060_v11 = vld [vmem:[#allocation7 + $0x5f4] ss:$8 sps:$4 sm:$0xff]  }
 0x342   : > { %4137 = vmatpush1.bf16.msra.mxu0 %v7995_v62  ;;  %v8058_v62 = vld [vmem:[#allocation7 + $0x5f0] ss:$8 sps:$4 sm:$0xff]  }
 0x343   : > { %4138 = vmatprep.subr.bf16.mxu0 %v8000_v44  ;;  %v8063_v44 = vld [vmem:[#allocation7 + $0x604] ss:$8 sps:$4 sm:$0xff]  }
 0x346   : > { %4139 = vmatpush1.bf16.msra.mxu0 %v7998_v57  ;;  %v8061_v57 = vld [vmem:[#allocation7 + $0x600] ss:$8 sps:$4 sm:$0xff]  }
 0x347   : > { %4140 = vmatprep.subr.bf16.mxu0 %v8003_v32  ;;  %v8066_v32 = vld [vmem:[#allocation7 + $0x614] ss:$8 sps:$4 sm:$0xff]  }
 0x34a   : > { %4141 = vmatpush1.bf16.msra.mxu0 %v8001_v54  ;;  %v8064_v54 = vld [vmem:[#allocation7 + $0x610] ss:$8 sps:$4 sm:$0xff]  }
 0x34b   : > { %4142 = vmatprep.subr.bf16.mxu0 %v8006_v53  ;;  %v8069_v53 = vld [vmem:[#allocation7 + $0x624] ss:$8 sps:$4 sm:$0xff]  }
 0x34e   : > { %4143 = vmatpush1.bf16.msra.mxu0 %v8004_v59  ;;  %v8067_v59 = vld [vmem:[#allocation7 + $0x620] ss:$8 sps:$4 sm:$0xff]  }
 0x34f   : > { %4144 = vmatprep.subr.bf16.mxu0 %v8009_v20  ;;  %v8072_v20 = vld [vmem:[#allocation7 + $0x634] ss:$8 sps:$4 sm:$0xff]  }
 0x352   : > { %4145 = vmatpush1.bf16.msra.mxu0 %v8007_v14  ;;  %v8070_v14 = vld [vmem:[#allocation7 + $0x630] ss:$8 sps:$4 sm:$0xff]  }
 0x353   : > { %4146 = vmatprep.subr.bf16.mxu0 %v8012_v41  ;;  %v8075_v41 = vld [vmem:[#allocation7 + $0x644] ss:$8 sps:$4 sm:$0xff]  }
 0x356   : > { %4147 = vmatpush1.bf16.msra.mxu0 %v8010_v12  ;;  %v8076_v12 = vld [vmem:[#allocation7 + $0x650] ss:$8 sps:$4 sm:$0xff]  }
 0x357   : > { %4189 = vmatprep.subr.bf16.mxu0 %v8015_v55  ;;  %v8081_v55 = vld [vmem:[#allocation7 + $0x664] ss:$8 sps:$4 sm:$0xff]  }
 0x359   : > { %4149 = vmatmul.mubr.bf16.vlgmr.msra.gmra.mrb[32].mxu0 %v9240_v17  ;;  %v8025_v17 = vld [vmem:[#allocation7 + $0x540] ss:$8 sps:$4 sm:$0xff]  }
 0x35a   : > { %4158 = vmatprep.mubr.bf16.mxu0 %v9263_v0  ;;  %4190 = vmatpush1.bf16.msra.mxu0 %v8013_v27  ;;  %v8030_v0 = vld [vmem:[#allocation7 + $0x554] ss:$8 sps:$4 sm:$0xff]   ;;  %v8157_v27 = vld [vmem:[#allocation8 + $0x40] sm:$0xff]  }
 0x35b   : > { %4191 = vmatprep.subr.bf16.mxu0 %v8018_v58  ;;  %v8158_v58 = vld [vmem:[#allocation8] sm:$0xff]   ;;  %7037 = vmatprep.subr.bf16.mxu1 %v8157_v27 }
 0x35c   : > { %7038 = vmatpush3.bf16.msra.mxu1 %v8158_v58  ;;  %v8147_v27 = vld [vmem:[#allocation7 + $0x7c4] ss:$8 sps:$4 sm:$0xff]   ;;  %v8150_v58 = vld [vmem:[#allocation7 + $0x7d4] ss:$8 sps:$4 sm:$0xff]  }
 0x35e   : > { %4192 = vmatpush1.bf16.msra.mxu0 %v8016_v31  ;;  %v8159_v31 = vld [vmem:[#allocation8 + $0x48] sm:$0xff]  }
 0x35f   : > { %4193 = vmatprep.subr.bf16.mxu0 %v8021_v29  ;;  %v8082_v29 = vld [vmem:[#allocation7 + $0x670] ss:$8 sps:$4 sm:$0xff]   ;;  %7039 = vmatprep.subr.bf16.mxu1 %v8159_v31 }
 0x360   : > { %v8148_v31 = vld [vmem:[#allocation7 + $0x7d0] ss:$8 sps:$4 sm:$0xff]  }
 0x361   : > { %4159 = vmatmul.mubr.bf16.gmra.mrb[36].mxu0 %v9260_v18  ;;  %v8031_v18 = vld [vmem:[#allocation7 + $0x560] ss:$8 sps:$4 sm:$0xff]  }
 0x362   : > { %4168 = vmatprep.mubr.bf16.mxu0 %v9283_v21  ;;  %4194 = vmatpush1.bf16.msra.mxu0 %v8019_v9  ;;  %v8036_v21 = vld [vmem:[#allocation7 + $0x574] ss:$8 sps:$4 sm:$0xff]  }
 0x363   : > { %4195 = vmatprep.subr.bf16.mxu0 %v8024_v63  ;;  %v8161_v9 = vld [vmem:[#allocation8 + $0x50] sm:$0xff]   ;;  %v8085_v63 = vld [vmem:[#allocation7 + $0x680] ss:$8 sps:$4 sm:$0xff]  }
 0x366   : > { %4196 = vmatpush1.bf16.msra.mxu0 %v8022_v43  ;;  %v8090_v43 = vld [vmem:[#allocation7 + $0x694] ss:$8 sps:$4 sm:$0xff]  }
 0x367   : > { %4197 = vmatprep.subr.bf16.mxu0 %v8027_v10  ;;  %v8163_v10 = vld [vmem:[#allocation8 + $0x58] sm:$0xff]  }
 0x369   : > { %4169 = vmatmul.mubr.bf16.gmra.mrb[40].mxu0 %v9280_v48  ;;  %v8037_v48 = vld [vmem:[#allocation7 + $0x580] ss:$8 sps:$4 sm:$0xff]  }
 0x36a   : > { %4178 = vmatprep.mubr.bf16.mxu0 %v9306_v25  ;;  %4198 = vmatpush1.bf16.msra.mxu0 %v8025_v17  ;;  %v8042_v25 = vld [vmem:[#allocation7 + $0x594] ss:$8 sps:$4 sm:$0xff]   ;;  %v8088_v17 = vld [vmem:[#allocation7 + $0x690] ss:$8 sps:$4 sm:$0xff]  }
 0x36b   : > { %4199 = vmatprep.subr.bf16.mxu0 %v8030_v0  ;;  %v8164_v0 = vld [vmem:[#allocation8 + $0x18] sm:$0xff]  }
 0x36e   : > { %4200 = vmatpush1.bf16.msra.mxu0 %v8028_v8  ;;  %v8165_v8 = vld [vmem:[#allocation8 + $0x60] sm:$0xff]  }
 0x36f   : > { %4201 = vmatprep.subr.bf16.mxu0 %v8033_v39  ;;  %v8091_v39 = vld [vmem:[#allocation7 + $0x6a0] ss:$8 sps:$4 sm:$0xff]  }
 0x371   : > { %4179 = vmatmul.mubr.bf16.gmra.mrb[44].mxu0 %v9302_v47  ;;  %v8046_v47 = vld [vmem:[#allocation7 + $0x5b0] ss:$8 sps:$4 sm:$0xff]  }
 0x372   : > { %4202 = vmatpush1.bf16.msra.mxu0 %v8031_v18  ;;  %4221 = vmatprep.mubr.bf16.mxu0 %v9332_v50  ;;  %v8049_v50 = vld [vmem:[#allocation7 + $0x5c0] ss:$8 sps:$4 sm:$0xff]   ;;  %v8096_v18 = vld [vmem:[#allocation7 + $0x6b4] ss:$8 sps:$4 sm:$0xff]  }
 0x373   : > { %4203 = vmatprep.subr.bf16.mxu0 %v8036_v21  ;;  %v8166_v21 = vld [vmem:[#allocation8 + $0x20] sm:$0xff]  }
 0x376   : > { %4204 = vmatpush1.bf16.msra.mxu0 %v8034_v34  ;;  %v8167_v34 = vld [vmem:[#allocation8 + $0x68] sm:$0xff]  }
 0x377   : > { %4205 = vmatprep.subr.bf16.mxu0 %v8039_v24  ;;  %v8094_v24 = vld [vmem:[#allocation7 + $0x6b0] ss:$8 sps:$4 sm:$0xff]  }
 0x37a   : > { %4206 = vmatpush1.bf16.msra.mxu0 %v8037_v48  ;;  %v8099_v48 = vld [vmem:[#allocation7 + $0x6c4] ss:$8 sps:$4 sm:$0xff]  }
 0x37b   : > { %4207 = vmatprep.subr.bf16.mxu0 %v8042_v25  ;;  %v8168_v25 = vld [vmem:[#allocation8 + $0x28] sm:$0xff]  }
 0x37e   : > { %4208 = vmatpush1.bf16.msra.mxu0 %v8040_v49  ;;  %v8169_v49 = vld [vmem:[#allocation8 + $0x70] sm:$0xff]  }
 0x37f   : > { %4209 = vmatprep.subr.bf16.mxu0 %v8045_v7  ;;  %v8097_v7 = vld [vmem:[#allocation7 + $0x6c0] ss:$8 sps:$4 sm:$0xff]  }
 0x382   : > { %4210 = vmatpush1.bf16.msra.mxu0 %v8043_v51  ;;  %v8102_v51 = vld [vmem:[#allocation7 + $0x6d4] ss:$8 sps:$4 sm:$0xff]  }
 0x383   : > { %4211 = vmatprep.subr.bf16.mxu0 %v8048_v61  ;;  %v8100_v61 = vld [vmem:[#allocation7 + $0x6d0] ss:$8 sps:$4 sm:$0xff]  }
 0x386   : > { %4212 = vmatpush1.bf16.msra.mxu0 %v8046_v47  ;;  %v8105_v47 = vld [vmem:[#allocation7 + $0x6e4] ss:$8 sps:$4 sm:$0xff]  }
 0x387   : > { %4213 = vmatprep.subr.bf16.mxu0 %v8051_v4  ;;  %v8103_v4 = vld [vmem:[#allocation7 + $0x6e0] ss:$8 sps:$4 sm:$0xff]  }
 0x38a   : > { %4214 = vmatpush1.bf16.msra.mxu0 %v8049_v50  ;;  %v8108_v50 = vld [vmem:[#allocation7 + $0x6f4] ss:$8 sps:$4 sm:$0xff]  }
 0x38b   : > { %4215 = vmatprep.subr.bf16.mxu0 %v8054_v45  ;;  %v8106_v45 = vld [vmem:[#allocation7 + $0x6f0] ss:$8 sps:$4 sm:$0xff]  }
 0x38e   : > { %4216 = vmatpush1.bf16.msra.mxu0 %v8052_v23  ;;  %v8111_v23 = vld [vmem:[#allocation7 + $0x704] ss:$8 sps:$4 sm:$0xff]  }
 0x38f   : > { %4217 = vmatprep.subr.bf16.mxu0 %v8057_v56  ;;  %v8109_v56 = vld [vmem:[#allocation7 + $0x700] ss:$8 sps:$4 sm:$0xff]  }
 0x392   : > { %4218 = vmatpush1.bf16.msra.mxu0 %v8055_v6  ;;  %v8114_v6 = vld [vmem:[#allocation7 + $0x714] ss:$8 sps:$4 sm:$0xff]  }
 0x393   : > { %4219 = vmatprep.subr.bf16.mxu0 %v8060_v11  ;;  %v8112_v11 = vld [vmem:[#allocation7 + $0x710] ss:$8 sps:$4 sm:$0xff]  }
 0x396   : > { %4220 = vmatpush1.bf16.msra.mxu0 %v8058_v62  ;;  %v8117_v62 = vld [vmem:[#allocation7 + $0x724] ss:$8 sps:$4 sm:$0xff]  }
 0x397   : > { %4262 = vmatprep.subr.bf16.mxu0 %v8063_v44  ;;  %v8115_v44 = vld [vmem:[#allocation7 + $0x720] ss:$8 sps:$4 sm:$0xff]  }
 0x399   : > { %4222 = vmatmul.mubr.bf16.vlgmr.msra.gmra.mrb[32].mxu0 %v9330_v46  ;;  %v8073_v46 = vld [vmem:[#allocation7 + $0x640] ss:$8 sps:$4 sm:$0xff]  }
 0x39a   : > { %4231 = vmatprep.mubr.bf16.mxu0 %v9352_v16  ;;  %4263 = vmatpush1.bf16.msra.mxu0 %v8061_v57  ;;  %v8078_v16 = vld [vmem:[#allocation7 + $0x654] ss:$8 sps:$4 sm:$0xff]  }
 0x39b   : > { %4264 = vmatprep.subr.bf16.mxu0 %v8066_v32  ;;  %v8120_v57 = vld [vmem:[#allocation7 + $0x734] ss:$8 sps:$4 sm:$0xff]   ;;  %v8118_v32 = vld [vmem:[#allocation7 + $0x730] ss:$8 sps:$4 sm:$0xff]  }
 0x39e   : > { %4265 = vmatpush1.bf16.msra.mxu0 %v8064_v54  ;;  %v8123_v54 = vld [vmem:[#allocation7 + $0x744] ss:$8 sps:$4 sm:$0xff]  }
 0x39f   : > { %4266 = vmatprep.subr.bf16.mxu0 %v8069_v53  ;;  %v9638_v53 = vmov 0  }
 0x3a1   : > { %4232 = vmatmul.mubr.bf16.gmra.mrb[36].mxu0 %v9350_v1  ;;  %v8079_v1 = vld [vmem:[#allocation7 + $0x660] ss:$8 sps:$4 sm:$0xff]  }
 0x3a2   : > { %4241 = vmatprep.mubr.bf16.mxu0 %v9372_v60  ;;  %4267 = vmatpush1.bf16.msra.mxu0 %v8067_v59  ;;  %v8084_v60 = vld [vmem:[#allocation7 + $0x674] ss:$8 sps:$4 sm:$0xff]   ;;  %v6506_v59 = vcombine.low %v9304_v52, %v9638_v53  ;;  %v8135_v52 = vld [vmem:[#allocation7 + $0x784] ss:$8 sps:$4 sm:$0xff]  }
 0x3a3   : > { %4268 = vmatprep.subr.bf16.mxu0 %v8072_v20  ;;  %v8124_v20 = vld [vmem:[#allocation7 + $0x750] ss:$8 sps:$4 sm:$0xff]  }
 0x3a6   : > { %4269 = vmatpush1.bf16.msra.mxu0 %v8070_v14  ;;  %v6505_v14 = vcombine.low %v9300_v40, %v9638_v53  ;;  %v8144_v40 = vld [vmem:[#allocation7 + $0x7b4] ss:$8 sps:$4 sm:$0xff]  }
 0x3a7   : > { %4270 = vmatprep.subr.bf16.mxu0 %v8075_v41  ;;  %v8132_v41 = vld [vmem:[#allocation7 + $0x774] ss:$8 sps:$4 sm:$0xff]  }
 0x3a9   : > { %4242 = vmatmul.mubr.bf16.gmra.mrb[40].mxu0 %v9370_v36  ;;  %v8087_v36 = vld [vmem:[#allocation7 + $0x684] ss:$8 sps:$4 sm:$0xff]  }
 0x3aa   : > { %4251 = vmatprep.mubr.bf16.mxu0 %v9397_v5  ;;  %4271 = vmatpush1.bf16.msra.mxu0 %v8073_v46  ;;  %v8160_v5 = vld [vmem:[#allocation8 + $0x8] sm:$0xff]   ;;  %v8130_v46 = vld [vmem:[#allocation7 + $0x770] ss:$8 sps:$4 sm:$0xff]  }
 0x3ab   : > { %4272 = vmatprep.subr.bf16.mxu0 %v8078_v16  ;;  %7040 = vmatpush3.bf16.msra.mxu1 %v8160_v5  ;;  %v8138_v16 = vld [vmem:[#allocation7 + $0x794] ss:$8 sps:$4 sm:$0xff]  }
 0x3ac   : > { %7041 = vmatprep.subr.bf16.mxu1 %v8161_v9  ;;  %v8156_v5 = vld [vmem:[#allocation7 + $0x7f4] ss:$8 sps:$4 sm:$0xff]   ;;  %v8154_v9 = vld [vmem:[#allocation7 + $0x7f0] ss:$8 sps:$4 sm:$0xff]  }
 0x3ae   : > { %4273 = vmatpush1.bf16.msra.mxu0 %v8076_v12  ;;  %v8136_v12 = vld [vmem:[#allocation7 + $0x790] ss:$8 sps:$4 sm:$0xff]  }
 0x3af   : > { %4274 = vmatprep.subr.bf16.mxu0 %v8081_v55  ;;  %v8141_v55 = vld [vmem:[#allocation7 + $0x7a4] ss:$8 sps:$4 sm:$0xff]  }
 0x3b1   : > { %4252 = vmatmul.mubr.bf16.gmra.mrb[44].mxu0 %v9393_v3  ;;  %v8162_v3 = vld [vmem:[#allocation8 + $0x10] sm:$0xff]  }
 0x3b2   : > { %4275 = vmatpush1.bf16.msra.mxu0 %v8079_v1  ;;  %4294 = vmatprep.mubr.bf16.mxu0 %v9250_v33  ;;  %v8093_v33 = vld [vmem:[#allocation7 + $0x6a4] ss:$8 sps:$4 sm:$0xff]   ;;  %v8139_v1 = vld [vmem:[#allocation7 + $0x7a0] ss:$8 sps:$4 sm:$0xff]  }
 0x3b3   : > { %4276 = vmatprep.subr.bf16.mxu0 %v8084_v60  ;;  %7042 = vmatpush3.bf16.msra.mxu1 %v8162_v3  ;;  %v8142_v60 = vld [vmem:[#allocation7 + $0x7b0] ss:$8 sps:$4 sm:$0xff]   ;;  %v6507_v3 = vcombine.low %v9391_v38, %v9638_v53 }
 0x3b4   : > { %7043 = vmatprep.subr.bf16.mxu1 %v8163_v10  ;;  %v8170_v10 = vld [vmem:[#allocation8 + $0x30] sm:$0xff]  }
 0x3b6   : > { %4277 = vmatpush1.bf16.msra.mxu0 %v8082_v29  ;;  %v8153_v29 = vld [vmem:[#allocation7 + $0x7e4] ss:$8 sps:$4 sm:$0xff]  }
 0x3b7   : > { %4278 = vmatprep.subr.bf16.mxu0 %v8087_v36  ;;  %7044 = vmatpush3.bf16.msra.mxu1 %v8164_v0  ;;  %v8151_v36 = vld [vmem:[#allocation7 + $0x7e0] ss:$8 sps:$4 sm:$0xff]  }
 0x3b8   : > { %7045 = vmatprep.subr.bf16.mxu1 %v8165_v8 }
 0x3ba   : > { %4279 = vmatpush1.bf16.msra.mxu0 %v8085_v63  ;;  %v9639_v63 = vld [vmem:[#allocation23_spill] sm:$0xff] }
 0x3bb   : > { %4280 = vmatprep.subr.bf16.mxu0 %v8090_v43  ;;  %7046 = vmatpush3.bf16.msra.mxu1 %v8166_v21  ;;  %v6508_v43 = vcombine.low %v9395_v26, %v9638_v53  ;;  %v9640_v26 = vld [vmem:[#allocation20_spill] sm:$0xff] }
 0x3bc   : > { %7047 = vmatprep.subr.bf16.mxu1 %v8167_v34 }
 0x3be   : > { %4281 = vmatpush1.bf16.msra.mxu0 %v8088_v17  ;;  %v8171_v17 = vld [vmem:[#allocation8 + $0x78] sm:$0xff]  }
 0x3bf   : > { %4282 = vmatprep.subr.bf16.mxu0 %v8093_v33  ;;  %7048 = vmatpush3.bf16.msra.mxu1 %v8168_v25 }
 0x3c0   : > { %7049 = vmatprep.subr.bf16.mxu1 %v8169_v49 }
 0x3c2   : > { %4283 = vmatpush1.bf16.msra.mxu0 %v8091_v39 }
 0x3c3   : > { %4284 = vmatprep.subr.bf16.mxu0 %v8096_v18  ;;  %7050 = vmatpush3.bf16.msra.mxu1 %v8170_v10 }
 0x3c4   : > { %7051 = vmatprep.subr.bf16.mxu1 %v8171_v17 }
 0x3c6   : > { %4285 = vmatpush1.bf16.msra.mxu0 %v8094_v24 }
 0x3c7   : > { %4286 = vmatprep.subr.bf16.mxu0 %v8099_v48 }
 0x3ca   : > { %4287 = vmatpush1.bf16.msra.mxu0 %v8097_v7 }
 0x3cb   : > { %4288 = vmatprep.subr.bf16.mxu0 %v8102_v51 }
 0x3ce   : > { %4289 = vmatpush1.bf16.msra.mxu0 %v8100_v61 }
 0x3cf   : > { %4290 = vmatprep.subr.bf16.mxu0 %v8105_v47 }
 0x3d2   : > { %4291 = vmatpush1.bf16.msra.mxu0 %v8103_v4 }
 0x3d3   : > { %4292 = vmatprep.subr.bf16.mxu0 %v8108_v50 }
 0x3d6   : > { %4293 = vmatpush1.bf16.msra.mxu0 %v8106_v45 }
 0x3d7   : > { %4335 = vmatprep.subr.bf16.mxu0 %v8111_v23 }
 0x3d9   : > { %4295 = vmatmul.mubr.bf16.vlgmr.msra.gmra.mrb[32].mxu0 %v9248_v30  ;;  %v8121_v30 = vld [vmem:[#allocation7 + $0x740] ss:$8 sps:$4 sm:$0xff]  }
 0x3da   : > { %4304 = vmatprep.mubr.bf16.mxu0 %v9270_v22  ;;  %4336 = vmatpush1.bf16.msra.mxu0 %v8109_v56  ;;  %v8126_v22 = vld [vmem:[#allocation7 + $0x754] ss:$8 sps:$4 sm:$0xff]  }
 0x3db   : > { %4337 = vmatprep.subr.bf16.mxu0 %v8114_v6 }
 0x3de   : > { %4338 = vmatpush1.bf16.msra.mxu0 %v8112_v11 }
 0x3df   : > { %4339 = vmatprep.subr.bf16.mxu0 %v8117_v62 }
 0x3e1   : > { %4305 = vmatmul.mubr.bf16.gmra.mrb[36].mxu0 %v9268_v35  ;;  %v8129_v35 = vld [vmem:[#allocation7 + $0x764] ss:$8 sps:$4 sm:$0xff]  }
 0x3e2   : > { %4314 = vmatprep.mubr.bf16.mxu0 %v9290_v2  ;;  %4340 = vmatpush1.bf16.msra.mxu0 %v8115_v44  ;;  %v8127_v2 = vld [vmem:[#allocation7 + $0x760] ss:$8 sps:$4 sm:$0xff]  }
 0x3e3   : > { %4341 = vmatprep.subr.bf16.mxu0 %v8120_v57 }
 0x3e6   : > { %4342 = vmatpush1.bf16.msra.mxu0 %v8118_v32 }
 0x3e7   : > { %4343 = vmatprep.subr.bf16.mxu0 %v8123_v54 }
 0x3e9   : > { %4315 = vmatmul.mubr.bf16.gmra.mrb[40].mxu0 %v9288_v37  ;;  %v8133_v37 = vld [vmem:[#allocation7 + $0x780] ss:$8 sps:$4 sm:$0xff]  }
 0x3ea   : > { %4324 = vmatprep.mubr.bf16.mxu0 %v6506_v59  ;;  %4344 = vmatpush1.bf16.msra.mxu0 %v8121_v30  ;;  %v9642_v30 = vld [vmem:[#allocation22_spill] sm:$0xff] }
 0x3eb   : > { %4345 = vmatprep.subr.bf16.mxu0 %v8126_v22  ;;  %v8174_v59 = vld [vmem:[#allocation8 + $0x80] sm:$0xff]  }
 0x3ee   : > { %4346 = vmatpush1.bf16.msra.mxu0 %v8124_v20 }
 0x3ef   : > { %4347 = vmatprep.subr.bf16.mxu0 %v8129_v35 }
 0x3f1   : > { %4325 = vmatmul.mubr.bf16.gmra.mrb[44].mxu0 %v6505_v14  ;;  %v8175_v14 = vld [vmem:[#allocation8 + $0xc8] sm:$0xff]  }
 0x3f2   : > { %4348 = vmatpush1.bf16.msra.mxu0 %v8127_v2  ;;  %4367 = vmatprep.mubr.bf16.mxu0 %v9340_v42  ;;  %v8145_v42 = vld [vmem:[#allocation7 + $0x7c0] ss:$8 sps:$4 sm:$0xff]  }
 0x3f3   : > { %4349 = vmatprep.subr.bf16.mxu0 %v8132_v41 }
 0x3f6   : > { %4350 = vmatpush1.bf16.msra.mxu0 %v8130_v46 }
 0x3f7   : > { %4351 = vmatprep.subr.bf16.mxu0 %v8135_v52 }
 0x3fa   : > { %4352 = vmatpush1.bf16.msra.mxu0 %v8133_v37 }
 0x3fb   : > { %4353 = vmatprep.subr.bf16.mxu0 %v8138_v16 }
 0x3fe   : > { %4354 = vmatpush1.bf16.msra.mxu0 %v8136_v12  ;;  %v8176_v12 = vld [vmem:[#allocation8 + $0x88] sm:$0xff]  }
 0x3ff   : > { %4355 = vmatprep.subr.bf16.mxu0 %v8141_v55 }
 0x402   : > { %4356 = vmatpush1.bf16.msra.mxu0 %v8139_v1 }
 0x403   : > { %4357 = vmatprep.subr.bf16.mxu0 %v8144_v40  ;;  %v8177_v40 = vld [vmem:[#allocation8 + $0xd0] sm:$0xff]  }
 0x406   : > { %4358 = vmatpush1.bf16.msra.mxu0 %v8142_v60 }
 0x407   : > { %4359 = vmatprep.subr.bf16.mxu0 %v8147_v27 }
 0x40a   : > { %4360 = vmatpush1.bf16.msra.mxu0 %v8145_v42 }
 0x40b   : > { %4361 = vmatprep.subr.bf16.mxu0 %v8150_v58 }
 0x40e   : > { %4362 = vmatpush1.bf16.msra.mxu0 %v8148_v31 }
 0x40f   : > { %4363 = vmatprep.subr.bf16.mxu0 %v8153_v29 }
 0x412   : > { %4364 = vmatpush1.bf16.msra.mxu0 %v8151_v36 }
 0x413   : > { %4365 = vmatprep.subr.bf16.mxu0 %v8156_v5  ;;  %v8178_v5 = vld [vmem:[#allocation8 + $0x90] sm:$0xff]  }
 0x416   : > { %4366 = vmatpush1.bf16.msra.mxu0 %v8154_v9 }
 0x419   : > { %4368 = vmatmul.mubr.bf16.vlgmr.msra.gmra.mrb[32].mxu0 %v9338_v19  ;;  %v8172_v19 = vld [vmem:[#allocation8 + $0x38] sm:$0xff]  }
 0x41a   : > { %4377 = vmatprep.mubr.bf16.mxu0 %v9360_v13  ;;  %7052 = vmatpush3.bf16.msra.mxu1 %v8172_v19  ;;  %v8173_v13 = vld [vmem:[#allocation8 + $0xc0] sm:$0xff]  }
 0x41b   : > { %7065 = vmatprep.subr.bf16.mxu1 %v8173_v13 }
 0x421   : > { %4378 = vmatmul.mubr.bf16.gmra.mrb[36].mxu0 %v9639_v63 }
 0x422   : > { %4387 = vmatprep.mubr.bf16.mxu0 %v9380_v28  ;;  %v2404_v28 = vld [vmem:[%s9575_s4] sm:$0x3] }
 0x423   : > { %v9454_v33 = vrot.slane %v2404_v28, %v9640_v26 }
 0x429   : > { %4388 = vmatmul.mubr.bf16.gmra.mrb[40].mxu0 %v9378_v15  ;;  %v9641_v15 = vld [vmem:[#allocation21_spill] sm:$0xff] }
 0x42a   : > { %4397 = vmatprep.mubr.bf16.mxu0 %v6508_v43  ;;  %v9457_v0 = vrot.slane %v2404_v28, %v9641_v15  ;;  %v8179_v43 = vld [vmem:[#allocation8 + $0xd8] sm:$0xff]  }
 0x42b   : > { %v8180_v28 = vld [vmem:[#allocation8 + $0x98] sm:$0xff]  }
 0x431   : > { %4398 = vmatmul.mubr.bf16.gmra.mrb[44].mxu0 %v6507_v3 }
 0x4ec   : > { %v4369_v38 = vpop.f32.mrb[32].mxu0 }
 0x4ed   : > { %v7267_v8 = vadd.f32 %v4369_v38, %v9454_v33  ;;  %v4371_v39 = vpop.f32.mrb[33].mxu0 }
 0x4ee   : > { %v7268_v18 = vadd.f32 %v4371_v39, %v9457_v0  ;;  %v4373_v21 = vpop.f32.mrb[34].mxu0  ;;  %v8181_v39 = vld [vmem:[#allocation8 + $0xe0] sm:$0xff]  }
 0x4ef   : > { %v7269_v34 = vadd.f32 %v4373_v21, %v9454_v33  ;;  %v4375_v24 = vpop.f32.mrb[35].mxu0  ;;  %v4408_v25 = vmax.f32 %v7267_v8, 0.0 }
 0x4f0   : > { %v7270_v48 = vadd.f32 %v4375_v24, %v9457_v0  ;;  %v4409_v7 = vmax.f32 %v7268_v18, 0.0 }
 0x4f1   : > { %v4410_v49 = vmax.f32 %v7269_v34, 0.0 }
 0x4f2   : > { %v4411_v51 = vmax.f32 %v7270_v48, 0.0 }
 0x4f3   : > { %v4424_v61 = vpack.c.bf16 %v4410_v49, %v4408_v25 }
 0x4f4   : > { %v4425_v47 = vpack.c.bf16 %v4411_v51, %v4409_v7  ;;  %v4379_v4 = vpop.f32.mrb[36].mxu0 }
 0x4f5   : > { %v4442_v50 = vunpack.c.h.b16 %v4424_v61  ;;  %v7271_v45 = vadd.f32 %v4379_v4, %v9454_v33  ;;  %v4381_v23 = vpop.f32.mrb[37].mxu0 }
 0x4f6   : > { %v4443_v56 = vunpack.c.h.b16 %v4425_v47  ;;  %v7272_v6 = vadd.f32 %v4381_v23, %v9457_v0  ;;  %v4383_v11 = vpop.f32.mrb[38].mxu0  ;;  %v8183_v47 = vld [vmem:[#allocation8 + $0xe8] sm:$0xff]  }
 0x4f7   : > { %v4412_v62 = vmax.f32 %v7271_v45, 0.0  ;;  %v7273_v44 = vadd.f32 %v4383_v11, %v9454_v33  ;;  %v4385_v57 = vpop.f32.mrb[39].mxu0  ;;  %v4591_v20 = vpack.c.b16 %v4442_v50, %v9642_v30  ;;  %v8186_v11 = vld [vmem:[#allocation8 + $0xb0] sm:$0xff]  }
 0x4f8   : > { %v4413_v32 = vmax.f32 %v7272_v6, 0.0  ;;  %v7274_v54 = vadd.f32 %v4385_v57, %v9457_v0  ;;  %v4592_v22 = vpack.c.b16 %v4443_v56, %v9642_v30  ;;  %v8184_v6 = vld [vmem:[#allocation8 + $0xa8] sm:$0xff]   ;;  %v8189_v57 = vld [vmem:[#allocation8 + $0x140] sm:$0xff]  }
 0x4f9   : > { %v9469_v35 = vpack.c.bf16 %v4412_v62, %v4408_v25  ;;  %v4414_v2 = vmax.f32 %v7273_v44, 0.0  ;;  %v8188_v44 = vld [vmem:[#allocation8 + $0xb8] sm:$0xff]   ;;  %v8192_v30 = vld [vmem:[#allocation8 + $0x108] sm:$0xff]  }
 0x4fa   : > { %v7022_v41 = vpack.c.bf16 %v4413_v32, %v4409_v7  ;;  %v4415_v46 = vmax.f32 %v7274_v54, 0.0  ;;  %5039 = vmatprep.mubr.bf16.mxu1 %v4592_v22  ;;  %v8182_v7 = vld [vmem:[#allocation8 + $0xa0] sm:$0xff]   ;;  %v8191_v54 = vld [vmem:[#allocation8 + $0x148] sm:$0xff]   ;;  %v8193_v22 = vld [vmem:[#allocation8 + $0x150] sm:$0xff]  }
 0x4fb   : > { %v9471_v52 = vpack.c.bf16 %v4414_v2, %v4410_v49  ;;  %5040 = vmatmul.mubr.bf16.vlgmr.msra.gmra.mrb[64].mxu1 %v4591_v20  ;;  %v8195_v20 = vld [vmem:[#allocation8 + $0x158] sm:$0xff]  }
 0x4fc   : > { %v9473_v37 = vpack.c.bf16 %v4415_v46, %v4411_v51  ;;  %7066 = vmatpush3.bf16.msra.mxu1 %v8174_v59  ;;  %v4389_v16 = vpop.f32.mrb[40].mxu0  ;;  %v8194_v59 = vld [vmem:[#allocation8 + $0x110] sm:$0xff]  }
 0x4fd   : > { %v7275_v55 = vadd.f32 %v4389_v16, %v9454_v33  ;;  %v4391_v1 = vpop.f32.mrb[41].mxu0  ;;  %7067 = vmatprep.subr.bf16.mxu1 %v8175_v14  ;;  %v8197_v14 = vld [vmem:[#allocation8 + $0x160] sm:$0xff]   ;;  %v8201_v16 = vld [vmem:[#allocation8 + $0x170] sm:$0xff]  }
 0x4fe   : > { %v7276_v60 = vadd.f32 %v4391_v1, %v9457_v0  ;;  %v4393_v27 = vpop.f32.mrb[42].mxu0  ;;  %v8204_v1 = vld [vmem:[#allocation8 + $0x138] sm:$0xff]  }
 0x4ff   : > { %v4416_v42 = vmax.f32 %v7275_v55, 0.0  ;;  %v7277_v58 = vadd.f32 %v4393_v27, %v9454_v33  ;;  %v4395_v31 = vpop.f32.mrb[43].mxu0  ;;  %v8203_v55 = vld [vmem:[#allocation8 + $0x178] sm:$0xff]   ;;  %v8208_v27 = vld [vmem:[#allocation8 + $0x188] sm:$0xff]  }
 0x500   : > { %v4417_v29 = vmax.f32 %v7276_v60, 0.0  ;;  %v7278_v36 = vadd.f32 %v4395_v31, %v9457_v0  ;;  %7068 = vmatpush3.bf16.msra.mxu1 %v8176_v12  ;;  %v8202_v12 = vld [vmem:[#allocation8 + $0x130] sm:$0xff]   ;;  %v8207_v60 = vld [vmem:[#allocation8 + $0x1c8] sm:$0xff]   ;;  %v8211_v31 = vld [vmem:[#allocation8 + $0x1d8] sm:$0xff]  }
 0x501   : > { %v9479_v9 = vpack.c.bf16 %v4416_v42, %v4412_v62  ;;  %v4418_v63 = vmax.f32 %v7277_v58, 0.0  ;;  %7069 = vmatprep.subr.bf16.mxu1 %v8177_v40  ;;  %v8187_v62 = vld [vmem:[#allocation8 + $0xf8] sm:$0xff]   ;;  %v8205_v40 = vld [vmem:[#allocation8 + $0x1c0] sm:$0xff]   ;;  %v8210_v58 = vld [vmem:[#allocation8 + $0x190] sm:$0xff]  }
 0x502   : > { %v9481_v3 = vpack.c.bf16 %v4417_v29, %v4413_v32  ;;  %v4419_v10 = vmax.f32 %v7278_v36, 0.0  ;;  %v8190_v32 = vld [vmem:[#allocation8 + $0x100] sm:$0xff]  }
 0x503   : > { %v7027_v17 = vpack.c.bf16 %v4418_v63, %v4414_v2  ;;  %v8196_v2 = vld [vmem:[#allocation8 + $0x118] sm:$0xff]   ;;  %v8213_v36 = vld [vmem:[#allocation8 + $0x1e0] sm:$0xff]  }
 0x504   : > { %v7028_v19 = vpack.c.bf16 %v4419_v10, %v4415_v46  ;;  %7070 = vmatpush3.bf16.msra.mxu1 %v8178_v5  ;;  %v4399_v13 = vpop.f32.mrb[44].mxu0  ;;  %v8200_v46 = vld [vmem:[#allocation8 + $0x128] sm:$0xff]   ;;  %v8214_v5 = vld [vmem:[#allocation8 + $0x1a0] sm:$0xff]  }
 0x505   : > { %v7279_v38 = vadd.f32 %v4399_v13, %v9454_v33  ;;  %v4401_v8 = vpop.f32.mrb[45].mxu0  ;;  %7071 = vmatprep.subr.bf16.mxu1 %v8179_v43  ;;  %v8217_v43 = vld [vmem:[#allocation8 + $0x1f0] sm:$0xff]  }
 0x506   : > { %v7280_v18 = vadd.f32 %v4401_v8, %v9457_v0  ;;  %v4403_v21 = vpop.f32.mrb[46].mxu0  ;;  %5047 = vmatprep.mubr.bf16.mxu1 %v7028_v19  ;;  %v8220_v19 = vld [vmem:[#allocation8 + $0x1b8] sm:$0xff]  }
 0x507   : > { %v4420_v34 = vmax.f32 %v7279_v38, 0.0  ;;  %v7281_v24 = vadd.f32 %v4403_v21, %v9454_v33  ;;  %v4405_v48 = vpop.f32.mrb[47].mxu0  ;;  %5048 = vmatmul.mubr.bf16.gmra.mrb[68].mxu1 %v7027_v17  ;;  %v8219_v17 = vld [vmem:[#allocation8 + $0x1f8] sm:$0xff]   ;;  %v8221_v38 = vld [vmem:[#allocation10] ss:$8 sps:$4 sm:$0xff]  }
 0x508   : > { %v4421_v25 = vmax.f32 %v7280_v18, 0.0  ;;  %v7282_v49 = vadd.f32 %v4405_v48, %v9457_v0  ;;  %7072 = vmatpush3.bf16.msra.mxu1 %v8180_v28  ;;  %5088 = vmatprep.mubr.bf16.mxu1 %v7022_v41  ;;  %v8185_v0 = vld [vmem:[#allocation8 + $0xf0] sm:$0xff]   ;;  %v8198_v41 = vld [vmem:[#allocation8 + $0x120] sm:$0xff]  }
 0x509   : > { %v7029_v51 = vpack.c.bf16 %v4420_v34, %v4416_v42  ;;  %v4422_v61 = vmax.f32 %v7281_v24, 0.0  ;;  %7073 = vmatprep.subr.bf16.mxu1 %v8181_v39  ;;  %v8209_v42 = vld [vmem:[#allocation8 + $0x1d0] sm:$0xff]   ;;  %v8223_v28 = vld [vmem:[#allocation10 + $0x4] ss:$8 sps:$4 sm:$0xff]   ;;  %v8227_v21 = vld [vmem:[#allocation10 + $0x20] ss:$8 sps:$4 sm:$0xff]  }
 0x50a   : > { %v7030_v4 = vpack.c.bf16 %v4421_v25, %v4417_v29  ;;  %v4423_v50 = vmax.f32 %v7282_v49, 0.0  ;;  %v8212_v29 = vld [vmem:[#allocation8 + $0x198] sm:$0xff]   ;;  %v8229_v18 = vld [vmem:[#allocation10 + $0x24] ss:$8 sps:$4 sm:$0xff]   ;;  %v8233_v48 = vld [vmem:[#allocation10 + $0x40] ss:$8 sps:$4 sm:$0xff]  }
 0x50b   : > { %v9487_v45 = vpack.c.bf16 %v4422_v61, %v4420_v34  ;;  %v9489_v23 = vpack.c.bf16 %v4422_v61, %v4418_v63  ;;  %v8216_v63 = vld [vmem:[#allocation8 + $0x1a8] sm:$0xff]   ;;  %v8224_v8 = vld [vmem:[#allocation10 + $0x10] ss:$8 sps:$4 sm:$0xff]   ;;  %v8226_v39 = vld [vmem:[#allocation10 + $0x14] ss:$8 sps:$4 sm:$0xff]  }
 0x50c   : > { %v9491_v56 = vpack.c.bf16 %v4423_v50, %v4421_v25  ;;  %v7032_v33 = vpack.c.bf16 %v4423_v50, %v4419_v10  ;;  %7074 = vmatpush3.bf16.msra.mxu1 %v8182_v7  ;;  %v8218_v10 = vld [vmem:[#allocation8 + $0x1b0] sm:$0xff]   ;;  %v8241_v49 = vld [vmem:[#allocation10 + $0x64] ss:$8 sps:$4 sm:$0xff]   ;;  %v8239_v7 = vld [vmem:[#allocation10 + $0x60] ss:$8 sps:$4 sm:$0xff]  }
 0x50d   : > { %7075 = vmatprep.subr.bf16.mxu1 %v8183_v47  ;;  %v6778_v13 = vcombine.low %v9487_v45, %v9638_v53  ;;  %v8232_v34 = vld [vmem:[#allocation10 + $0x34] ss:$8 sps:$4 sm:$0xff]   ;;  %v8230_v24 = vld [vmem:[#allocation10 + $0x30] ss:$8 sps:$4 sm:$0xff]   ;;  %v8247_v47 = vld [vmem:[#allocation10 + $0x84] ss:$8 sps:$4 sm:$0xff]  }
 0x50e   : > { %v8236_v25 = vld [vmem:[#allocation10 + $0x50] ss:$8 sps:$4 sm:$0xff]   ;;  %v8250_v45 = vld [vmem:[#allocation10 + $0x94] ss:$8 sps:$4 sm:$0xff]  }
 0x50f   : > { %v8242_v61 = vld [vmem:[#allocation10 + $0x70] ss:$8 sps:$4 sm:$0xff]  }
 0x510   : > { %7076 = vmatpush3.bf16.msra.mxu1 %v8184_v6  ;;  %v8248_v50 = vld [vmem:[#allocation10 + $0x90] ss:$8 sps:$4 sm:$0xff]  }
 0x511   : > { %7077 = vmatprep.subr.bf16.mxu1 %v8185_v0  ;;  %v8254_v6 = vld [vmem:[#allocation10 + $0xb0] ss:$8 sps:$4 sm:$0xff]   ;;  %v8259_v0 = vld [vmem:[#allocation10 + $0xc4] ss:$8 sps:$4 sm:$0xff]  }
 0x514   : > { %7078 = vmatpush3.bf16.msra.mxu1 %v8186_v11  ;;  %v8257_v11 = vld [vmem:[#allocation10 + $0xc0] ss:$8 sps:$4 sm:$0xff]  }
 0x515   : > { %7079 = vmatprep.subr.bf16.mxu1 %v8187_v62  ;;  %v8262_v62 = vld [vmem:[#allocation10 + $0xd4] ss:$8 sps:$4 sm:$0xff]  }
 0x518   : > { %7080 = vmatpush3.bf16.msra.mxu1 %v8188_v44  ;;  %v8260_v44 = vld [vmem:[#allocation10 + $0xd0] ss:$8 sps:$4 sm:$0xff]  }
 0x519   : > { %7093 = vmatprep.subr.bf16.mxu1 %v8189_v57  ;;  %v8265_v57 = vld [vmem:[#allocation10 + $0xe4] ss:$8 sps:$4 sm:$0xff]  }
 0x51b   : > { %5089 = vmatmul.mubr.bf16.vlgmr.msra.gmra.mrb[72].mxu1 %v9469_v35  ;;  %v8199_v35 = vld [vmem:[#allocation8 + $0x168] sm:$0xff]  }
 0x51c   : > { %5096 = vmatprep.mubr.bf16.mxu1 %v7030_v4  ;;  %7094 = vmatpush3.bf16.msra.mxu1 %v8190_v32  ;;  %v8245_v4 = vld [vmem:[#allocation10 + $0x80] ss:$8 sps:$4 sm:$0xff]  }
 0x51d   : > { %7095 = vmatprep.subr.bf16.mxu1 %v8191_v54  ;;  %v8263_v32 = vld [vmem:[#allocation10 + $0xe0] ss:$8 sps:$4 sm:$0xff]   ;;  %v8268_v54 = vld [vmem:[#allocation10 + $0xf4] ss:$8 sps:$4 sm:$0xff]  }
 0x520   : > { %7096 = vmatpush3.bf16.msra.mxu1 %v8192_v30  ;;  %v8266_v30 = vld [vmem:[#allocation10 + $0xf0] ss:$8 sps:$4 sm:$0xff]  }
 0x521   : > { %7097 = vmatprep.subr.bf16.mxu1 %v8193_v22  ;;  %v8271_v22 = vld [vmem:[#allocation10 + $0x104] ss:$8 sps:$4 sm:$0xff]  }
 0x523   : > { %5097 = vmatmul.mubr.bf16.gmra.mrb[76].mxu1 %v7029_v51  ;;  %v8244_v51 = vld [vmem:[#allocation10 + $0x74] ss:$8 sps:$4 sm:$0xff]  }
 0x524   : > { %7098 = vmatpush3.bf16.msra.mxu1 %v8194_v59  ;;  %5137 = vmatprep.mubr.bf16.mxu1 %v9473_v37  ;;  %v8206_v37 = vld [vmem:[#allocation8 + $0x180] sm:$0xff]  }
 0x525   : > { %7099 = vmatprep.subr.bf16.mxu1 %v8195_v20 }
 0x528   : > { %7100 = vmatpush3.bf16.msra.mxu1 %v8196_v2 }
 0x529   : > { %7101 = vmatprep.subr.bf16.mxu1 %v8197_v14 }
 0x52c   : > { %7102 = vmatpush3.bf16.msra.mxu1 %v8198_v41 }
 0x52d   : > { %7103 = vmatprep.subr.bf16.mxu1 %v8199_v35 }
 0x530   : > { %7104 = vmatpush3.bf16.msra.mxu1 %v8200_v46 }
 0x531   : > { %7105 = vmatprep.subr.bf16.mxu1 %v8201_v16 }
 0x534   : > { %7106 = vmatpush3.bf16.msra.mxu1 %v8202_v12 }
 0x535   : > { %7107 = vmatprep.subr.bf16.mxu1 %v8203_v55 }
 0x538   : > { %7108 = vmatpush3.bf16.msra.mxu1 %v8204_v1  ;;  %v6765_v1 = vld [vmem:[%s9577_s6] ss:$0 sm:$0xff] }
 0x539   : > { %7121 = vmatprep.subr.bf16.mxu1 %v8205_v40 }
 0x53b   : > { %5138 = vmatmul.mubr.bf16.vlgmr.msra.gmra.mrb[80].mxu1 %v9471_v52  ;;  %v8215_v52 = vld [vmem:[#allocation8 + $0x1e8] sm:$0xff]  }
 0x53c   : > { %5145 = vmatprep.mubr.bf16.mxu1 %v7032_v33  ;;  %7122 = vmatpush3.bf16.msra.mxu1 %v8206_v37  ;;  %v8256_v33 = vld [vmem:[#allocation10 + $0xb4] ss:$8 sps:$4 sm:$0xff]  }
 0x53d   : > { %7123 = vmatprep.subr.bf16.mxu1 %v8207_v60 }
 0x540   : > { %7124 = vmatpush3.bf16.msra.mxu1 %v8208_v27 }
 0x541   : > { %7125 = vmatprep.subr.bf16.mxu1 %v8209_v42 }
 0x543   : > { %5146 = vmatmul.mubr.bf16.gmra.mrb[84].mxu1 %v9489_v23  ;;  %v8253_v23 = vld [vmem:[#allocation10 + $0xa4] ss:$8 sps:$4 sm:$0xff]  }
 0x544   : > { %7126 = vmatpush3.bf16.msra.mxu1 %v8210_v58  ;;  %5186 = vmatprep.mubr.bf16.mxu1 %v9481_v3  ;;  %v6779_v3 = vcombine.low %v9491_v56, %v9638_v53  ;;  %v8238_v53 = vld [vmem:[#allocation10 + $0x54] ss:$8 sps:$4 sm:$0xff]   ;;  %v8251_v56 = vld [vmem:[#allocation10 + $0xa0] ss:$8 sps:$4 sm:$0xff]  }
 0x545   : > { %7127 = vmatprep.subr.bf16.mxu1 %v8211_v31 }
 0x548   : > { %7128 = vmatpush3.bf16.msra.mxu1 %v8212_v29 }
 0x549   : > { %7129 = vmatprep.subr.bf16.mxu1 %v8213_v36 }
 0x54c   : > { %7130 = vmatpush3.bf16.msra.mxu1 %v8214_v5 }
 0x54d   : > { %7131 = vmatprep.subr.bf16.mxu1 %v8215_v52 }
 0x550   : > { %7132 = vmatpush3.bf16.msra.mxu1 %v8216_v63 }
 0x551   : > { %7133 = vmatprep.subr.bf16.mxu1 %v8217_v43 }
 0x554   : > { %7134 = vmatpush3.bf16.msra.mxu1 %v8218_v10 }
 0x555   : > { %7135 = vmatprep.subr.bf16.mxu1 %v8219_v17 }
 0x558   : > { %7136 = vmatpush3.bf16.msra.mxu1 %v8220_v19 }
 0x559   : > { %5619 = vmatprep.subr.bf16.mxu1 %v8223_v28 }
 0x55b   : > { %5187 = vmatmul.mubr.bf16.vlgmr.msra.gmra.mrb[88].mxu1 %v9479_v9  ;;  %v8235_v9 = vld [vmem:[#allocation10 + $0x44] ss:$8 sps:$4 sm:$0xff]  }
 0x55c   : > { %5194 = vmatprep.mubr.bf16.mxu1 %v6779_v3  ;;  %5620 = vmatpush1.bf16.msra.mxu1 %v8221_v38 }
 0x55d   : > { %5621 = vmatprep.subr.bf16.mxu1 %v8226_v39 }
 0x560   : > { %5622 = vmatpush1.bf16.msra.mxu1 %v8224_v8 }
 0x561   : > { %5623 = vmatprep.subr.bf16.mxu1 %v8229_v18 }
 0x563   : > { %5195 = vmatmul.mubr.bf16.gmra.mrb[92].mxu1 %v6778_v13 }
 0x564   : > { %5624 = vmatpush1.bf16.msra.mxu1 %v8227_v21 }
 0x565   : > { %5625 = vmatprep.subr.bf16.mxu1 %v8232_v34 }
 0x568   : > { %5626 = vmatpush1.bf16.msra.mxu1 %v8230_v24 }
 0x569   : > { %5627 = vmatprep.subr.bf16.mxu1 %v8235_v9 }
 0x56c   : > { %5628 = vmatpush1.bf16.msra.mxu1 %v8233_v48 }
 0x56d   : > { %5629 = vmatprep.subr.bf16.mxu1 %v8238_v53 }
 0x570   : > { %5630 = vmatpush1.bf16.msra.mxu1 %v8236_v25 }
 0x571   : > { %5631 = vmatprep.subr.bf16.mxu1 %v8241_v49 }
 0x574   : > { %5632 = vmatpush1.bf16.msra.mxu1 %v8239_v7 }
 0x575   : > { %5633 = vmatprep.subr.bf16.mxu1 %v8244_v51 }
 0x578   : > { %5634 = vmatpush1.bf16.msra.mxu1 %v8242_v61 }
 0x579   : > { %5635 = vmatprep.subr.bf16.mxu1 %v8247_v47 }
 0x57c   : > { %5636 = vmatpush1.bf16.msra.mxu1 %v8245_v4 }
 0x57d   : > { %5637 = vmatprep.subr.bf16.mxu1 %v8250_v45 }
 0x580   : > { %5638 = vmatpush1.bf16.msra.mxu1 %v8248_v50 }
 0x581   : > { %5639 = vmatprep.subr.bf16.mxu1 %v8253_v23 }
 0x584   : > { %5640 = vmatpush1.bf16.msra.mxu1 %v8251_v56 }
 0x585   : > { %5641 = vmatprep.subr.bf16.mxu1 %v8256_v33 }
 0x588   : > { %5642 = vmatpush1.bf16.msra.mxu1 %v8254_v6 }
 0x589   : > { %5643 = vmatprep.subr.bf16.mxu1 %v8259_v0 }
 0x58c   : > { %5644 = vmatpush1.bf16.msra.mxu1 %v8257_v11 }
 0x58d   : > { %5645 = vmatprep.subr.bf16.mxu1 %v8262_v62 }
 0x590   : > { %5646 = vmatpush1.bf16.msra.mxu1 %v8260_v44 }
 0x591   : > { %5647 = vmatprep.subr.bf16.mxu1 %v8265_v57 }
 0x594   : > { %5648 = vmatpush1.bf16.msra.mxu1 %v8263_v32 }
 0x595   : > { %5649 = vmatprep.subr.bf16.mxu1 %v8268_v54 }
 0x598   : > { %5650 = vmatpush1.bf16.msra.mxu1 %v8266_v30 }
 0x599   : > { %5660 = vmatprep.subr.bf16.mxu1 %v8271_v22 }
 0x5ce   : > { %v7053_v59 = vpop.f32.mrb[64].mxu1 }
 0x5cf   : > { %v7054_v20 = vpop.f32.mrb[65].mxu1 }
 0x5d0   : > { %v7055_v2 = vadd.f32 %v7054_v20, %v7053_v59  ;;  %v7056_v14 = vpop.f32.mrb[66].mxu1 }
 0x5d1   : > { %v7057_v41 = vpop.f32.mrb[67].mxu1 }
 0x5d2   : > { %v7058_v35 = vadd.f32 %v7057_v41, %v7056_v14  ;;  %v5042_v58 = vadd.f32 %v7055_v2, %v6765_v1  ;;  %v8269_v2 = vld [vmem:[#allocation10 + $0x100] ss:$8 sps:$4 sm:$0xff]  }
 0x5d4   : > { %v5045_v5 = vadd.f32 %v7058_v35, %v6765_v1  ;;  %v8274_v35 = vld [vmem:[#allocation10 + $0x114] ss:$8 sps:$4 sm:$0xff]  }
 0x5da   : > { %v7059_v46 = vpop.f32.mrb[68].mxu1 }
 0x5db   : > { %v7060_v16 = vpop.f32.mrb[69].mxu1 }
 0x5dc   : > { %v7061_v12 = vadd.f32 %v7060_v16, %v7059_v46  ;;  %v7062_v55 = vpop.f32.mrb[70].mxu1 }
 0x5dd   : > { %v7063_v40 = vpop.f32.mrb[71].mxu1 }
 0x5de   : > { %v5050_v37 = vadd.f32 %v7061_v12, %v6765_v1  ;;  %v7064_v60 = vadd.f32 %v7063_v40, %v7062_v55  ;;  %v8272_v55 = vld [vmem:[#allocation10 + $0x110] ss:$8 sps:$4 sm:$0xff]  }
 0x5e0   : > { %v5053_v28 = vadd.f32 %v7064_v60, %v6765_v1  ;;  %v8277_v1 = vld [vmem:[#allocation10 + $0x124] ss:$8 sps:$4 sm:$0xff]   ;;  %v8275_v60 = vld [vmem:[#allocation10 + $0x120] ss:$8 sps:$4 sm:$0xff]  }
 0x5ee   : > { %v7081_v27 = vpop.f32.mrb[72].mxu1 }
 0x5ef   : > { %v7082_v42 = vpop.f32.mrb[73].mxu1 }
 0x5f0   : > { %v7083_v31 = vadd.f32 %v7082_v42, %v7081_v27  ;;  %v7084_v29 = vpop.f32.mrb[74].mxu1  ;;  %v8280_v27 = vld [vmem:[#allocation10 + $0x134] ss:$8 sps:$4 sm:$0xff]   ;;  %v8278_v42 = vld [vmem:[#allocation10 + $0x130] ss:$8 sps:$4 sm:$0xff]  }
 0x5f1   : > { %v7085_v36 = vpop.f32.mrb[75].mxu1 }
 0x5f2   : > { %v5091_v52 = vadd.f32 %v7083_v31, %v5042_v58  ;;  %v7086_v63 = vadd.f32 %v7085_v36, %v7084_v29  ;;  %v8283_v58 = vld [vmem:[#allocation10 + $0x144] ss:$8 sps:$4 sm:$0xff]   ;;  %v8281_v31 = vld [vmem:[#allocation10 + $0x140] ss:$8 sps:$4 sm:$0xff]   ;;  %v8286_v29 = vld [vmem:[#allocation10 + $0x154] ss:$8 sps:$4 sm:$0xff]  }
 0x5f3   : > { %v8284_v36 = vld [vmem:[#allocation10 + $0x150] ss:$8 sps:$4 sm:$0xff]  }
 0x5f4   : > { %v5094_v43 = vadd.f32 %v7086_v63, %v5045_v5  ;;  %v8289_v5 = vld [vmem:[#allocation10 + $0x164] ss:$8 sps:$4 sm:$0xff]   ;;  %v8292_v63 = vld [vmem:[#allocation10 + $0x174] ss:$8 sps:$4 sm:$0xff]  }
 0x5f6   : > { %v7087_v10 = vpop.f32.mrb[76].mxu1 }
 0x5f7   : > { %v7088_v17 = vpop.f32.mrb[77].mxu1 }
 0x5f8   : > { %v7089_v19 = vadd.f32 %v7088_v17, %v7087_v10  ;;  %v7090_v3 = vpop.f32.mrb[78].mxu1  ;;  %v8295_v10 = vld [vmem:[#allocation10 + $0x184] ss:$8 sps:$4 sm:$0xff]   ;;  %v8293_v17 = vld [vmem:[#allocation10 + $0x180] ss:$8 sps:$4 sm:$0xff]  }
 0x5f9   : > { %v7091_v13 = vpop.f32.mrb[79].mxu1 }
 0x5fa   : > { %v5099_v38 = vadd.f32 %v7089_v19, %v5050_v37  ;;  %v7092_v8 = vadd.f32 %v7091_v13, %v7090_v3  ;;  %v8298_v19 = vld [vmem:[#allocation10 + $0x194] ss:$8 sps:$4 sm:$0xff]   ;;  %v8296_v3 = vld [vmem:[#allocation10 + $0x190] ss:$8 sps:$4 sm:$0xff]   ;;  %v8301_v13 = vld [vmem:[#allocation10 + $0x1a4] ss:$8 sps:$4 sm:$0xff]  }
 0x5fc   : > { %v5102_v39 = vadd.f32 %v7092_v8, %v5053_v28  ;;  %v8299_v28 = vld [vmem:[#allocation10 + $0x1a0] ss:$8 sps:$4 sm:$0xff]   ;;  %v8302_v8 = vld [vmem:[#allocation10 + $0x1b0] ss:$8 sps:$4 sm:$0xff]  }
 0x60e   : > { %v7109_v18 = vpop.f32.mrb[80].mxu1 }
 0x60f   : > { %v7110_v21 = vpop.f32.mrb[81].mxu1 }
 0x610   : > { %v7111_v34 = vadd.f32 %v7110_v21, %v7109_v18  ;;  %v7112_v24 = vpop.f32.mrb[82].mxu1  ;;  %v8305_v18 = vld [vmem:[#allocation10 + $0x1c0] ss:$8 sps:$4 sm:$0xff]   ;;  %v8310_v21 = vld [vmem:[#allocation10 + $0x1d4] ss:$8 sps:$4 sm:$0xff]  }
 0x611   : > { %v7113_v9 = vpop.f32.mrb[83].mxu1 }
 0x612   : > { %v5140_v48 = vadd.f32 %v7111_v34, %v5091_v52  ;;  %v7114_v53 = vadd.f32 %v7113_v9, %v7112_v24  ;;  %v8287_v52 = vld [vmem:[#allocation10 + $0x160] ss:$8 sps:$4 sm:$0xff]   ;;  %v8308_v34 = vld [vmem:[#allocation10 + $0x1d0] ss:$8 sps:$4 sm:$0xff]   ;;  %v8313_v24 = vld [vmem:[#allocation10 + $0x1e4] ss:$8 sps:$4 sm:$0xff]  }
 0x613   : > { %v8311_v9 = vld [vmem:[#allocation10 + $0x1e0] ss:$8 sps:$4 sm:$0xff]  }
 0x614   : > { %v5143_v25 = vadd.f32 %v7114_v53, %v5094_v43  ;;  %v8290_v43 = vld [vmem:[#allocation10 + $0x170] ss:$8 sps:$4 sm:$0xff]  }
 0x615   : > { %v8314_v53 = vld [vmem:[#allocation10 + $0x1f0] ss:$8 sps:$4 sm:$0xff]  }
 0x616   : > { %v7115_v49 = vpop.f32.mrb[84].mxu1 }
 0x617   : > { %v7116_v7 = vpop.f32.mrb[85].mxu1 }
 0x618   : > { %v7117_v51 = vadd.f32 %v7116_v7, %v7115_v49  ;;  %v7118_v61 = vpop.f32.mrb[86].mxu1  ;;  %v8319_v49 = vld [vmem:[#allocation11 + $0x4] ss:$8 sps:$4 sm:$0xff]   ;;  %v8317_v7 = vld [vmem:[#allocation11] ss:$8 sps:$4 sm:$0xff]  }
 0x619   : > { %v7119_v47 = vpop.f32.mrb[87].mxu1 }
 0x61a   : > { %v5148_v4 = vadd.f32 %v7117_v51, %v5099_v38  ;;  %v7120_v50 = vadd.f32 %v7119_v47, %v7118_v61  ;;  %v8304_v38 = vld [vmem:[#allocation10 + $0x1b4] ss:$8 sps:$4 sm:$0xff]   ;;  %v8320_v47 = vld [vmem:[#allocation11 + $0x10] ss:$8 sps:$4 sm:$0xff]  }
 0x61b   : > { %v8322_v61 = vld [vmem:[#allocation11 + $0x14] ss:$8 sps:$4 sm:$0xff]  }
 0x61c   : > { %v5151_v45 = vadd.f32 %v7120_v50, %v5102_v39  ;;  %v8307_v39 = vld [vmem:[#allocation10 + $0x1c4] ss:$8 sps:$4 sm:$0xff]   ;;  %v8323_v50 = vld [vmem:[#allocation11 + $0x20] ss:$8 sps:$4 sm:$0xff]  }
 0x62e   : > { %v7137_v23 = vpop.f32.mrb[88].mxu1 }
 0x62f   : > { %v7138_v56 = vpop.f32.mrb[89].mxu1 }
 0x630   : > { %v7139_v33 = vadd.f32 %v7138_v56, %v7137_v23  ;;  %v7140_v6 = vpop.f32.mrb[90].mxu1  ;;  %v8326_v23 = vld [vmem:[#allocation11 + $0x30] ss:$8 sps:$4 sm:$0xff]   ;;  %v8331_v56 = vld [vmem:[#allocation11 + $0x44] ss:$8 sps:$4 sm:$0xff]  }
 0x631   : > { %v7141_v0 = vpop.f32.mrb[91].mxu1 }
 0x632   : > { %v5189_v11 = vadd.f32 %v7139_v33, %v5140_v48  ;;  %v7142_v62 = vadd.f32 %v7141_v0, %v7140_v6  ;;  %v8316_v48 = vld [vmem:[#allocation10 + $0x1f4] ss:$8 sps:$4 sm:$0xff]   ;;  %v8329_v33 = vld [vmem:[#allocation11 + $0x40] ss:$8 sps:$4 sm:$0xff]   ;;  %v8332_v0 = vld [vmem:[#allocation11 + $0x50] ss:$8 sps:$4 sm:$0xff]  }
 0x633   : > { %v8334_v6 = vld [vmem:[#allocation11 + $0x54] ss:$8 sps:$4 sm:$0xff]  }
 0x634   : > { %v5192_v44 = vadd.f32 %v7142_v62, %v5143_v25  ;;  %v5203_v57 = vmax.f32 %v5189_v11, 0.0  ;;  %v8337_v11 = vld [vmem:[#allocation11 + $0x64] ss:$8 sps:$4 sm:$0xff]   ;;  %v8335_v62 = vld [vmem:[#allocation11 + $0x60] ss:$8 sps:$4 sm:$0xff]  }
 0x636   : > { %v5204_v32 = vmax.f32 %v5192_v44, 0.0  ;;  %v7143_v54 = vpop.f32.mrb[92].mxu1  ;;  %v7033_v14 = vpack.c.bf16 %v5203_v57, %v5203_v57  ;;  %v8340_v44 = vld [vmem:[#allocation11 + $0x74] ss:$8 sps:$4 sm:$0xff]   ;;  %v8338_v57 = vld [vmem:[#allocation11 + $0x70] ss:$8 sps:$4 sm:$0xff]  }
 0x637   : > { %v7144_v30 = vpop.f32.mrb[93].mxu1 }
 0x638   : > { %v7034_v22 = vpack.c.bf16 %v5204_v32, %v5204_v32  ;;  %v7145_v59 = vadd.f32 %v7144_v30, %v7143_v54  ;;  %v7146_v20 = vpop.f32.mrb[94].mxu1  ;;  %v8343_v32 = vld [vmem:[#allocation11 + $0x84] ss:$8 sps:$4 sm:$0xff]   ;;  %v8341_v54 = vld [vmem:[#allocation11 + $0x80] ss:$8 sps:$4 sm:$0xff]  }
 0x639   : > { %v7147_v41 = vpop.f32.mrb[95].mxu1  ;;  %v8346_v30 = vld [vmem:[#allocation11 + $0x94] ss:$8 sps:$4 sm:$0xff]  }
 0x63a   : > { %v9506_v46 = vadd.f32 %v7145_v59, %v5148_v4  ;;  %v7148_v16 = vadd.f32 %v7147_v41, %v7146_v20  ;;  %5651 = vmatprep.mubr.bf16.mxu1 %v7034_v22  ;;  %v8325_v4 = vld [vmem:[#allocation11 + $0x24] ss:$8 sps:$4 sm:$0xff]   ;;  %v8344_v22 = vld [vmem:[#allocation11 + $0x90] ss:$8 sps:$4 sm:$0xff]   ;;  %v8347_v20 = vld [vmem:[#allocation11 + $0xa0] ss:$8 sps:$4 sm:$0xff]  }
 0x63b   : > { %5652 = vmatmul.mubr.bf16.vlgmr.msra.gmra.mrb[96].mxu1 %v7033_v14  ;;  %v8349_v59 = vld [vmem:[#allocation11 + $0xa4] ss:$8 sps:$4 sm:$0xff]   ;;  %v8350_v14 = vld [vmem:[#allocation11 + $0xb0] ss:$8 sps:$4 sm:$0xff]  }
 0x63c   : > { %v5200_v12 = vadd.f32 %v7148_v16, %v5151_v45  ;;  %5661 = vmatpush1.bf16.msra.mxu1 %v8269_v2  ;;  %v5205_v25 = vmax.f32 %v9506_v46, 0.0  ;;  %v8328_v45 = vld [vmem:[#allocation11 + $0x34] ss:$8 sps:$4 sm:$0xff]   ;;  %v8355_v41 = vld [vmem:[#allocation11 + $0xc4] ss:$8 sps:$4 sm:$0xff]  }
 0x63d   : > { %5662 = vmatprep.subr.bf16.mxu1 %v8274_v35  ;;  %v8352_v2 = vld [vmem:[#allocation11 + $0xb4] ss:$8 sps:$4 sm:$0xff]   ;;  %v8353_v35 = vld [vmem:[#allocation11 + $0xc0] ss:$8 sps:$4 sm:$0xff]   ;;  %v8356_v16 = vld [vmem:[#allocation11 + $0xd0] ss:$8 sps:$4 sm:$0xff]  }
 0x63e   : > { %v5206_v40 = vmax.f32 %v5200_v12, 0.0  ;;  %v7035_v51 = vpack.c.bf16 %v5205_v25, %v5205_v25  ;;  %v8358_v46 = vld [vmem:[#allocation11 + $0xd4] ss:$8 sps:$4 sm:$0xff]   ;;  %v8361_v12 = vld [vmem:[#allocation11 + $0xe4] ss:$8 sps:$4 sm:$0xff]  }
 0x63f   : > { %v8380_v25 = vld [vmem:[#allocation13 + $0x38] sm:$0xff]  }
 0x640   : > { %v7036_v37 = vpack.c.bf16 %v5206_v40, %v5206_v40  ;;  %5663 = vmatpush1.bf16.msra.mxu1 %v8272_v55  ;;  %v8359_v55 = vld [vmem:[#allocation11 + $0xe0] ss:$8 sps:$4 sm:$0xff]   ;;  %v8362_v40 = vld [vmem:[#allocation11 + $0xf0] ss:$8 sps:$4 sm:$0xff]  }
 0x641   : > { %5664 = vmatprep.subr.bf16.mxu1 %v8277_v1  ;;  %v8364_v1 = vld [vmem:[#allocation11 + $0xf4] ss:$8 sps:$4 sm:$0xff]  }
 0x642   : > { %5692 = vmatprep.mubr.bf16.mxu1 %v7036_v37  ;;  %v8365_v37 = vld [vmem:[#allocation13 + $0x40] sm:$0xff]  }
 0x644   : > { %5665 = vmatpush1.bf16.msra.mxu1 %v8275_v60  ;;  %v5287_v60 = vld [vmem:[%s9643_s30] sm:$0x3]  ;;  %s8579_s30 = scalar_lea.vmem %s9529_s1, 128 }
 0x645   : > { %5666 = vmatprep.subr.bf16.mxu1 %v8280_v27  ;;  %v5292_v27 = vrot.slane %v5287_v60, %v9640_v26  ;;  %p8580_p0 = scmp.ne.s32.totalorder %s9529_s1, %s8579_s30  ;;  %p8587_p12 = scmp.lt.s32.totalorder %s8585_s12, %s8579_s30 }
 0x647   : > { %p8581_p10 = pnand %p8580_p0, %p9647_p5  ;;  %p8588_p13 = por %p8587_p12, %p8586_p11 }
 0x648   : > { %5667 = vmatpush1.bf16.msra.mxu1 %v8278_v42  ;;  %v5296_v42 = vrot.slane %v5287_v60, %v9641_v15 }
 0x649   : > { %5668 = vmatprep.subr.bf16.mxu1 %v8283_v58  ;;  %p8582_p1 = pneg %p8581_p10 }
 0x64b   : > { %p8589_p8 = pnand %p8588_p13, %p8582_p1 }
 0x64c   : > { %5669 = vmatpush1.bf16.msra.mxu1 %v8281_v31 }
 0x64d   : > { %5670 = vmatprep.subr.bf16.mxu1 %v8286_v29 }
 0x650   : > { %5671 = vmatpush1.bf16.msra.mxu1 %v8284_v36 }
 0x651   : > { %5672 = vmatprep.subr.bf16.mxu1 %v8289_v5 }
 0x654   : > { %5673 = vmatpush1.bf16.msra.mxu1 %v8287_v52 }
 0x655   : > { %5674 = vmatprep.subr.bf16.mxu1 %v8292_v63 }
 0x658   : > { %5675 = vmatpush1.bf16.msra.mxu1 %v8290_v43 }
 0x659   : > { %5676 = vmatprep.subr.bf16.mxu1 %v8295_v10 }
 0x65c   : > { %5677 = vmatpush1.bf16.msra.mxu1 %v8293_v17  ;;  %v8366_v17 = vld [vmem:[#allocation13] sm:$0xff]  }
 0x65d   : > { %5678 = vmatprep.subr.bf16.mxu1 %v8298_v19 }
 0x660   : > { %5679 = vmatpush1.bf16.msra.mxu1 %v8296_v3  ;;  %v8367_v3 = vld [vmem:[#allocation13 + $0x48] sm:$0xff]  }
 0x661   : > { %5680 = vmatprep.subr.bf16.mxu1 %v8301_v13  ;;  %v8368_v13 = vld [vmem:[#allocation13 + $0x8] sm:$0xff]  }
 0x664   : > { %5681 = vmatpush1.bf16.msra.mxu1 %v8299_v28  ;;  %v8369_v28 = vld [vmem:[#allocation13 + $0x50] sm:$0xff]  }
 0x665   : > { %5682 = vmatprep.subr.bf16.mxu1 %v8304_v38  ;;  %v8370_v38 = vld [vmem:[#allocation13 + $0x10] sm:$0xff]  }
 0x668   : > { %5683 = vmatpush1.bf16.msra.mxu1 %v8302_v8  ;;  %v8371_v8 = vld [vmem:[#allocation13 + $0x58] sm:$0xff]  }
 0x669   : > { %5684 = vmatprep.subr.bf16.mxu1 %v8307_v39  ;;  %v8372_v39 = vld [vmem:[#allocation13 + $0x18] sm:$0xff]  }
 0x66c   : > { %5685 = vmatpush1.bf16.msra.mxu1 %v8305_v18  ;;  %v8373_v18 = vld [vmem:[#allocation13 + $0x60] sm:$0xff]  }
 0x66d   : > { %5686 = vmatprep.subr.bf16.mxu1 %v8310_v21  ;;  %v8374_v21 = vld [vmem:[#allocation13 + $0x20] sm:$0xff]  }
 0x670   : > { %5687 = vmatpush1.bf16.msra.mxu1 %v8308_v34  ;;  %v8375_v34 = vld [vmem:[#allocation13 + $0x68] sm:$0xff]  }
 0x671   : > { %5688 = vmatprep.subr.bf16.mxu1 %v8313_v24  ;;  %v8376_v24 = vld [vmem:[#allocation13 + $0x28] sm:$0xff]  }
 0x674   : > { %5689 = vmatpush1.bf16.msra.mxu1 %v8311_v9  ;;  %v8377_v9 = vld [vmem:[#allocation13 + $0x70] sm:$0xff]  }
 0x675   : > { %5690 = vmatprep.subr.bf16.mxu1 %v8316_v48  ;;  %v8378_v48 = vld [vmem:[#allocation13 + $0x30] sm:$0xff]  }
 0x678   : > { %5691 = vmatpush1.bf16.msra.mxu1 %v8314_v53  ;;  %v8379_v53 = vld [vmem:[#allocation13 + $0x78] sm:$0xff]  }
 0x679   : > { %5909 = vmatprep.subr.bf16.mxu1 %v8319_v49  ;;  %v5737_v49 = vld [vmem:[%s9644_s7] sm:$0x3] }
 0x67b   : > { %5693 = vmatmul.mubr.bf16.vlgmr.msra.gmra.mrb[96].mxu1 %v7035_v51  ;;  %v5746_v51 = vrot.slane %v5737_v49, %v9641_v15 }
 0x67c   : > { %5910 = vmatpush1.bf16.msra.mxu1 %v8317_v7  ;;  %v5742_v7 = vrot.slane %v5737_v49, %v9640_v26  ;;  %v6944_v26 = vld [vmem:[%s9645_s19] ss:$0 sm:$0xff] }
 0x67d   : > { %5911 = vmatprep.subr.bf16.mxu1 %v8322_v61 }
 0x680   : > { %5912 = vmatpush1.bf16.msra.mxu1 %v8320_v47 }
 0x681   : > { %5913 = vmatprep.subr.bf16.mxu1 %v8325_v4 }
 0x684   : > { %5914 = vmatpush1.bf16.msra.mxu1 %v8323_v50 }
 0x685   : > { %5915 = vmatprep.subr.bf16.mxu1 %v8328_v45 }
 0x688   : > { %5916 = vmatpush1.bf16.msra.mxu1 %v8326_v23 }
 0x689   : > { %5917 = vmatprep.subr.bf16.mxu1 %v8331_v56 }
 0x68c   : > { %5918 = vmatpush1.bf16.msra.mxu1 %v8329_v33 }
 0x68d   : > { %5919 = vmatprep.subr.bf16.mxu1 %v8334_v6 }
 0x690   : > { %5920 = vmatpush1.bf16.msra.mxu1 %v8332_v0 }
 0x691   : > { %5921 = vmatprep.subr.bf16.mxu1 %v8337_v11 }
 0x694   : > { %5922 = vmatpush1.bf16.msra.mxu1 %v8335_v62 }
 0x695   : > { %5923 = vmatprep.subr.bf16.mxu1 %v8340_v44 }
 0x698   : > { %5924 = vmatpush1.bf16.msra.mxu1 %v8338_v57 }
 0x699   : > { %5925 = vmatprep.subr.bf16.mxu1 %v8343_v32 }
 0x69c   : > { %5926 = vmatpush1.bf16.msra.mxu1 %v8341_v54 }
 0x69d   : > { %5927 = vmatprep.subr.bf16.mxu1 %v8346_v30 }
 0x6a0   : > { %5928 = vmatpush1.bf16.msra.mxu1 %v8344_v22 }
 0x6a1   : > { %5929 = vmatprep.subr.bf16.mxu1 %v8349_v59 }
 0x6a4   : > { %5930 = vmatpush1.bf16.msra.mxu1 %v8347_v20 }
 0x6a5   : > { %5931 = vmatprep.subr.bf16.mxu1 %v8352_v2 }
 0x6a8   : > { %5932 = vmatpush1.bf16.msra.mxu1 %v8350_v14 }
 0x6a9   : > { %5933 = vmatprep.subr.bf16.mxu1 %v8355_v41 }
 0x6ac   : > { %5934 = vmatpush1.bf16.msra.mxu1 %v8353_v35 }
 0x6ad   : > { %5935 = vmatprep.subr.bf16.mxu1 %v8358_v46 }
 0x6b0   : > { %5936 = vmatpush1.bf16.msra.mxu1 %v8356_v16 }
 0x6b1   : > { %5937 = vmatprep.subr.bf16.mxu1 %v8361_v12 }
 0x6b4   : > { %5938 = vmatpush1.bf16.msra.mxu1 %v8359_v55 }
 0x6b5   : > { %5939 = vmatprep.subr.bf16.mxu1 %v8364_v1 }
 0x6b8   : > { %5940 = vmatpush1.bf16.msra.mxu1 %v8362_v40 }
 0x6b9   : > { %7149 = vmatprep.subr.bf16.mxu1 %v8365_v37 }
 0x74e   : > { %v5694_v58 = vpop.f32.mrb[96].mxu1 }
 0x74f   : > { %v7283_v31 = vadd.f32 %v5694_v58, %v5292_v27  ;;  %v5696_v29 = vpop.f32.mrb[97].mxu1 }
 0x750   : > { %v7284_v36 = vadd.f32 %v5696_v29, %v5296_v42  ;;  %v5698_v5 = vpop.f32.mrb[98].mxu1 }
 0x751   : > { %v5701_v52 = vmax.f32 %v7283_v31, 0.0  ;;  %v5699_v63 = vpop.f32.mrb[99].mxu1 }
 0x752   : > { %v5702_v43 = vmax.f32 %v7284_v36, 0.0 }
 0x753   : > { %v5703_v19 = vpack.c.bf16 %v5701_v52, %v5701_v52 }
 0x754   : > { %v5704_v10 = vpack.c.bf16 %v5702_v43, %v5702_v43 }
 0x756   : > { %5941 = vmatprep.mubr.bf16.mxu1 %v5704_v10 }
 0x757   : > { %5942 = vmatmul.mubr.bf16.vlgmr.msra.gmra.mrb[100].mxu1 %v5703_v19 }
 0x758   : > { %7150 = vmatpush3.bf16.msra.mxu1 %v8366_v17 }
 0x759   : > { %7151 = vmatprep.subr.bf16.mxu1 %v8367_v3 }
 0x75c   : > { %7152 = vmatpush3.bf16.msra.mxu1 %v8368_v13 }
 0x75d   : > { %7153 = vmatprep.subr.bf16.mxu1 %v8369_v28 }
 0x760   : > { %7154 = vmatpush3.bf16.msra.mxu1 %v8370_v38 }
 0x761   : > { %7155 = vmatprep.subr.bf16.mxu1 %v8371_v8 }
 0x764   : > { %7156 = vmatpush3.bf16.msra.mxu1 %v8372_v39 }
 0x765   : > { %7157 = vmatprep.subr.bf16.mxu1 %v8373_v18 }
 0x768   : > { %7158 = vmatpush3.bf16.msra.mxu1 %v8374_v21 }
 0x769   : > { %7159 = vmatprep.subr.bf16.mxu1 %v8375_v34 }
 0x76c   : > { %7160 = vmatpush3.bf16.msra.mxu1 %v8376_v24 }
 0x76d   : > { %7161 = vmatprep.subr.bf16.mxu1 %v8377_v9 }
 0x770   : > { %7162 = vmatpush3.bf16.msra.mxu1 %v8378_v48 }
 0x771   : > { %7163 = vmatprep.subr.bf16.mxu1 %v8379_v53 }
 0x774   : > { %7164 = vmatpush3.bf16.msra.mxu1 %v8380_v25 }
 0x82a   : > { %v5943_v61 = vpop.f32.mrb[100].mxu1 }
 0x82b   : > { %v5944_v47 = vadd.f32 %v5943_v61, %v5742_v7  ;;  %v5945_v4 = vpop.f32.mrb[101].mxu1 }
 0x82c   : > { %v5946_v50 = vadd.f32 %v5945_v4, %v5746_v51  ;;  %v5947_v45 = vpop.f32.mrb[102].mxu1 }
 0x82d   : > { %v5950_v23 = vmax.f32 %v5944_v47, 0.0  ;;  %v5948_v56 = vpop.f32.mrb[103].mxu1 }
 0x82e   : > { %v5951_v33 = vmax.f32 %v5946_v50, 0.0 }
 0x82f   : > { %v5952_v0 = vpack.c.bf16 %v5950_v23, %v5950_v23 }
 0x830   : > { %v5953_v6 = vpack.c.bf16 %v5951_v33, %v5951_v33 }
 0x832   : > { %6121 = vmatprep.mubr.bf16.mxu1 %v5953_v6 }
 0x833   : > { %6122 = vmatmul.mubr.bf16.vlgmr.msra.gmra.mrb[104].mxu1 %v5952_v0 }
 0x906   : > { %v7165_v11 = vpop.f32.mrb[104].mxu1 }
 0x907   : > { %v7166_v15 = vpop.f32.mrb[105].mxu1 }
 0x908   : > { %v7167_v62 = vadd.f32 %v7166_v15, %v7165_v11  ;;  %v7168_v44 = vpop.f32.mrb[106].mxu1 }
 0x909   : > { %v7169_v57 = vpop.f32.mrb[107].mxu1 }
 0x90a   : > { %v6124_v32 = vadd.f32 %v7167_v62, %v6944_v26 }
 0x90c   : > { %6129 = vst [vmem:[%s544_s15] sm:$0xff] %v6124_v32 }
 0x90d   : > { %8592 = shalt.err (!%p8589_p8)
}
 0x90e   : > { %s8593_s9 = scalar_lea.hbm %s9527_s8, 128  ;;  %s8597_s20 = scalar_lea.hbm %s9646_s13, 256 }
 0x90f   : > { %p8594_p7 = scmp.ne.s32.totalorder %s9527_s8, %s8593_s9  ;;  %p8598_p3 = scmp.lt.u32.totalorder %s9527_s8, %s9646_s13 }
 0x910   : > { %p8599_p6 = scmp.lt.u32.totalorder %s8597_s20, %s8593_s9  ;;  %p8601_p0 = scmp.lt.u32.totalorder %s8593_s9, %s9527_s8 }
 0x911   : > { %p8595_p9 = pnand %p8594_p7, %p9647_p5 }
 0x912   : > { %p8600_p2 = por %p8599_p6, %p8598_p3 }
 0x913   : > { %p8596_p4 = pneg %p8595_p9 }
 0x914   : > { %p8602_p10 = por %p8601_p0, %p8600_p2 }
 0x916   : > { %p8603_p1 = pnand %p8602_p10, %p8596_p4 }
 0x918   : > { %8606 = shalt.err (!%p8603_p1)
}
 0x919   : > { %7461 = dma.vmem_to_hbm [thread:$0]  (%p9647_p5), %s9529_s1, 128, %s9527_s8, %s6131_s18  }
 0x91a PF: > { %s6156_s3 = sand.u32 1, %s8645_s25   ;;  %p9648_p11 = scmp.ne.s32.totalorder %s9624_s10, 0 }
 0x91b   : > { %p9649_p12 = scmp.ge.s32.totalorder %s8657_s28, 2  ;;  %s6157_s15 = scalar_lea.sflag [#allocation4], %s6156_s3 }
 0x91d   : > { %p7487_p13 = pnand %p9649_p12, %p9648_p11 }
 0x91f   : > { %8640 = dma.done.wait (!%p7487_p13), %s6157_s15, 128  }
 0x920   : > { %8642 = vsyncadd (!%p7487_p13), %s6157_s15, 4294967168  ;;  %p29_p8 = scmp.ge.s32.totalorder %s8942_s24, 4   ;;  %s9650_s25 = smov %s8649_s26 }
 0x921   : > { %s9651_s26 = smov %s8653_s27  ;;  %s9652_s27 = smov %s8953_s17 }
 0x922   : > { %s9653_s28 = smov %s8942_s24  ;;  %31 = sbr.rel (!%p29_p8) target bundleno = 18 (0x12), region = 141 }
 0x929   :  { %6162 = vsyncpa [#allocation3], 1 }
 0x92a   :  { %6164 = vsyncpa [#allocation3 + $0x1], 1 }
 0x92b   :  { %6165 = vsyncpa [#allocation6], 1 }
 0x92c   :  { %6166 = vsyncpa [#allocation9], 1 }
 0x92d   :  { %6167 = vsyncpa [#allocation12], 1 }
 0x92e   :  { %6168 = vsyncpa [#allocation4], 1 }
 0x92f   :  { %6170 = vsyncpa [#allocation4 + $0x1], 1 }

</bundles_post_ra>
